<compile_context>
chip_gen: v6e
topology: v6e:2x2x1
jax: 0.10.0
libtpu: 0.0.40
codegen_flags: <defaults>
</compile_context>

<pallas_src>
import numpy as np
import jax
import jax.numpy as jnp
from jax import lax
from jax.experimental import pallas as pl
from jax.experimental.pallas import tpu as pltpu

_EPS = 1e-5


# -------------- constant pooling / layout-selection matrices --------------

def _make_pool_sel(hf, wf, ho, wo, hop, wop, pad_out):
    """0/1 matrices implementing 2x2 max-pool corner selection + crop +
    zero-pad scatter into the next stage's (hop, wop) frame, as matmuls.

    Input layout : flattened (hf, wf) zero-framed conv-output frame (valid
                   conv pixels live at frame coords 1..hf-2, 1..wf-2).
    Output layout: flattened (hop, wop) frame; pooled pixel (i, j) lands at
                   frame coord (i + pad_out, j + pad_out); the rest stays 0.
    Returns (4, hf*wf, hop*wop): one matrix per 2x2-window corner.
    """
    sel = np.zeros((4, hf * wf, hop * wop), np.float32)
    for i in range(ho):
        for j in range(wo):
            q = (i + pad_out) * wop + (j + pad_out)
            for dy in range(2):
                for dx in range(2):
                    p = (2 * i + 1 + dy) * wf + (2 * j + 1 + dx)
                    sel[dy * 2 + dx, p, q] = 1.0
    return jnp.asarray(sel, dtype=jnp.bfloat16)


# conv1 frame 30x30 -> pooled 14x14 scattered into conv2's 16x16 zero frame
_SEL1 = _make_pool_sel(30, 30, 14, 14, 16, 16, 1)
# conv2 frame 16x16 -> pooled 7x7 (dense, channel-major flatten order)
_SEL2 = _make_pool_sel(16, 16, 7, 7, 7, 7, 0)


# ------------------------------ Pallas kernels ------------------------------

def _conv_block_kernel(xs_ref, w_ref, scale_ref, shift_ref, sel_ref, o_ref):
    """Fused conv3x3 + BN(eval) + tanh + maxpool2x2 (+ crop / next-frame pad).

    xs_ref   : (1, 9*C, P)  9 shifted copies of the zero-framed input (bf16)
    w_ref    : (OC, 9*C)    conv weight, rows = (di*3+dj)*C + c (bf16)
    scale_ref: (OC, 1)      folded BN scale  gamma / sqrt(var+eps)   (f32)
    shift_ref: (OC, 1)      folded shift     (bias-mean)*scale+beta  (f32)
    sel_ref  : (4, P, Po)   0/1 corner-selection matrices (bf16)
    o_ref    : (1, OC, Po)  pooled output in the next stage's layout (bf16)
    """
    xs = xs_ref[0]                                                   # (9C, P)
    z = jnp.dot(w_ref[...], xs, preferred_element_type=jnp.float32)  # (OC, P)
    z = jnp.tanh(z * scale_ref[...] + shift_ref[...])
    zb = z.astype(jnp.bfloat16)
    pooled = jnp.dot(zb, sel_ref[0], preferred_element_type=jnp.float32)
    for c in range(1, 4):
        pooled = jnp.maximum(
            pooled, jnp.dot(zb, sel_ref[c], preferred_element_type=jnp.float32))
    o_ref[0] = pooled.astype(o_ref.dtype)


def _head_kernel(x_ref, w_ref, b_ref, o_ref):
    """Fused Linear + BatchNorm1d(eval, folded into w/b) + log-softmax."""
    z = lax.dot_general(x_ref[...], w_ref[...],
                        dimension_numbers=(((1,), (1,)), ((), ())),
                        preferred_element_type=jnp.float32)
    z = z + b_ref[...]
    z = z - jnp.max(z, axis=1, keepdims=True)
    z = z - jnp.log(jnp.sum(jnp.exp(z), axis=1, keepdims=True))
    o_ref[...] = z.astype(o_ref.dtype)


# ------------------------------ wrappers ------------------------------

def _shifted_stack(x_frame):
    """(N, C, Hf, Wf) zero-framed conv input -> (N, 9*C, Hf*Wf) bf16 where row
    (di*3+dj)*C + c at flat position (h, w) holds x_frame[n, c, h+di-1, w+dj-1]
    (zero outside the frame).  KB-scale XLA glue; keeps the kernel shift-free."""
    n, c, hf, wf = x_frame.shape
    xp = jnp.pad(x_frame, ((0, 0), (0, 0), (1, 1), (1, 1)))
    views = [xp[:, :, di:di + hf, dj:dj + wf]
             for di in range(3) for dj in range(3)]
    xs = jnp.stack(views, axis=1)                         # (N, 9, C, Hf, Wf)
    return xs.reshape(n, 9 * c, hf * wf).astype(jnp.bfloat16)


def conv_bn_tanh_pool(x_frame, w, scale, shift, sel):
    """One fused conv block.  x_frame: (N, C, Hf, Wf) zero-framed input."""
    n, c, hf, wf = x_frame.shape
    oc = w.shape[0]
    p = hf * wf
    po = sel.shape[-1]
    xs = _shifted_stack(x_frame)                                   # (N, 9C, P)
    w9 = jnp.transpose(w, (0, 2, 3, 1)).reshape(oc, 9 * c).astype(jnp.bfloat16)
    scale2 = scale.reshape(oc, 1).astype(jnp.float32)
    shift2 = shift.reshape(oc, 1).astype(jnp.float32)
    return pl.pallas_call(
        _conv_block_kernel,
        out_shape=jax.ShapeDtypeStruct((n, oc, po), jnp.bfloat16),
        grid=(n,),
        in_specs=[
            pl.BlockSpec((1, 9 * c, p), lambda i: (i, 0, 0)),
            pl.BlockSpec((oc, 9 * c), lambda i: (0, 0)),
            pl.BlockSpec((oc, 1), lambda i: (0, 0)),
            pl.BlockSpec((oc, 1), lambda i: (0, 0)),
            pl.BlockSpec((4, p, po), lambda i: (0, 0, 0)),
        ],
        out_specs=pl.BlockSpec((1, oc, po), lambda i: (i, 0, 0)),
        compiler_params=pltpu.CompilerParams(
            dimension_semantics=("parallel",)),
    )(xs, w9, scale2, shift2, sel)


def linear_bn_logsoftmax(x, w, b, gamma, beta, mean, var):
    """log_softmax(BN1d_eval(x @ w.T + b)) with BN folded into w/b."""
    n, k = x.shape
    o = w.shape[0]
    s = gamma * lax.rsqrt(var + _EPS)
    weff = (w * s[:, None]).astype(jnp.bfloat16)
    beff = ((b - mean) * s + beta).reshape(1, o).astype(jnp.float32)
    return pl.pallas_call(
        _head_kernel,
        out_shape=jax.ShapeDtypeStruct((n, o), jnp.float32),
        grid=(1,),
        in_specs=[
            pl.BlockSpec((n, k), lambda i: (0, 0)),
            pl.BlockSpec((o, k), lambda i: (0, 0)),
            pl.BlockSpec((1, o), lambda i: (0, 0)),
        ],
        out_specs=pl.BlockSpec((n, o), lambda i: (0, 0)),
    )(x.astype(jnp.bfloat16), weff, beff)


# ------------------------------ model forward ------------------------------

def cnn_forward(params, x):
    """CNN.forward.
    # TODO(synk): Dropout2d is identity and BatchNorm2d/1d use running
    # statistics (inference mode); training-mode batch stats / dropout masks
    # are not implemented.
    """
    n = x.shape[0]

    # block 1: Conv2d(1,8,3,pad=1) + BN(8) + Tanh + MaxPool(2,2)
    s1 = params["bn1_g"] * lax.rsqrt(params["bn1_v"] + _EPS)
    t1 = (params["conv1_b"] - params["bn1_m"]) * s1 + params["bn1_b"]
    x1 = jnp.pad(x, ((0, 0), (0, 0), (1, 1), (1, 1)))             # (N,1,30,30)
    y1 = conv_bn_tanh_pool(x1, params["conv1_w"], s1, t1, _SEL1)  # (N,8,256)

    # block 2: Conv2d(8,16,3,pad=1) + BN(16) + Tanh + MaxPool(2,2)
    s2 = params["bn2_g"] * lax.rsqrt(params["bn2_v"] + _EPS)
    t2 = (params["conv2_b"] - params["bn2_m"]) * s2 + params["bn2_b"]
    x2 = y1.reshape(n, 8, 16, 16)        # already the zero-framed 16x16 layout
    y2 = conv_bn_tanh_pool(x2, params["conv2_w"], s2, t2, _SEL2)  # (N,16,49)

    # head: Flatten + Linear(16*7*7, out) + BN1d(out) + LogSoftmax
    h = y2.reshape(n, 16 * 7 * 7)
    return linear_bn_logsoftmax(h, params["fc_w"], params["fc_b"],
                                params["bnf_g"], params["bnf_b"],
                                params["bnf_m"], params["bnf_v"])


# ------------------------------ reference & init ------------------------------

def reference_forward(params, x):
    """Pure-JAX reference with identical eval-mode semantics (for checking)."""
    def block(h, w, b, g, bt, m, v):
        z = lax.conv_general_dilated(
            h, w, window_strides=(1, 1), padding=((1, 1), (1, 1)),
            dimension_numbers=("NCHW", "OIHW", "NCHW"))
        z = z + b[None, :, None, None]
        s = g * lax.rsqrt(v + _EPS)
        z = (z - m[None, :, None, None]) * s[None, :, None, None] \
            + bt[None, :, None, None]
        z = jnp.tanh(z)
        n, c, hh, ww = z.shape
        return z.reshape(n, c, hh // 2, 2, ww // 2, 2).max(axis=(3, 5))

    h = block(x, params["conv1_w"], params["conv1_b"], params["bn1_g"],
              params["bn1_b"], params["bn1_m"], params["bn1_v"])
    h = block(h, params["conv2_w"], params["conv2_b"], params["bn2_g"],
              params["bn2_b"], params["bn2_m"], params["bn2_v"])
    n = h.shape[0]
    z = h.reshape(n, -1) @ params["fc_w"].T + params["fc_b"]
    s = params["bnf_g"] * lax.rsqrt(params["bnf_v"] + _EPS)
    z = (z - params["bnf_m"]) * s + params["bnf_b"]
    return jax.nn.log_softmax(z, axis=1)


def init_params(key, out_size):
    keys = jax.random.split(key, 18)

    def conv_w(k, oc, ic, ks):
        return (jax.random.normal(k, (oc, ic, ks, ks), jnp.float32)
                / np.sqrt(float(ic * ks * ks)))

    def lin_w(k, oc, ic):
        return jax.random.normal(k, (oc, ic), jnp.float32) / np.sqrt(float(ic))

    def bn(kg, kb, km, kv, c):
        return (1.0 + 0.1 * jax.random.normal(kg, (c,), jnp.float32),
                0.1 * jax.random.normal(kb, (c,), jnp.float32),
                0.1 * jax.random.normal(km, (c,), jnp.float32),
                1.0 + 0.1 * jnp.abs(jax.random.normal(kv, (c,), jnp.float32)))

    bn1 = bn(keys[2], keys[3], keys[4], keys[5], 8)
    bn2 = bn(keys[8], keys[9], keys[10], keys[11], 16)
    bnf = bn(keys[14], keys[15], keys[16], keys[17], out_size)
    return {
        "conv1_w": conv_w(keys[0], 8, 1, 3),
        "conv1_b": 0.05 * jax.random.normal(keys[1], (8,), jnp.float32),
        "bn1_g": bn1[0], "bn1_b": bn1[1], "bn1_m": bn1[2], "bn1_v": bn1[3],
        "conv2_w": conv_w(keys[6], 16, 8, 3),
        "conv2_b": 0.05 * jax.random.normal(keys[7], (16,), jnp.float32),
        "bn2_g": bn2[0], "bn2_b": bn2[1], "bn2_m": bn2[2], "bn2_v": bn2[3],
        "fc_w": lin_w(keys[12], out_size, 16 * 7 * 7),
        "fc_b": 0.05 * jax.random.normal(keys[13], (out_size,), jnp.float32),
        "bnf_g": bnf[0], "bnf_b": bnf[1], "bnf_m": bnf[2], "bnf_v": bnf[3],
    }


if __name__ == "__main__":
    out_size = 10
    key = jax.random.PRNGKey(0)
    pkey, xkey = jax.random.split(key)
    params = init_params(pkey, out_size)
    # Linear(16*7*7, out) after two stride-2 pools implies 1x28x28 inputs.
    x = jax.random.normal(xkey, (2, 1, 28, 28), jnp.float32)

    fwd = jax.jit(cnn_forward)
    out = fwd(params, x)
    jax.block_until_ready(out)

    assert out.shape == (2, out_size), out.shape
    # log-probabilities must sum to 1 in probability space
    assert jnp.allclose(jnp.sum(jnp.exp(out), axis=1), 1.0, atol=1e-3)
    # compare against a pure-JAX reference (bf16 MXU operands -> loose tol)
    ref = reference_forward(params, x)
    err = float(jnp.max(jnp.abs(out - ref)))
    assert err < 0.25, f"max |pallas - reference| = {err}"
    print("KERNEL_OK")
</pallas_src>

<mosaic_0001>
module attributes {stable_mosaic.version = 11 : i64} {
  func.func @_conv_block_kernel(%arg0: i32, %arg1: memref<1x9x900xbf16, #tpu.memory_space<vmem>>, %arg2: memref<8x9xbf16, #tpu.memory_space<vmem>>, %arg3: memref<8x1xf32, #tpu.memory_space<vmem>>, %arg4: memref<8x1xf32, #tpu.memory_space<vmem>>, %arg5: memref<4x900x256xbf16, #tpu.memory_space<vmem>>, %arg6: memref<1x8x256xbf16, #tpu.memory_space<vmem>>) attributes {dimension_semantics = [#tpu.dimension_semantics<parallel>], iteration_bounds = array<i64: 2>, scalar_prefetch = 0 : i64, scratch_operands = 0 : i64, tpu.core_type = #tpu.core_type<tc>, window_params = [{transform_indices = @transform_0, window_bounds = array<i64: 1, 9, 900>}, {pipeline_mode = #tpu.pipeline_mode<synchronous>, transform_indices = @transform_1, window_bounds = array<i64: 8, 9>}, {pipeline_mode = #tpu.pipeline_mode<synchronous>, transform_indices = @transform_2, window_bounds = array<i64: 8, 1>}, {pipeline_mode = #tpu.pipeline_mode<synchronous>, transform_indices = @transform_3, window_bounds = array<i64: 8, 1>}, {pipeline_mode = #tpu.pipeline_mode<synchronous>, transform_indices = @transform_4, window_bounds = array<i64: 4, 900, 256>}, {transform_indices = @transform_5, window_bounds = array<i64: 1, 8, 256>}]} {
    %c0 = arith.constant 0 : index
    %c0_0 = arith.constant 0 : index
    %c0_1 = arith.constant 0 : index
    %0 = vector.load %arg1[%c0, %c0_0, %c0_1] : memref<1x9x900xbf16, #tpu.memory_space<vmem>>, vector<1x9x900xbf16>
    %1 = vector.shape_cast %0 : vector<1x9x900xbf16> to vector<9x900xbf16>
    %c0_2 = arith.constant 0 : index
    %c0_3 = arith.constant 0 : index
    %2 = vector.load %arg2[%c0_2, %c0_3] : memref<8x9xbf16, #tpu.memory_space<vmem>>, vector<8x9xbf16>
    %cst = arith.constant dense<0.000000e+00> : vector<8x900xf32>
    %3 = tpu.matmul %2, %1, %cst {dimension_numbers = #tpu.dot_dimension_numbers<[1], [0], [0], [1], [0, 0, 1, 1], [], []>} : vector<8x9xbf16>, vector<9x900xbf16>, vector<8x900xf32> -> vector<8x900xf32>
    %c0_4 = arith.constant 0 : index
    %c0_5 = arith.constant 0 : index
    %4 = vector.load %arg3[%c0_4, %c0_5] : memref<8x1xf32, #tpu.memory_space<vmem>>, vector<8x1xf32>
    %5 = vector.broadcast %4 : vector<8x1xf32> to vector<8x900xf32>
    %6 = arith.mulf %3, %5 : vector<8x900xf32>
    %c0_6 = arith.constant 0 : index
    %c0_7 = arith.constant 0 : index
    %7 = vector.load %arg4[%c0_6, %c0_7] : memref<8x1xf32, #tpu.memory_space<vmem>>, vector<8x1xf32>
    %8 = vector.broadcast %7 : vector<8x1xf32> to vector<8x900xf32>
    %9 = arith.addf %6, %8 : vector<8x900xf32>
    %10 = math.tanh %9 : vector<8x900xf32>
    %11 = arith.truncf %10 : vector<8x900xf32> to vector<8x900xbf16>
    %c0_8 = arith.constant 0 : index
    %c0_9 = arith.constant 0 : index
    %c0_10 = arith.constant 0 : index
    %12 = vector.load %arg5[%c0_8, %c0_9, %c0_10] : memref<4x900x256xbf16, #tpu.memory_space<vmem>>, vector<1x900x256xbf16>
    %13 = vector.shape_cast %12 : vector<1x900x256xbf16> to vector<900x256xbf16>
    %cst_11 = arith.constant dense<0.000000e+00> : vector<8x256xf32>
    %14 = tpu.matmul %11, %13, %cst_11 {dimension_numbers = #tpu.dot_dimension_numbers<[1], [0], [0], [1], [0, 0, 1, 1], [], []>} : vector<8x900xbf16>, vector<900x256xbf16>, vector<8x256xf32> -> vector<8x256xf32>
    %c1 = arith.constant 1 : index
    %c0_12 = arith.constant 0 : index
    %c0_13 = arith.constant 0 : index
    %15 = vector.load %arg5[%c1, %c0_12, %c0_13] : memref<4x900x256xbf16, #tpu.memory_space<vmem>>, vector<1x900x256xbf16>
    %16 = vector.shape_cast %15 : vector<1x900x256xbf16> to vector<900x256xbf16>
    %cst_14 = arith.constant dense<0.000000e+00> : vector<8x256xf32>
    %17 = tpu.matmul %11, %16, %cst_14 {dimension_numbers = #tpu.dot_dimension_numbers<[1], [0], [0], [1], [0, 0, 1, 1], [], []>} : vector<8x900xbf16>, vector<900x256xbf16>, vector<8x256xf32> -> vector<8x256xf32>
    %18 = arith.maximumf %14, %17 : vector<8x256xf32>
    %c2 = arith.constant 2 : index
    %c0_15 = arith.constant 0 : index
    %c0_16 = arith.constant 0 : index
    %19 = vector.load %arg5[%c2, %c0_15, %c0_16] : memref<4x900x256xbf16, #tpu.memory_space<vmem>>, vector<1x900x256xbf16>
    %20 = vector.shape_cast %19 : vector<1x900x256xbf16> to vector<900x256xbf16>
    %cst_17 = arith.constant dense<0.000000e+00> : vector<8x256xf32>
    %21 = tpu.matmul %11, %20, %cst_17 {dimension_numbers = #tpu.dot_dimension_numbers<[1], [0], [0], [1], [0, 0, 1, 1], [], []>} : vector<8x900xbf16>, vector<900x256xbf16>, vector<8x256xf32> -> vector<8x256xf32>
    %22 = arith.maximumf %18, %21 : vector<8x256xf32>
    %c3 = arith.constant 3 : index
    %c0_18 = arith.constant 0 : index
    %c0_19 = arith.constant 0 : index
    %23 = vector.load %arg5[%c3, %c0_18, %c0_19] : memref<4x900x256xbf16, #tpu.memory_space<vmem>>, vector<1x900x256xbf16>
    %24 = vector.shape_cast %23 : vector<1x900x256xbf16> to vector<900x256xbf16>
    %cst_20 = arith.constant dense<0.000000e+00> : vector<8x256xf32>
    %25 = tpu.matmul %11, %24, %cst_20 {dimension_numbers = #tpu.dot_dimension_numbers<[1], [0], [0], [1], [0, 0, 1, 1], [], []>} : vector<8x900xbf16>, vector<900x256xbf16>, vector<8x256xf32> -> vector<8x256xf32>
    %26 = arith.maximumf %22, %25 : vector<8x256xf32>
    %27 = arith.truncf %26 : vector<8x256xf32> to vector<8x256xbf16>
    %c0_21 = arith.constant 0 : index
    %c0_22 = arith.constant 0 : index
    %c0_23 = arith.constant 0 : index
    %28 = vector.load %arg6[%c0_21, %c0_22, %c0_23] : memref<1x8x256xbf16, #tpu.memory_space<vmem>>, vector<1x8x256xbf16>
    %29 = vector.shape_cast %28 : vector<1x8x256xbf16> to vector<8x256xbf16>
    %30 = vector.shape_cast %27 : vector<8x256xbf16> to vector<1x8x256xbf16>
    tpu.vector_store %arg6[%c0_21, %c0_22, %c0_23], %30 {strides = array<i32>} : memref<1x8x256xbf16, #tpu.memory_space<vmem>>, vector<1x8x256xbf16>,
    return
  }
  func.func @transform_0(%arg0: i32) -> (i32, i32, i32) {
    %c0_i32 = arith.constant 0 : i32
    %c0_i32_0 = arith.constant 0 : i32
    %c0_i32_1 = arith.constant 0 : i32
    return %arg0, %c0_i32, %c0_i32_0 : i32, i32, i32
  }
  func.func @transform_1(%arg0: i32) -> (i32, i32) {
    %c0_i32 = arith.constant 0 : i32
    %c0_i32_0 = arith.constant 0 : i32
    %c0_i32_1 = arith.constant 0 : i32
    return %c0_i32, %c0_i32_0 : i32, i32
  }
  func.func @transform_2(%arg0: i32) -> (i32, i32) {
    %c0_i32 = arith.constant 0 : i32
    %c0_i32_0 = arith.constant 0 : i32
    %c0_i32_1 = arith.constant 0 : i32
    return %c0_i32, %c0_i32_0 : i32, i32
  }
  func.func @transform_3(%arg0: i32) -> (i32, i32) {
    %c0_i32 = arith.constant 0 : i32
    %c0_i32_0 = arith.constant 0 : i32
    %c0_i32_1 = arith.constant 0 : i32
    return %c0_i32, %c0_i32_0 : i32, i32
  }
  func.func @transform_4(%arg0: i32) -> (i32, i32, i32) {
    %c0_i32 = arith.constant 0 : i32
    %c0_i32_0 = arith.constant 0 : i32
    %c0_i32_1 = arith.constant 0 : i32
    %c0_i32_2 = arith.constant 0 : i32
    return %c0_i32, %c0_i32_0, %c0_i32_1 : i32, i32, i32
  }
  func.func @transform_5(%arg0: i32) -> (i32, i32, i32) {
    %c0_i32 = arith.constant 0 : i32
    %c0_i32_0 = arith.constant 0 : i32
    %c0_i32_1 = arith.constant 0 : i32
    return %arg0, %c0_i32, %c0_i32_0 : i32, i32, i32
  }
}

module attributes {stable_mosaic.version = 11 : i64} {
  func.func @_conv_block_kernel(%arg0: i32, %arg1: memref<1x72x256xbf16, #tpu.memory_space<vmem>>, %arg2: memref<16x72xbf16, #tpu.memory_space<vmem>>, %arg3: memref<16x1xf32, #tpu.memory_space<vmem>>, %arg4: memref<16x1xf32, #tpu.memory_space<vmem>>, %arg5: memref<4x256x49xbf16, #tpu.memory_space<vmem>>, %arg6: memref<1x16x49xbf16, #tpu.memory_space<vmem>>) attributes {dimension_semantics = [#tpu.dimension_semantics<parallel>], iteration_bounds = array<i64: 2>, scalar_prefetch = 0 : i64, scratch_operands = 0 : i64, tpu.core_type = #tpu.core_type<tc>, window_params = [{transform_indices = @transform_0, window_bounds = array<i64: 1, 72, 256>}, {pipeline_mode = #tpu.pipeline_mode<synchronous>, transform_indices = @transform_1, window_bounds = array<i64: 16, 72>}, {pipeline_mode = #tpu.pipeline_mode<synchronous>, transform_indices = @transform_2, window_bounds = array<i64: 16, 1>}, {pipeline_mode = #tpu.pipeline_mode<synchronous>, transform_indices = @transform_3, window_bounds = array<i64: 16, 1>}, {pipeline_mode = #tpu.pipeline_mode<synchronous>, transform_indices = @transform_4, window_bounds = array<i64: 4, 256, 49>}, {transform_indices = @transform_5, window_bounds = array<i64: 1, 16, 49>}]} {
    %c0 = arith.constant 0 : index
    %c0_0 = arith.constant 0 : index
    %c0_1 = arith.constant 0 : index
    %0 = vector.load %arg1[%c0, %c0_0, %c0_1] : memref<1x72x256xbf16, #tpu.memory_space<vmem>>, vector<1x72x256xbf16>
    %1 = vector.shape_cast %0 : vector<1x72x256xbf16> to vector<72x256xbf16>
    %c0_2 = arith.constant 0 : index
    %c0_3 = arith.constant 0 : index
    %2 = vector.load %arg2[%c0_2, %c0_3] : memref<16x72xbf16, #tpu.memory_space<vmem>>, vector<16x72xbf16>
    %cst = arith.constant dense<0.000000e+00> : vector<16x256xf32>
    %3 = tpu.matmul %2, %1, %cst {dimension_numbers = #tpu.dot_dimension_numbers<[1], [0], [0], [1], [0, 0, 1, 1], [], []>} : vector<16x72xbf16>, vector<72x256xbf16>, vector<16x256xf32> -> vector<16x256xf32>
    %c0_4 = arith.constant 0 : index
    %c0_5 = arith.constant 0 : index
    %4 = vector.load %arg3[%c0_4, %c0_5] : memref<16x1xf32, #tpu.memory_space<vmem>>, vector<16x1xf32>
    %5 = vector.broadcast %4 : vector<16x1xf32> to vector<16x256xf32>
    %6 = arith.mulf %3, %5 : vector<16x256xf32>
    %c0_6 = arith.constant 0 : index
    %c0_7 = arith.constant 0 : index
    %7 = vector.load %arg4[%c0_6, %c0_7] : memref<16x1xf32, #tpu.memory_space<vmem>>, vector<16x1xf32>
    %8 = vector.broadcast %7 : vector<16x1xf32> to vector<16x256xf32>
    %9 = arith.addf %6, %8 : vector<16x256xf32>
    %10 = math.tanh %9 : vector<16x256xf32>
    %11 = arith.truncf %10 : vector<16x256xf32> to vector<16x256xbf16>
    %c0_8 = arith.constant 0 : index
    %c0_9 = arith.constant 0 : index
    %c0_10 = arith.constant 0 : index
    %12 = vector.load %arg5[%c0_8, %c0_9, %c0_10] : memref<4x256x49xbf16, #tpu.memory_space<vmem>>, vector<1x256x49xbf16>
    %13 = vector.shape_cast %12 : vector<1x256x49xbf16> to vector<256x49xbf16>
    %cst_11 = arith.constant dense<0.000000e+00> : vector<16x49xf32>
    %14 = tpu.matmul %11, %13, %cst_11 {dimension_numbers = #tpu.dot_dimension_numbers<[1], [0], [0], [1], [0, 0, 1, 1], [], []>} : vector<16x256xbf16>, vector<256x49xbf16>, vector<16x49xf32> -> vector<16x49xf32>
    %c1 = arith.constant 1 : index
    %c0_12 = arith.constant 0 : index
    %c0_13 = arith.constant 0 : index
    %15 = vector.load %arg5[%c1, %c0_12, %c0_13] : memref<4x256x49xbf16, #tpu.memory_space<vmem>>, vector<1x256x49xbf16>
    %16 = vector.shape_cast %15 : vector<1x256x49xbf16> to vector<256x49xbf16>
    %cst_14 = arith.constant dense<0.000000e+00> : vector<16x49xf32>
    %17 = tpu.matmul %11, %16, %cst_14 {dimension_numbers = #tpu.dot_dimension_numbers<[1], [0], [0], [1], [0, 0, 1, 1], [], []>} : vector<16x256xbf16>, vector<256x49xbf16>, vector<16x49xf32> -> vector<16x49xf32>
    %18 = arith.maximumf %14, %17 : vector<16x49xf32>
    %c2 = arith.constant 2 : index
    %c0_15 = arith.constant 0 : index
    %c0_16 = arith.constant 0 : index
    %19 = vector.load %arg5[%c2, %c0_15, %c0_16] : memref<4x256x49xbf16, #tpu.memory_space<vmem>>, vector<1x256x49xbf16>
    %20 = vector.shape_cast %19 : vector<1x256x49xbf16> to vector<256x49xbf16>
    %cst_17 = arith.constant dense<0.000000e+00> : vector<16x49xf32>
    %21 = tpu.matmul %11, %20, %cst_17 {dimension_numbers = #tpu.dot_dimension_numbers<[1], [0], [0], [1], [0, 0, 1, 1], [], []>} : vector<16x256xbf16>, vector<256x49xbf16>, vector<16x49xf32> -> vector<16x49xf32>
    %22 = arith.maximumf %18, %21 : vector<16x49xf32>
    %c3 = arith.constant 3 : index
    %c0_18 = arith.constant 0 : index
    %c0_19 = arith.constant 0 : index
    %23 = vector.load %arg5[%c3, %c0_18, %c0_19] : memref<4x256x49xbf16, #tpu.memory_space<vmem>>, vector<1x256x49xbf16>
    %24 = vector.shape_cast %23 : vector<1x256x49xbf16> to vector<256x49xbf16>
    %cst_20 = arith.constant dense<0.000000e+00> : vector<16x49xf32>
    %25 = tpu.matmul %11, %24, %cst_20 {dimension_numbers = #tpu.dot_dimension_numbers<[1], [0], [0], [1], [0, 0, 1, 1], [], []>} : vector<16x256xbf16>, vector<256x49xbf16>, vector<16x49xf32> -> vector<16x49xf32>
    %26 = arith.maximumf %22, %25 : vector<16x49xf32>
    %27 = arith.truncf %26 : vector<16x49xf32> to vector<16x49xbf16>
    %c0_21 = arith.constant 0 : index
    %c0_22 = arith.constant 0 : index
    %c0_23 = arith.constant 0 : index
    %28 = vector.load %arg6[%c0_21, %c0_22, %c0_23] : memref<1x16x49xbf16, #tpu.memory_space<vmem>>, vector<1x16x49xbf16>
    %29 = vector.shape_cast %28 : vector<1x16x49xbf16> to vector<16x49xbf16>
    %30 = vector.shape_cast %27 : vector<16x49xbf16> to vector<1x16x49xbf16>
    tpu.vector_store %arg6[%c0_21, %c0_22, %c0_23], %30 {strides = array<i32>} : memref<1x16x49xbf16, #tpu.memory_space<vmem>>, vector<1x16x49xbf16>,
    return
  }
  func.func @transform_0(%arg0: i32) -> (i32, i32, i32) {
    %c0_i32 = arith.constant 0 : i32
    %c0_i32_0 = arith.constant 0 : i32
    %c0_i32_1 = arith.constant 0 : i32
    return %arg0, %c0_i32, %c0_i32_0 : i32, i32, i32
  }
  func.func @transform_1(%arg0: i32) -> (i32, i32) {
    %c0_i32 = arith.constant 0 : i32
    %c0_i32_0 = arith.constant 0 : i32
    %c0_i32_1 = arith.constant 0 : i32
    return %c0_i32, %c0_i32_0 : i32, i32
  }
  func.func @transform_2(%arg0: i32) -> (i32, i32) {
    %c0_i32 = arith.constant 0 : i32
    %c0_i32_0 = arith.constant 0 : i32
    %c0_i32_1 = arith.constant 0 : i32
    return %c0_i32, %c0_i32_0 : i32, i32
  }
  func.func @transform_3(%arg0: i32) -> (i32, i32) {
    %c0_i32 = arith.constant 0 : i32
    %c0_i32_0 = arith.constant 0 : i32
    %c0_i32_1 = arith.constant 0 : i32
    return %c0_i32, %c0_i32_0 : i32, i32
  }
  func.func @transform_4(%arg0: i32) -> (i32, i32, i32) {
    %c0_i32 = arith.constant 0 : i32
    %c0_i32_0 = arith.constant 0 : i32
    %c0_i32_1 = arith.constant 0 : i32
    %c0_i32_2 = arith.constant 0 : i32
    return %c0_i32, %c0_i32_0, %c0_i32_1 : i32, i32, i32
  }
  func.func @transform_5(%arg0: i32) -> (i32, i32, i32) {
    %c0_i32 = arith.constant 0 : i32
    %c0_i32_0 = arith.constant 0 : i32
    %c0_i32_1 = arith.constant 0 : i32
    return %arg0, %c0_i32, %c0_i32_0 : i32, i32, i32
  }
}

module attributes {stable_mosaic.version = 11 : i64} {
  func.func @_head_kernel(%arg0: i32, %arg1: memref<2x784xbf16, #tpu.memory_space<vmem>>, %arg2: memref<10x784xbf16, #tpu.memory_space<vmem>>, %arg3: memref<1x10xf32, #tpu.memory_space<vmem>>, %arg4: memref<2x10xf32, #tpu.memory_space<vmem>>) attributes {dimension_semantics = [#tpu.dimension_semantics<arbitrary>], iteration_bounds = array<i64: 1>, scalar_prefetch = 0 : i64, scratch_operands = 0 : i64, tpu.core_type = #tpu.core_type<tc>, window_params = [{pipeline_mode = #tpu.pipeline_mode<synchronous>, transform_indices = @transform_0, window_bounds = array<i64: 2, 784>}, {pipeline_mode = #tpu.pipeline_mode<synchronous>, transform_indices = @transform_1, window_bounds = array<i64: 10, 784>}, {pipeline_mode = #tpu.pipeline_mode<synchronous>, transform_indices = @transform_2, window_bounds = array<i64: 1, 10>}, {pipeline_mode = #tpu.pipeline_mode<synchronous>, transform_indices = @transform_3, window_bounds = array<i64: 2, 10>}]} {
    %c0 = arith.constant 0 : index
    %c0_0 = arith.constant 0 : index
    %0 = vector.load %arg1[%c0, %c0_0] : memref<2x784xbf16, #tpu.memory_space<vmem>>, vector<2x784xbf16>
    %c0_1 = arith.constant 0 : index
    %c0_2 = arith.constant 0 : index
    %1 = vector.load %arg2[%c0_1, %c0_2] : memref<10x784xbf16, #tpu.memory_space<vmem>>, vector<10x784xbf16>
    %cst = arith.constant dense<0.000000e+00> : vector<2x10xf32>
    %2 = tpu.matmul %0, %1, %cst {dimension_numbers = #tpu.dot_dimension_numbers<[1], [1], [0], [0], [0, 0, 1, 0], [], []>} : vector<2x784xbf16>, vector<10x784xbf16>, vector<2x10xf32> -> vector<2x10xf32>
    %c0_3 = arith.constant 0 : index
    %c0_4 = arith.constant 0 : index
    %3 = vector.load %arg3[%c0_3, %c0_4] : memref<1x10xf32, #tpu.memory_space<vmem>>, vector<1x10xf32>
    %4 = vector.broadcast %3 : vector<1x10xf32> to vector<2x10xf32>
    %5 = arith.addf %2, %4 : vector<2x10xf32>
    %cst_5 = arith.constant dense<0xFF800000> : vector<2xf32>
    %6 = vector.multi_reduction <maximumf>, %5, %cst_5 [1] : vector<2x10xf32> to vector<2xf32>
    %7 = vector.shape_cast %6 : vector<2xf32> to vector<2x1xf32>
    %8 = vector.broadcast %7 : vector<2x1xf32> to vector<2x10xf32>
    %9 = arith.subf %5, %8 : vector<2x10xf32>
    %10 = math.exp %9 : vector<2x10xf32>
    %cst_6 = arith.constant dense<0.000000e+00> : vector<2xf32>
    %11 = vector.multi_reduction <add>, %10, %cst_6 [1] : vector<2x10xf32> to vector<2xf32>
    %12 = vector.shape_cast %11 : vector<2xf32> to vector<2x1xf32>
    %13 = math.log %12 : vector<2x1xf32>
    %14 = vector.broadcast %13 : vector<2x1xf32> to vector<2x10xf32>
    %15 = arith.subf %9, %14 : vector<2x10xf32>
    %c0_7 = arith.constant 0 : index
    %c0_8 = arith.constant 0 : index
    %16 = vector.load %arg4[%c0_7, %c0_8] : memref<2x10xf32, #tpu.memory_space<vmem>>, vector<2x10xf32>
    tpu.vector_store %arg4[%c0_7, %c0_8], %15 {strides = array<i32>} : memref<2x10xf32, #tpu.memory_space<vmem>>, vector<2x10xf32>,
    return
  }
  func.func @transform_0(%arg0: i32) -> (i32, i32) {
    %c0_i32 = arith.constant 0 : i32
    %c0_i32_0 = arith.constant 0 : i32
    %c0_i32_1 = arith.constant 0 : i32
    return %c0_i32, %c0_i32_0 : i32, i32
  }
  func.func @transform_1(%arg0: i32) -> (i32, i32) {
    %c0_i32 = arith.constant 0 : i32
    %c0_i32_0 = arith.constant 0 : i32
    %c0_i32_1 = arith.constant 0 : i32
    return %c0_i32, %c0_i32_0 : i32, i32
  }
  func.func @transform_2(%arg0: i32) -> (i32, i32) {
    %c0_i32 = arith.constant 0 : i32
    %c0_i32_0 = arith.constant 0 : i32
    %c0_i32_1 = arith.constant 0 : i32
    return %c0_i32, %c0_i32_0 : i32, i32
  }
  func.func @transform_3(%arg0: i32) -> (i32, i32) {
    %c0_i32 = arith.constant 0 : i32
    %c0_i32_0 = arith.constant 0 : i32
    %c0_i32_1 = arith.constant 0 : i32
    return %c0_i32, %c0_i32_0 : i32, i32
  }
}

</mosaic_0001>

<bundles_post_ra>
// kernel: cnn_forward.4
= control target key start
LH: loop header
LB: loop body
LE: loop exit
PB: predicated region body
PF: predicated region fallthrough
CT: control target
= control target key end

     0   :  { %s1544_s18 = smov 0   ;;  %s1778_s0 = inlined_call_operand.vmem [shape: bf16[2,72,256], index: 0, kind: input, shape index: {}]   ;;  %s1779_s1 = inlined_call_operand.vmem [shape: bf16[16,72], index: 1, kind: input, shape index: {}]   ;;  %s1780_s2 = inlined_call_operand.vmem [shape: f32[16,1], index: 2, kind: input, shape index: {}]   ;;  %s1781_s3 = inlined_call_operand.vmem [shape: f32[16,1], index: 3, kind: input, shape index: {}]   ;;  %s1782_s4 = inlined_call_operand.vmem [shape: bf16[4,256,49], index: 4, kind: input, shape index: {}]   ;;  %s1783_s5 = inlined_call_operand.vmem [shape: bf16[2,16,49], index: 5, kind: output, shape index: {}]  }
   0x1 LB: > { %s1130_s19 = sadd.s32 4294967295, %s1511_s18   ;;  %p1134_p0 = scmp.ge.s32.totalorder %s1511_s18, 1  ;;  %s1511_s18 = sphi %s1544_s18, %s15_s18  }
   0x2   : > { %p187_p1 = scmp.lt.s32.totalorder %s1511_s18, 3 }
   0x4   : > { %p188_p2 = pnand %p1134_p0, %p187_p1 }
   0x5   : > { %p215_p3 = scmp.lt.s32.totalorder (!%p188_p2), %s1130_s19, 1 }
   0x6   : > { %191 = sbr.rel (%p188_p2) target bundleno = 498 (0x1f2), region = 40 }
   0xb   : > { %v1513_v0 = vmov 0   ;;  %v341_v1 = vld [vmem:[%s1780_s2] sm:$0xff]  ;;  %s1785_s19 = smov (!%p215_p3, %s1130_s19), 1  ;;  %v342_v3 = vld [vmem:[%s1780_s2 + $0x8] sm:$0xff]  ;;  %v1433_v4 = vld [vmem:[%s1782_s4 + $0x78] sm:$0xff]   ;;  %vm291_vm0 = vcmask 1043456  }
   0xc   : > { %330 = vmatprep.mubr.bf16.mxu0 %v1513_v0  ;;  %1416 = vset.pattern.permute.xlu0 %v1513_v0  ;;  %v357_v2 = vld [vmem:[%s1781_s3] sm:$0xff]  ;;  %s1406_s28 = smul.u32 72, %s1785_s19  ;;  %v358_v5 = vld [vmem:[%s1781_s3 + $0x8] sm:$0xff]  ;;  %v1435_v6 = vld [vmem:[%s1782_s4 + $0x38] sm:$0xff]   ;;  %vm287_vm1 = vcmask 588800   ;;  %s1315_s24 = sshll.u32 %s1785_s19, 3 }
   0xd   : > { %345 = vperm.xlu0 %1416, %v341_v1   ;;  %1417 = vset.pattern.permute.xlu1 %v1513_v0  ;;  %v1437_v15 = vld [vmem:[%s1782_s4 + $0x70] sm:$0xff]   ;;  %v1434_v21 = vld [vmem:[%s1782_s4 + $0xf8] sm:$0xff]   ;;  %v1432_v22 = vld [vmem:[%s1779_s1] sm:$0xff]   ;;  %s224_s27 = scalar_lea.vmem %s1783_s5, %s1315_s24  ;;  %vm1072_vm2 = vcmask 396288  }
   0xe   : > { %361 = vperm.xlu1 %1417, %v357_v2   ;;  %1318 = vmatprep.subr.bf16.mxu1 %v1433_v4  ;;  %s219_s10 = scalar_lea.vmem %s1778_s0, %s1406_s28  ;;  %v1439_v17 = vld [vmem:[%s1782_s4 + $0x30] sm:$0xff]   ;;  %v1436_v23 = vld [vmem:[%s1782_s4 + $0xb8] sm:$0xff]   ;;  %v1441_v26 = vld [vmem:[%s1782_s4 + $0x68] sm:$0xff]  }
   0xf   : > { %v234_v7 = vld [vmem:[%s219_s10 + $0x40] sm:$0xff]  ;;  %1319 = vmatpush3.bf16.msra.mxu1 %v1435_v6  ;;  %v1420_v10 = vld [vmem:[%s219_s10 + $0x34] ss:$8 sps:$4 sm:$0xff]   ;;  %v1422_v12 = vld [vmem:[%s219_s10 + $0x30] ss:$8 sps:$4 sm:$0xff]  }
  0x10   : > { %v1148_v8 = vcombine.high %v234_v7, %v234_v7  ;;  %v1147_v9 = vcombine.low %v234_v7, %v234_v7  ;;  %v1423_v13 = vld [vmem:[%s219_s10 + $0x24] ss:$8 sps:$4 sm:$0xff]   ;;  %v1425_v14 = vld [vmem:[%s219_s10 + $0x20] ss:$8 sps:$4 sm:$0xff]   ;;  %v1426_v16 = vld [vmem:[%s219_s10 + $0x14] ss:$8 sps:$4 sm:$0xff]   ;;  %1320 = vmatprep.subr.bf16.mxu1 %v1437_v15 }
  0x11   : > { %350 = vperm.xlu0 %1416, %v342_v3   ;;  %v1428_v18 = vld [vmem:[%s219_s10 + $0x10] ss:$8 sps:$4 sm:$0xff]   ;;  %v1429_v19 = vld [vmem:[%s219_s10 + $0x4] ss:$8 sps:$4 sm:$0xff]   ;;  %v1431_v20 = vld [vmem:[%s219_s10] ss:$8 sps:$4 sm:$0xff]  }
  0x12   : > { %366 = vperm.xlu1 %1417, %v358_v5   ;;  %1149 = vmatprep.subr.msk.bf16.mxu0 %vm291_vm0, %v1148_v8  ;;  %v293_v11 = vsel %vm291_vm0, %v1147_v9, 0  ;;  %v1438_v24 = vld [vmem:[%s1782_s4 + $0xf0] sm:$0xff]   ;;  %v1442_v27 = vld [vmem:[%s1782_s4 + $0xe8] sm:$0xff]   ;;  %v1445_v30 = vld [vmem:[%s1782_s4 + $0x60] sm:$0xff]  }
  0x13   : > { %305 = vmatpush1.bf16.msra.mxu0 %v293_v11  ;;  %1321 = vmatpush3.bf16.msra.mxu1 %v1439_v17  ;;  %v1440_v25 = vld [vmem:[%s1782_s4 + $0xb0] sm:$0xff]   ;;  %v1443_v28 = vld [vmem:[%s1782_s4 + $0x28] sm:$0xff]   ;;  %v1446_v31 = vld [vmem:[%s1782_s4 + $0xe0] sm:$0xff]  }
  0x14   : > { %306 = vmatprep.subr.bf16.mxu0 %v1420_v10  ;;  %v1444_v29 = vld [vmem:[%s1782_s4 + $0xa8] sm:$0xff]   ;;  %1322 = vmatprep.subr.bf16.mxu1 %v1441_v26  ;;  %v1447_v32 = vld [vmem:[%s1782_s4 + $0x20] sm:$0xff]   ;;  %v1449_v34 = vld [vmem:[%s1782_s4 + $0x58] sm:$0xff]  }
  0x15   : > { %v1448_v33 = vld [vmem:[%s1782_s4 + $0xa0] sm:$0xff]   ;;  %v1450_v35 = vld [vmem:[%s1782_s4 + $0xd8] sm:$0xff]   ;;  %v1453_v38 = vld [vmem:[%s1782_s4 + $0x50] sm:$0xff]  }
  0x16   : > { %v1451_v36 = vld [vmem:[%s1782_s4 + $0x18] sm:$0xff]   ;;  %v1454_v39 = vld [vmem:[%s1782_s4 + $0xd0] sm:$0xff]   ;;  %v1457_v42 = vld [vmem:[%s1782_s4 + $0x48] sm:$0xff]  }
  0x17   : > { %307 = vmatpush1.bf16.msra.mxu0 %v1422_v12  ;;  %1323 = vmatpush3.bf16.msra.mxu1 %v1443_v28  ;;  %v1452_v37 = vld [vmem:[%s1782_s4 + $0x98] sm:$0xff]   ;;  %v1455_v40 = vld [vmem:[%s1782_s4 + $0x10] sm:$0xff]   ;;  %v1458_v43 = vld [vmem:[%s1782_s4 + $0xc8] sm:$0xff]  }
  0x18   : > { %308 = vmatprep.subr.bf16.mxu0 %v1423_v13  ;;  %1324 = vmatprep.subr.bf16.mxu1 %v1445_v30  ;;  %v1456_v41 = vld [vmem:[%s1782_s4 + $0x90] sm:$0xff]   ;;  %v1459_v44 = vld [vmem:[%s1782_s4 + $0x8] sm:$0xff]   ;;  %v1461_v46 = vld [vmem:[%s1782_s4 + $0x40] sm:$0xff]  }
  0x19   : > { %v1460_v45 = vld [vmem:[%s1782_s4 + $0x88] sm:$0xff]   ;;  %v1462_v47 = vld [vmem:[%s1782_s4 + $0xc0] sm:$0xff]   ;;  %v1465_v50 = vld [vmem:[%s1782_s4 + $0x178] sm:$0xff]  }
  0x1a   : > { %v1463_v48 = vld [vmem:[%s1782_s4] sm:$0xff]   ;;  %v1466_v51 = vld [vmem:[%s1782_s4 + $0x1f8] sm:$0xff]   ;;  %v1469_v12 = vld [vmem:[%s1782_s4 + $0x170] sm:$0xff]  }
  0x1b   : > { %309 = vmatpush1.bf16.msra.mxu0 %v1425_v14  ;;  %1325 = vmatpush3.bf16.msra.mxu1 %v1447_v32  ;;  %v1464_v49 = vld [vmem:[%s1782_s4 + $0x80] sm:$0xff]   ;;  %v1467_v9 = vld [vmem:[%s1782_s4 + $0x138] sm:$0xff]   ;;  %v1470_v13 = vld [vmem:[%s1782_s4 + $0x1f0] sm:$0xff]  }
  0x1c   : > { %310 = vmatprep.subr.bf16.mxu0 %v1426_v16  ;;  %1326 = vmatprep.subr.bf16.mxu1 %v1449_v34  ;;  %v1468_v10 = vld [vmem:[%s1782_s4 + $0x1b8] sm:$0xff]   ;;  %v1471_v14 = vld [vmem:[%s1782_s4 + $0x130] sm:$0xff]   ;;  %v1473_v16 = vld [vmem:[%s1782_s4 + $0x168] sm:$0xff]  }
  0x1d   : > { %v1472_v15 = vld [vmem:[%s1782_s4 + $0x1b0] sm:$0xff]   ;;  %v1474_v17 = vld [vmem:[%s1782_s4 + $0x1e8] sm:$0xff]   ;;  %v1483_v26 = vld [vmem:[%s1782_s4 + $0x118] sm:$0xff]  }
  0x1e   : > { %v1485_v28 = vld [vmem:[%s1782_s4 + $0x150] sm:$0xff]   ;;  %v1489_v32 = vld [vmem:[%s1782_s4 + $0x148] sm:$0xff]  }
  0x1f   : > { %311 = vmatpush1.bf16.msra.mxu0 %v1428_v18  ;;  %1327 = vmatpush3.bf16.msra.mxu1 %v1451_v36  ;;  %v1475_v18 = vld [vmem:[%s1782_s4 + $0x128] sm:$0xff]   ;;  %v1487_v30 = vld [vmem:[%s1782_s4 + $0x110] sm:$0xff]   ;;  %v1493_v36 = vld [vmem:[%s1782_s4 + $0x140] sm:$0xff]  }
  0x20   : > { %312 = vmatprep.subr.bf16.mxu0 %v1429_v19  ;;  %1328 = vmatprep.subr.bf16.mxu1 %v1453_v38  ;;  %v1476_v19 = vld [vmem:[%s1782_s4 + $0x1a8] sm:$0xff]   ;;  %v1495_v38 = vld [vmem:[%s1782_s4 + $0x100] sm:$0xff]  }
  0x21   : > { %v1491_v34 = vld [vmem:[%s1782_s4 + $0x108] sm:$0xff]  }
  0x23   : > { %313 = vmatpush1.bf16.msra.mxu0 %v1431_v20  ;;  %1329 = vmatpush3.bf16.msra.mxu1 %v1455_v40  ;;  %v1477_v20 = vld [vmem:[%s1782_s4 + $0x160] sm:$0xff]  }
  0x24   : > { %1340 = vmatprep.subr.bf16.mxu0 %v1434_v21  ;;  %1330 = vmatprep.subr.bf16.mxu1 %v1457_v42  ;;  %v1478_v21 = vld [vmem:[%s1782_s4 + $0x1e0] sm:$0xff]  }
  0x26   : > { %1150 = vmatmul.mubr.msk.bf16.vlgmr.msra.gmra.mxu0 %vm287_vm1, %v1432_v22  ;;  %v1479_v22 = vld [vmem:[%s1782_s4 + $0x120] sm:$0xff]  }
  0x27   : > { %1341 = vmatpush3.bf16.msra.mxu0 %v1436_v23  ;;  %1331 = vmatpush3.bf16.msra.mxu1 %v1459_v44  ;;  %v1480_v23 = vld [vmem:[%s1782_s4 + $0x1a0] sm:$0xff]  }
  0x28   : > { %1342 = vmatprep.subr.bf16.mxu0 %v1438_v24  ;;  %1332 = vmatprep.subr.bf16.mxu1 %v1461_v46  ;;  %v1481_v24 = vld [vmem:[%s1782_s4 + $0x158] sm:$0xff]  }
  0x2b   : > { %1343 = vmatpush3.bf16.msra.mxu0 %v1440_v25  ;;  %1333 = vmatpush3.bf16.msra.mxu1 %v1463_v48  ;;  %v1482_v25 = vld [vmem:[%s1782_s4 + $0x1d8] sm:$0xff]  }
  0x2c   : > { %1344 = vmatprep.subr.bf16.mxu0 %v1442_v27  ;;  %1362 = vmatprep.subr.bf16.mxu1 %v1465_v50  ;;  %v1484_v27 = vld [vmem:[%s1782_s4 + $0x198] sm:$0xff]  }
  0x2f   : > { %1345 = vmatpush3.bf16.msra.mxu0 %v1444_v29  ;;  %v1486_v29 = vld [vmem:[%s1782_s4 + $0x1d0] sm:$0xff]  }
  0x30   : > { %1346 = vmatprep.subr.bf16.mxu0 %v1446_v31  ;;  %v1488_v31 = vld [vmem:[%s1782_s4 + $0x190] sm:$0xff]  }
  0x33   : > { %1347 = vmatpush3.bf16.msra.mxu0 %v1448_v33  ;;  %v1490_v33 = vld [vmem:[%s1782_s4 + $0x1c8] sm:$0xff]  }
  0x34   : > { %1348 = vmatprep.subr.bf16.mxu0 %v1450_v35  ;;  %v1492_v35 = vld [vmem:[%s1782_s4 + $0x188] sm:$0xff]  }
  0x37   : > { %1349 = vmatpush3.bf16.msra.mxu0 %v1452_v37  ;;  %v1494_v37 = vld [vmem:[%s1782_s4 + $0x1c0] sm:$0xff]  }
  0x38   : > { %1350 = vmatprep.subr.bf16.mxu0 %v1454_v39  ;;  %v1496_v39 = vld [vmem:[%s1782_s4 + $0x180] sm:$0xff]  }
  0x3b   : > { %1351 = vmatpush3.bf16.msra.mxu0 %v1456_v41 }
  0x3c   : > { %1352 = vmatprep.subr.bf16.mxu0 %v1458_v43 }
  0x3f   : > { %1353 = vmatpush3.bf16.msra.mxu0 %v1460_v45 }
  0x40   : > { %1354 = vmatprep.subr.bf16.mxu0 %v1462_v47 }
  0x43   : > { %1355 = vmatpush3.bf16.msra.mxu0 %v1464_v49 }
  0x44   : > { %1384 = vmatprep.subr.bf16.mxu0 %v1466_v51 }
  0x88   : > { %v346_v52 = vpop.permute.xlu0 %345 }
  0x89   : > { %v362_v53 = vpop.permute.xlu1 %361 }
  0x8c   : > { %v351_v58 = vpop.permute.xlu0 %350 }
  0x8d   : > { %v367_v62 = vpop.permute.xlu1 %366 }
  0xe6   : > { %v332_v54 = vpop.f32.mrf.mxu0 }
  0xe7   : > { %v353_v57 = vmul.f32 %v346_v52, %v332_v54 }
  0xe8   : > { %v334_v55 = vpop.f32.mrf.mxu0 }
  0xe9   : > { %v354_v56 = vmul.f32 %v346_v52, %v334_v55  ;;  %v369_v2 = vadd.f32 %v362_v53, %v353_v57 }
  0xea   : > { %v336_v59 = vpop.f32.mrf.mxu0 }
  0xeb   : > { %v370_v60 = vadd.f32 %v362_v53, %v354_v56  ;;  %v355_v61 = vmul.f32 %v351_v58, %v336_v59 }
  0xec   : > { %v338_v63 = vpop.f32.mrf.mxu0 }
  0xed   : > { %v371_v0 = vadd.f32 %v367_v62, %v355_v61  ;;  %v356_v1 = vmul.f32 %v351_v58, %v338_v63  ;;  %1497 = vtanh.f32 %v370_v60 }
  0xef   : > { %v372_v3 = vadd.f32 %v367_v62, %v356_v1  ;;  %1499 = vtanh.f32 %v371_v0 }
  0xf1   : > { %1501 = vtanh.f32 %v372_v3 }
  0xf2   : > { %1503 = vtanh.f32 %v369_v2 }
  0xfa   : > { %v1498_v4 = vpop.eup %1497 }
  0xfc   : > { %v1500_v5 = vpop.eup %1499 }
  0xfe   : > { %v1502_v6 = vpop.eup %1501 }
  0xff   : > { %v1504_v7 = vpop.eup %1503  ;;  %v378_v8 = vpack.c.bf16 %v1502_v6, %v1498_v4 }
 0x100   : > { %v1681_v11 = vpack.c.bf16 %v1500_v5, %v1504_v7 }
 0x101   : > { %539 = vmatprep.mubr.bf16.mxu1 %v378_v8  ;;  %709 = vmatprep.mubr.bf16.mxu0 %v378_v8 }
 0x102   : > { %540 = vmatmul.mubr.bf16.vlgmr.msra.gmra.mxu1 %v1681_v11  ;;  %710 = vmatmul.mubr.bf16.vlgmr.msra.gmra.mxu0 %v1681_v11 }
 0x103   : > { %1363 = vmatpush3.bf16.msra.mxu1 %v1467_v9  ;;  %1385 = vmatpush3.bf16.msra.mxu0 %v1468_v10 }
 0x104   : > { %881 = vmatprep.mubr.bf16.mxu1 %v378_v8  ;;  %1053 = vmatprep.mubr.bf16.mxu0 %v378_v8 }
 0x105   : > { %1364 = vmatprep.subr.bf16.mxu1 %v1469_v12  ;;  %1386 = vmatprep.subr.bf16.mxu0 %v1470_v13 }
 0x107   : > { %1365 = vmatpush3.bf16.msra.mxu1 %v1471_v14  ;;  %1387 = vmatpush3.bf16.msra.mxu0 %v1472_v15 }
 0x108   : > { %1366 = vmatprep.subr.bf16.mxu1 %v1473_v16  ;;  %1388 = vmatprep.subr.bf16.mxu0 %v1474_v17 }
 0x10b   : > { %1367 = vmatpush3.bf16.msra.mxu1 %v1475_v18  ;;  %1389 = vmatpush3.bf16.msra.mxu0 %v1476_v19 }
 0x10c   : > { %1368 = vmatprep.subr.bf16.mxu1 %v1477_v20  ;;  %1390 = vmatprep.subr.bf16.mxu0 %v1478_v21 }
 0x10f   : > { %1369 = vmatpush3.bf16.msra.mxu1 %v1479_v22  ;;  %1391 = vmatpush3.bf16.msra.mxu0 %v1480_v23 }
 0x110   : > { %1370 = vmatprep.subr.bf16.mxu1 %v1481_v24  ;;  %1392 = vmatprep.subr.bf16.mxu0 %v1482_v25 }
 0x113   : > { %1371 = vmatpush3.bf16.msra.mxu1 %v1483_v26  ;;  %1393 = vmatpush3.bf16.msra.mxu0 %v1484_v27 }
 0x114   : > { %1372 = vmatprep.subr.bf16.mxu1 %v1485_v28  ;;  %1394 = vmatprep.subr.bf16.mxu0 %v1486_v29 }
 0x117   : > { %1373 = vmatpush3.bf16.msra.mxu1 %v1487_v30  ;;  %1395 = vmatpush3.bf16.msra.mxu0 %v1488_v31 }
 0x118   : > { %1374 = vmatprep.subr.bf16.mxu1 %v1489_v32  ;;  %1396 = vmatprep.subr.bf16.mxu0 %v1490_v33 }
 0x11b   : > { %1375 = vmatpush3.bf16.msra.mxu1 %v1491_v34  ;;  %1397 = vmatpush3.bf16.msra.mxu0 %v1492_v35 }
 0x11c   : > { %1376 = vmatprep.subr.bf16.mxu1 %v1493_v36  ;;  %1398 = vmatprep.subr.bf16.mxu0 %v1494_v37 }
 0x11f   : > { %1377 = vmatpush3.bf16.msra.mxu1 %v1495_v38  ;;  %1399 = vmatpush3.bf16.msra.mxu0 %v1496_v39 }
 0x122   : > { %882 = vmatmul.mubr.bf16.vlgmr.msra.gmra.mxu1 %v1681_v11  ;;  %1054 = vmatmul.mubr.bf16.vlgmr.msra.gmra.mxu0 %v1681_v11 }
 0x1c2   : > { %v1334_v40 = vpop.f32.mrf.mxu1  ;;  %v1356_v41 = vpop.f32.mrf.mxu0 }
 0x1c4   : > { %v1335_v42 = vpop.f32.mrf.mxu1  ;;  %v1357_v43 = vpop.f32.mrf.mxu0 }
 0x1c5   : > { %v1336_v48 = vadd.f32 %v1335_v42, %v1334_v40  ;;  %v1358_v49 = vadd.f32 %v1357_v43, %v1356_v41 }
 0x1c6   : > { %v1337_v44 = vpop.f32.mrf.mxu1  ;;  %v1359_v45 = vpop.f32.mrf.mxu0 }
 0x1c7   : > { %v718_v54 = vmax.f32 %v1336_v48, %v1358_v49 }
 0x1c8   : > { %v1338_v46 = vpop.f32.mrf.mxu1  ;;  %v1360_v47 = vpop.f32.mrf.mxu0 }
 0x1c9   : > { %v1339_v55 = vadd.f32 %v1338_v46, %v1337_v44  ;;  %v1361_v56 = vadd.f32 %v1360_v47, %v1359_v45 }
 0x1cb   : > { %v719_v0 = vmax.f32 %v1339_v55, %v1361_v56 }
 0x1e2   : > { %v1378_v50 = vpop.f32.mrf.mxu1  ;;  %v1400_v51 = vpop.f32.mrf.mxu0 }
 0x1e4   : > { %v1379_v52 = vpop.f32.mrf.mxu1  ;;  %v1401_v53 = vpop.f32.mrf.mxu0 }
 0x1e5   : > { %v1380_v57 = vadd.f32 %v1379_v52, %v1378_v50  ;;  %v1402_v61 = vadd.f32 %v1401_v53, %v1400_v51 }
 0x1e6   : > { %v1381_v58 = vpop.f32.mrf.mxu1  ;;  %v1403_v59 = vpop.f32.mrf.mxu0 }
 0x1e7   : > { %v890_v60 = vmax.f32 %v718_v54, %v1380_v57 }
 0x1e8   : > { %v1382_v62 = vpop.f32.mrf.mxu1  ;;  %v1404_v63 = vpop.f32.mrf.mxu0 }
 0x1e9   : > { %v1062_v1 = vmax.f32 %v890_v60, %v1402_v61  ;;  %v1383_v2 = vadd.f32 %v1382_v62, %v1381_v58  ;;  %v1405_v5 = vadd.f32 %v1404_v63, %v1403_v59 }
 0x1eb   : > { %v1316_v3 = vpack.c.bf16 %v1062_v1, %v1062_v1  ;;  %v891_v4 = vmax.f32 %v719_v0, %v1383_v2 }
 0x1ed   : > { %1073 = vst.msk [vmem:[%s224_s27] sm:$0xf] %vm1072_vm2, %v1316_v3  ;;  %v1063_v6 = vmax.f32 %v891_v4, %v1405_v5 }
 0x1ef   : > { %v1317_v7 = vpack.c.bf16 %v1063_v6, %v1063_v6 }
 0x1f1   : > { %1074 = vst.msk [vmem:[%s224_s27 + $0x4] sm:$0xf] %vm1072_vm2, %v1317_v7 }
 0x1f2 PF: > { %s15_s18 = sadd.s32 1, %s1511_s18  }
 0x1f3   : > { %p12_p4 = scmp.ge.s32.totalorder %s15_s18, 4  }
 0x1f5   :  { %14 = sbr.rel (!%p12_p4) target bundleno = 1 (0x1), region = 73 }

// kernel: cnn_forward.3
= control target key start
LH: loop header
LB: loop body
LE: loop exit
PB: predicated region body
PF: predicated region fallthrough
CT: control target
= control target key end

     0   :  { %10 = vsyncpa [#allocation3], 0  ;;  %s5290_s18 = smov 0   ;;  %s5457_s0 = inlined_call_operand.vmem [shape: bf16[2,9,900], index: 0, kind: input, shape index: {}]   ;;  %s5458_s1 = inlined_call_operand.vmem [shape: bf16[8,9], index: 1, kind: input, shape index: {}]   ;;  %s5459_s2 = inlined_call_operand.vmem [shape: f32[8,1], index: 2, kind: input, shape index: {}]   ;;  %s5460_s3 = inlined_call_operand.vmem [shape: f32[8,1], index: 3, kind: input, shape index: {}]   ;;  %s5461_s4 = inlined_call_operand.hbm [shape: bf16[4,900,256], index: 4, kind: input, shape index: {}]   ;;  %s5462_s5 = inlined_call_operand.vmem [shape: bf16[2,8,256], index: 5, kind: output, shape index: {}]  }
   0x1 LB: > { %s4004_s19 = sadd.s32 4294967295, %s5253_s18   ;;  %p4006_p0 = scmp.ge.s32.totalorder %s5253_s18, 1  ;;  %s5253_s18 = sphi %s5290_s18, %s16_s18  }
   0x2   : > { %p157_p1 = scmp.lt.s32.totalorder %s5253_s18, 3  ;;  %s5255_s20 = smov [#allocation2]  }
   0x3   : > { %s178_s21 = sshll.u32 %s5255_s20, 4  ;;  %p4505_p3 = scmp.eq.s32.totalorder %s4004_s19, 0  ;;  %s179_s21 = int_to_ptr.vmem [resolvable:$true] %s178_s21 }
   0x4   : > { %p5298_p2 = pnand %p4006_p0, %p157_p1  ;;  %s5228_s23 = scalar_lea.vmem %s179_s21, 57856 }
   0x5   : > { %p5229_p7 = scmp.ne.s32.totalorder %s179_s21, %s5228_s23  ;;  %p5236_p10 = scmp.lt.s32.totalorder %s179_s21, %s179_s21 }
   0x6   : > { %p4501_p4 = pneg %p5298_p2  ;;  %p5237_p11 = scmp.lt.s32.totalorder %s5228_s23, %s5228_s23 }
   0x8   : > { %p4502_p5 = pnand %p4505_p3, %p4501_p4  ;;  %p5238_p12 = por %p5237_p11, %p5236_p10 }
   0xa   : > { %p5219_p6 = pneg %p4502_p5 }
   0xc   : > { %p5231_p8 = pnand %p5229_p7, %p5219_p6 }
   0xe   : > { %p5232_p9 = pneg %p5231_p8 }
  0x10   : > { %p5239_p13 = pnand %p5238_p12, %p5232_p9 }
  0x12   : > { %5242 = shalt.err (!%p5239_p13)
}
  0x13   : > { %s5256_s24 = smov 128   ;;  %s5257_s25 = smov 8  }
  0x14   : > { %4504 = dma.hbm_to_vmem [thread:$0]  (!%p4502_p5), %s5461_s4, 57856, %s179_s21, [#allocation3], %s5256_s24, %s5256_s24, %s5257_s25  }
  0x15   : > { %202 = sbr.rel (%p5298_p2) target bundleno = 855 (0x357), region = 40 }
  0x1a   : > { %5248 = dma.done.wait (%p4505_p3), [#allocation3], 57856  }
  0x1b   : > { %5250 = vsyncadd (%p4505_p3), [#allocation3], 4294909440  ;;  %p230_p0 = scmp.lt.s32.totalorder %s4004_s19, 1  ;;  %vm286_vm0 = vcmask 1043456   ;;  %v5258_v0 = vmov 0   ;;  %vm287_vm1 = vcmask 1044480  }
  0x1c   : > { %346 = vmatprep.mubr.bf16.mxu0 %v5258_v0  ;;  %387 = vmatprep.mubr.bf16.mxu1 %v5258_v0  ;;  %v5259_v1 = vmov 65535   ;;  %v478_v20 = vld [vmem:[%s5459_s2] sm:$0xff]  ;;  %vm282_vm2 = vcmask 72704   ;;  %v4523_v31 = vld [vmem:[#allocation2 + $0x74] ss:$8 sps:$4 sm:$0xff]   ;;  %vm1200_vm3 = vcmask 31744  }
  0x1d   : > { %s5465_s19 = smov (!%p230_p0, %s4004_s19), 1  ;;  %4520 = vset.pattern.permute.xlu0 %v5258_v0  ;;  %v288_v2 = vsel %vm286_vm0, 4294967295, %v5259_v1  ;;  %v492_v26 = vld [vmem:[%s5460_s3] sm:$0xff]  ;;  %v4526_v32 = vld [vmem:[#allocation2 + $0x174] ss:$8 sps:$4 sm:$0xff]   ;;  %vm1204_vm4 = vcmask 1041408  }
  0x1e   : > { %s4494_s28 = sshll.u32 %s5465_s19, 6  ;;  %v289_v5 = vsel %vm287_vm1, %v288_v2, 0  ;;  %481 = vperm.xlu0 %4520, %v478_v20   ;;  %v249_v27 = vld [vmem:[%s5458_s1] sm:$0xf]  ;;  %v4521_v33 = vld [vmem:[#allocation2 + $0x70] ss:$8 sps:$4 sm:$0xff]  }
  0x1f   : > { %s234_s6 = scalar_lea.vmem %s5457_s0, %s4494_s28  ;;  %v4524_v34 = vld [vmem:[#allocation2 + $0x170] ss:$8 sps:$4 sm:$0xff]   ;;  %v4529_v35 = vld [vmem:[#allocation2 + $0x64] ss:$8 sps:$4 sm:$0xff]   ;;  %v4527_v37 = vld [vmem:[#allocation2 + $0x60] ss:$8 sps:$4 sm:$0xff]  }
  0x20   : > { %v241_v3 = vld [vmem:[%s234_s6] sm:$0xff]  ;;  %v242_v6 = vld [vmem:[%s234_s6 + $0x8] sm:$0xff]  ;;  %v243_v10 = vld [vmem:[%s234_s6 + $0x10] sm:$0xff]  ;;  %s4495_s13 = sshll.u32 %s5465_s19, 3 }
  0x21   : > { %v245_v4 = vld [vmem:[%s234_s6 + $0x20] sm:$0x11]  ;;  %v246_v8 = vld [vmem:[%s234_s6 + $0x28] sm:$0x11]  ;;  %v247_v13 = vld [vmem:[%s234_s6 + $0x30] sm:$0x11]  ;;  %s239_s16 = scalar_lea.vmem %s5462_s5, %s4495_s13 }
  0x22   : > { %v4016_v7 = vcombine.high %v241_v3, %v245_v4  ;;  %v4015_v9 = vcombine.low %v241_v3, %v245_v4  ;;  %v4018_v11 = vcombine.high %v242_v6, %v246_v8  ;;  %v4017_v12 = vcombine.low %v242_v6, %v246_v8  ;;  %v244_v14 = vld [vmem:[%s234_s6 + $0x18] sm:$0xff]  ;;  %495 = vperm.xlu0 %4520, %v492_v26   ;;  %v4532_v36 = vld [vmem:[#allocation2 + $0x164] ss:$8 sps:$4 sm:$0xff]   ;;  %v4530_v38 = vld [vmem:[#allocation2 + $0x160] ss:$8 sps:$4 sm:$0xff]  }
  0x23   : > { %v248_v15 = vld [vmem:[%s234_s6 + $0x38] sm:$0x11]  ;;  %v4019_v18 = vcombine.low %v243_v10, %v247_v13  ;;  %v4020_v19 = vcombine.high %v243_v10, %v247_v13  ;;  %v4541_v43 = vld [vmem:[#allocation2 + $0x44] ss:$8 sps:$4 sm:$0xff]   ;;  %v4539_v45 = vld [vmem:[#allocation2 + $0x40] ss:$8 sps:$4 sm:$0xff]  }
  0x24   : > { %v294_v16 = vand.u32 %v4016_v7, %v289_v5  ;;  %v291_v17 = vand.u32 %v4015_v9, %v289_v5  ;;  %v300_v21 = vand.u32 %v4018_v11, %v289_v5  ;;  %v297_v22 = vand.u32 %v4017_v12, %v289_v5  ;;  %v4535_v39 = vld [vmem:[#allocation2 + $0x54] ss:$8 sps:$4 sm:$0xff]   ;;  %v4533_v41 = vld [vmem:[#allocation2 + $0x50] ss:$8 sps:$4 sm:$0xff]   ;;  %v4544_v44 = vld [vmem:[#allocation2 + $0x144] ss:$8 sps:$4 sm:$0xff]  }
  0x25   : > { %v4021_v23 = vcombine.low %v244_v14, %v248_v15  ;;  %v4022_v24 = vcombine.high %v244_v14, %v248_v15  ;;  %v306_v25 = vand.u32 %v4020_v19, %v289_v5  ;;  %v303_v29 = vand.u32 %v4019_v18, %v289_v5  ;;  %v4538_v40 = vld [vmem:[#allocation2 + $0x154] ss:$8 sps:$4 sm:$0xff]   ;;  %v4536_v42 = vld [vmem:[#allocation2 + $0x150] ss:$8 sps:$4 sm:$0xff]   ;;  %v4542_v46 = vld [vmem:[#allocation2 + $0x140] ss:$8 sps:$4 sm:$0xff]  }
  0x26   : > { %328 = vmatprep.subr.bf16.mxu0 %v294_v16  ;;  %369 = vmatprep.subr.bf16.mxu1 %v300_v21  ;;  %v4547_v47 = vld [vmem:[#allocation2 + $0x34] ss:$8 sps:$4 sm:$0xff]   ;;  %v4545_v49 = vld [vmem:[#allocation2 + $0x30] ss:$8 sps:$4 sm:$0xff]   ;;  %v4553_v51 = vld [vmem:[#allocation2 + $0x24] ss:$8 sps:$4 sm:$0xff]  }
  0x27   : > { %329 = vmatpush1.bf16.msra.mxu0 %v291_v17  ;;  %v312_v28 = vand.u32 %v4022_v24, %v289_v5  ;;  %370 = vmatpush1.bf16.msra.mxu1 %v297_v22  ;;  %v309_v30 = vand.u32 %v4021_v23, %v289_v5  ;;  %v4550_v48 = vld [vmem:[#allocation2 + $0x134] ss:$8 sps:$4 sm:$0xff]   ;;  %v4548_v50 = vld [vmem:[#allocation2 + $0x130] ss:$8 sps:$4 sm:$0xff]   ;;  %v4551_v52 = vld [vmem:[#allocation2 + $0x20] ss:$8 sps:$4 sm:$0xff]  }
  0x28   : > { %410 = vmatprep.subr.bf16.mxu0 %v306_v25  ;;  %v4556_v53 = vld [vmem:[#allocation2 + $0x124] ss:$8 sps:$4 sm:$0xff]   ;;  %v4554_v54 = vld [vmem:[#allocation2 + $0x120] ss:$8 sps:$4 sm:$0xff]   ;;  %v4559_v55 = vld [vmem:[#allocation2 + $0x14] ss:$8 sps:$4 sm:$0xff]  }
  0x29   : > { %451 = vmatprep.subr.bf16.mxu1 %v312_v28  ;;  %v4562_v56 = vld [vmem:[#allocation2 + $0x114] ss:$8 sps:$4 sm:$0xff]   ;;  %v4557_v57 = vld [vmem:[#allocation2 + $0x10] ss:$8 sps:$4 sm:$0xff]   ;;  %v4565_v59 = vld [vmem:[#allocation2 + $0x4] ss:$8 sps:$4 sm:$0xff]  }
  0x2a   : > { %4023 = vmatmul.mubr.msk.bf16.vlgmr.msra.gmra.mxu0 %vm282_vm2, %v249_v27  ;;  %4024 = vmatmul.mubr.msk.bf16.vlgmr.msra.gmra.mxu1 %vm282_vm2, %v249_v27  ;;  %v4560_v58 = vld [vmem:[#allocation2 + $0x110] ss:$8 sps:$4 sm:$0xff]   ;;  %v4568_v60 = vld [vmem:[#allocation2 + $0x104] ss:$8 sps:$4 sm:$0xff]   ;;  %v4563_v61 = vld [vmem:[#allocation2] ss:$8 sps:$4 sm:$0xff]  }
  0x2b   : > { %411 = vmatpush1.bf16.msra.mxu0 %v303_v29  ;;  %452 = vmatpush1.bf16.msra.mxu1 %v309_v30  ;;  %v4566_v62 = vld [vmem:[#allocation2 + $0x100] ss:$8 sps:$4 sm:$0xff]   ;;  %v4571_v63 = vld [vmem:[#allocation2 + $0xf4] ss:$8 sps:$4 sm:$0xff]   ;;  %v4569_v1 = vld [vmem:[#allocation2 + $0xf0] ss:$8 sps:$4 sm:$0xff]  }
  0x2c   : > { %428 = vmatprep.mubr.bf16.mxu0 %v5258_v0  ;;  %469 = vmatprep.mubr.bf16.mxu1 %v5258_v0  ;;  %v4574_v0 = vld [vmem:[#allocation2 + $0x1f4] ss:$8 sps:$4 sm:$0xff]   ;;  %v4572_v2 = vld [vmem:[#allocation2 + $0x1f0] ss:$8 sps:$4 sm:$0xff]   ;;  %v4577_v3 = vld [vmem:[#allocation2 + $0xe4] ss:$8 sps:$4 sm:$0xff]  }
  0x2d   : > { %1211 = vmatprep.subr.bf16.mxu0 %v4523_v31  ;;  %1252 = vmatprep.subr.bf16.mxu1 %v4526_v32  ;;  %v4580_v4 = vld [vmem:[#allocation2 + $0x1e4] ss:$8 sps:$4 sm:$0xff]   ;;  %v4575_v5 = vld [vmem:[#allocation2 + $0xe0] ss:$8 sps:$4 sm:$0xff]   ;;  %v4583_v7 = vld [vmem:[#allocation2 + $0xd4] ss:$8 sps:$4 sm:$0xff]  }
  0x2e   : > { %v4578_v6 = vld [vmem:[#allocation2 + $0x1e0] ss:$8 sps:$4 sm:$0xff]   ;;  %v4586_v8 = vld [vmem:[#allocation2 + $0x1d4] ss:$8 sps:$4 sm:$0xff]   ;;  %v4581_v9 = vld [vmem:[#allocation2 + $0xd0] ss:$8 sps:$4 sm:$0xff]  }
  0x2f   : > { %v4584_v10 = vld [vmem:[#allocation2 + $0x1d0] ss:$8 sps:$4 sm:$0xff]   ;;  %v4589_v11 = vld [vmem:[#allocation2 + $0xc4] ss:$8 sps:$4 sm:$0xff]   ;;  %v4587_v13 = vld [vmem:[#allocation2 + $0xc0] ss:$8 sps:$4 sm:$0xff]  }
  0x30   : > { %v4592_v12 = vld [vmem:[#allocation2 + $0x1c4] ss:$8 sps:$4 sm:$0xff]   ;;  %v4590_v14 = vld [vmem:[#allocation2 + $0x1c0] ss:$8 sps:$4 sm:$0xff]   ;;  %v4595_v15 = vld [vmem:[#allocation2 + $0xb4] ss:$8 sps:$4 sm:$0xff]  }
  0x31   : > { %v4598_v16 = vld [vmem:[#allocation2 + $0x1b4] ss:$8 sps:$4 sm:$0xff]   ;;  %v4593_v17 = vld [vmem:[#allocation2 + $0xb0] ss:$8 sps:$4 sm:$0xff]   ;;  %v4601_v19 = vld [vmem:[#allocation2 + $0xa4] ss:$8 sps:$4 sm:$0xff]  }
  0x32   : > { %4025 = vmatmul.mubr.msk.bf16.vlgmr.msra.gmra.mxu0 %vm282_vm2, %v249_v27  ;;  %4026 = vmatmul.mubr.msk.bf16.vlgmr.msra.gmra.mxu1 %vm282_vm2, %v249_v27  ;;  %v4596_v18 = vld [vmem:[#allocation2 + $0x1b0] ss:$8 sps:$4 sm:$0xff]   ;;  %v4604_v20 = vld [vmem:[#allocation2 + $0x1a4] ss:$8 sps:$4 sm:$0xff]   ;;  %v4599_v21 = vld [vmem:[#allocation2 + $0xa0] ss:$8 sps:$4 sm:$0xff]  }
  0x33   : > { %1212 = vmatpush1.bf16.msra.mxu0 %v4521_v33  ;;  %1253 = vmatpush1.bf16.msra.mxu1 %v4524_v34  ;;  %v4602_v22 = vld [vmem:[#allocation2 + $0x1a0] ss:$8 sps:$4 sm:$0xff]   ;;  %v4607_v23 = vld [vmem:[#allocation2 + $0x94] ss:$8 sps:$4 sm:$0xff]   ;;  %v4605_v25 = vld [vmem:[#allocation2 + $0x90] ss:$8 sps:$4 sm:$0xff]  }
  0x34   : > { %1213 = vmatprep.subr.bf16.mxu0 %v4529_v35  ;;  %1254 = vmatprep.subr.bf16.mxu1 %v4532_v36  ;;  %v4610_v24 = vld [vmem:[#allocation2 + $0x194] ss:$8 sps:$4 sm:$0xff]   ;;  %v4608_v26 = vld [vmem:[#allocation2 + $0x190] ss:$8 sps:$4 sm:$0xff]   ;;  %v4613_v27 = vld [vmem:[#allocation2 + $0x84] ss:$8 sps:$4 sm:$0xff]  }
  0x35   : > { %v4616_v28 = vld [vmem:[#allocation2 + $0x184] ss:$8 sps:$4 sm:$0xff]   ;;  %v4611_v29 = vld [vmem:[#allocation2 + $0x80] ss:$8 sps:$4 sm:$0xff]   ;;  %v4619_v31 = vld [vmem:[#allocation2 + $0x274] ss:$8 sps:$4 sm:$0xff]  }
  0x36   : > { %v4614_v30 = vld [vmem:[#allocation2 + $0x180] ss:$8 sps:$4 sm:$0xff]   ;;  %v4622_v32 = vld [vmem:[#allocation2 + $0x374] ss:$8 sps:$4 sm:$0xff]  }
  0x37   : > { %1214 = vmatpush1.bf16.msra.mxu0 %v4527_v37  ;;  %1255 = vmatpush1.bf16.msra.mxu1 %v4530_v38 }
  0x38   : > { %1215 = vmatprep.subr.bf16.mxu0 %v4535_v39  ;;  %1256 = vmatprep.subr.bf16.mxu1 %v4538_v40 }
  0x3b   : > { %1216 = vmatpush1.bf16.msra.mxu0 %v4533_v41  ;;  %1257 = vmatpush1.bf16.msra.mxu1 %v4536_v42 }
  0x3c   : > { %1217 = vmatprep.subr.bf16.mxu0 %v4541_v43  ;;  %1258 = vmatprep.subr.bf16.mxu1 %v4544_v44 }
  0x3f   : > { %1218 = vmatpush1.bf16.msra.mxu0 %v4539_v45  ;;  %1259 = vmatpush1.bf16.msra.mxu1 %v4542_v46 }
  0x40   : > { %1219 = vmatprep.subr.bf16.mxu0 %v4547_v47  ;;  %1260 = vmatprep.subr.bf16.mxu1 %v4550_v48 }
  0x43   : > { %1220 = vmatpush1.bf16.msra.mxu0 %v4545_v49  ;;  %1261 = vmatpush1.bf16.msra.mxu1 %v4548_v50 }
  0x44   : > { %1221 = vmatprep.subr.bf16.mxu0 %v4553_v51  ;;  %1262 = vmatprep.subr.bf16.mxu1 %v4556_v53 }
  0x47   : > { %1222 = vmatpush1.bf16.msra.mxu0 %v4551_v52  ;;  %1263 = vmatpush1.bf16.msra.mxu1 %v4554_v54 }
  0x48   : > { %1223 = vmatprep.subr.bf16.mxu0 %v4559_v55  ;;  %1264 = vmatprep.subr.bf16.mxu1 %v4562_v56 }
  0x4b   : > { %1224 = vmatpush1.bf16.msra.mxu0 %v4557_v57  ;;  %1265 = vmatpush1.bf16.msra.mxu1 %v4560_v58 }
  0x4c   : > { %1225 = vmatprep.subr.bf16.mxu0 %v4565_v59  ;;  %1266 = vmatprep.subr.bf16.mxu1 %v4568_v60 }
  0x4f   : > { %1226 = vmatpush1.bf16.msra.mxu0 %v4563_v61  ;;  %1267 = vmatpush1.bf16.msra.mxu1 %v4566_v62 }
  0x50   : > { %1227 = vmatprep.subr.bf16.mxu0 %v4571_v63  ;;  %1268 = vmatprep.subr.bf16.mxu1 %v4574_v0 }
  0x53   : > { %1228 = vmatpush2.bf16.msra.mxu0 %v4569_v1  ;;  %1269 = vmatpush2.bf16.msra.mxu1 %v4572_v2 }
  0x54   : > { %1229 = vmatprep.subr.bf16.mxu0 %v4577_v3  ;;  %1270 = vmatprep.subr.bf16.mxu1 %v4580_v4  ;;  %v4617_v4 = vld [vmem:[#allocation2 + $0x270] ss:$8 sps:$4 sm:$0xff]  }
  0x57   : > { %1230 = vmatpush2.bf16.msra.mxu0 %v4575_v5  ;;  %1271 = vmatpush2.bf16.msra.mxu1 %v4578_v6 }
  0x58   : > { %1231 = vmatprep.subr.bf16.mxu0 %v4583_v7  ;;  %1272 = vmatprep.subr.bf16.mxu1 %v4586_v8  ;;  %v4620_v7 = vld [vmem:[#allocation2 + $0x370] ss:$8 sps:$4 sm:$0xff]   ;;  %v4625_v8 = vld [vmem:[#allocation2 + $0x264] ss:$8 sps:$4 sm:$0xff]  }
  0x5b   : > { %1232 = vmatpush2.bf16.msra.mxu0 %v4581_v9  ;;  %1273 = vmatpush2.bf16.msra.mxu1 %v4584_v10  ;;  %v4628_v10 = vld [vmem:[#allocation2 + $0x364] ss:$8 sps:$4 sm:$0xff]  }
  0x5c   : > { %1233 = vmatprep.subr.bf16.mxu0 %v4589_v11  ;;  %1274 = vmatprep.subr.bf16.mxu1 %v4592_v12  ;;  %v4623_v11 = vld [vmem:[#allocation2 + $0x260] ss:$8 sps:$4 sm:$0xff]  }
  0x5d   : > { %v4626_v12 = vld [vmem:[#allocation2 + $0x360] ss:$8 sps:$4 sm:$0xff]  }
  0x5f   : > { %1234 = vmatpush2.bf16.msra.mxu0 %v4587_v13  ;;  %1275 = vmatpush2.bf16.msra.mxu1 %v4590_v14  ;;  %v4631_v13 = vld [vmem:[#allocation2 + $0x254] ss:$8 sps:$4 sm:$0xff]  }
  0x60   : > { %1235 = vmatprep.subr.bf16.mxu0 %v4595_v15  ;;  %1276 = vmatprep.subr.bf16.mxu1 %v4598_v16  ;;  %v4634_v14 = vld [vmem:[#allocation2 + $0x354] ss:$8 sps:$4 sm:$0xff]  }
  0x63   : > { %1236 = vmatpush2.bf16.msra.mxu0 %v4593_v17  ;;  %1277 = vmatpush2.bf16.msra.mxu1 %v4596_v18  ;;  %v4629_v18 = vld [vmem:[#allocation2 + $0x250] ss:$8 sps:$4 sm:$0xff]  }
  0x64   : > { %1237 = vmatprep.subr.bf16.mxu0 %v4601_v19  ;;  %1278 = vmatprep.subr.bf16.mxu1 %v4604_v20  ;;  %v4632_v20 = vld [vmem:[#allocation2 + $0x350] ss:$8 sps:$4 sm:$0xff]  }
  0x67   : > { %1238 = vmatpush2.bf16.msra.mxu0 %v4599_v21  ;;  %1279 = vmatpush2.bf16.msra.mxu1 %v4602_v22  ;;  %v4637_v21 = vld [vmem:[#allocation2 + $0x244] ss:$8 sps:$4 sm:$0xff]  }
  0x68   : > { %1239 = vmatprep.subr.bf16.mxu0 %v4607_v23  ;;  %1280 = vmatprep.subr.bf16.mxu1 %v4610_v24  ;;  %v4640_v22 = vld [vmem:[#allocation2 + $0x344] ss:$8 sps:$4 sm:$0xff]   ;;  %v4635_v23 = vld [vmem:[#allocation2 + $0x240] ss:$8 sps:$4 sm:$0xff]  }
  0x69   : > { %v4638_v24 = vld [vmem:[#allocation2 + $0x340] ss:$8 sps:$4 sm:$0xff]  }
  0x6b   : > { %1240 = vmatpush2.bf16.msra.mxu0 %v4605_v25  ;;  %1281 = vmatpush2.bf16.msra.mxu1 %v4608_v26  ;;  %v4643_v25 = vld [vmem:[#allocation2 + $0x234] ss:$8 sps:$4 sm:$0xff]  }
  0x6c   : > { %1241 = vmatprep.subr.bf16.mxu0 %v4613_v27  ;;  %1282 = vmatprep.subr.bf16.mxu1 %v4616_v28  ;;  %v4646_v27 = vld [vmem:[#allocation2 + $0x334] ss:$8 sps:$4 sm:$0xff]   ;;  %v4641_v28 = vld [vmem:[#allocation2 + $0x230] ss:$8 sps:$4 sm:$0xff]  }
  0x6f   : > { %1242 = vmatpush2.bf16.msra.mxu0 %v4611_v29  ;;  %1283 = vmatpush2.bf16.msra.mxu1 %v4614_v30  ;;  %v4644_v29 = vld [vmem:[#allocation2 + $0x330] ss:$8 sps:$4 sm:$0xff]   ;;  %v4649_v30 = vld [vmem:[#allocation2 + $0x224] ss:$8 sps:$4 sm:$0xff]  }
  0x70   : > { %1293 = vmatprep.subr.bf16.mxu0 %v4619_v31  ;;  %1334 = vmatprep.subr.bf16.mxu1 %v4622_v32  ;;  %v4652_v32 = vld [vmem:[#allocation2 + $0x324] ss:$8 sps:$4 sm:$0xff]  }
  0x99   : > { %v5331_v33 = vpop.permute.xlu0 %481 }
  0x9d   : > { %v5334_v37 = vpop.permute.xlu0 %495 }
  0xea   : > { %v348_v34 = vpop.f32.mrf.mxu0  ;;  %v389_v36 = vpop.f32.mrf.mxu1 }
  0xeb   : > { %v484_v35 = vmul.f32 %v5331_v33, %v348_v34  ;;  %v486_v38 = vmul.f32 %v5331_v33, %v389_v36  ;;  %v4647_v34 = vld [vmem:[#allocation2 + $0x220] ss:$8 sps:$4 sm:$0xff]   ;;  %v4655_v36 = vld [vmem:[#allocation2 + $0x214] ss:$8 sps:$4 sm:$0xff]  }
  0xec   : > { %v350_v39 = vpop.f32.mrf.mxu0  ;;  %v391_v42 = vpop.f32.mrf.mxu1 }
  0xed   : > { %v498_v40 = vadd.f32 %v5334_v37, %v484_v35  ;;  %v485_v41 = vmul.f32 %v5331_v33, %v350_v39  ;;  %v500_v43 = vadd.f32 %v5334_v37, %v486_v38  ;;  %v487_v44 = vmul.f32 %v5331_v33, %v391_v42  ;;  %v4650_v35 = vld [vmem:[#allocation2 + $0x320] ss:$8 sps:$4 sm:$0xff]   ;;  %v4658_v38 = vld [vmem:[#allocation2 + $0x314] ss:$8 sps:$4 sm:$0xff]   ;;  %v4653_v39 = vld [vmem:[#allocation2 + $0x210] ss:$8 sps:$4 sm:$0xff]  }
  0xee   : > { %v352_v45 = vpop.f32.mrf.mxu0  ;;  %v393_v47 = vpop.f32.mrf.mxu1  ;;  %v4664_v42 = vld [vmem:[#allocation2 + $0x304] ss:$8 sps:$4 sm:$0xff]  }
  0xef   : > { %5201 = vtanh.f32 %v498_v40  ;;  %v499_v46 = vadd.f32 %v5334_v37, %v485_v41  ;;  %v501_v48 = vadd.f32 %v5334_v37, %v487_v44  ;;  %v4656_v40 = vld [vmem:[#allocation2 + $0x310] ss:$8 sps:$4 sm:$0xff]   ;;  %v4661_v41 = vld [vmem:[#allocation2 + $0x204] ss:$8 sps:$4 sm:$0xff]   ;;  %v4659_v44 = vld [vmem:[#allocation2 + $0x200] ss:$8 sps:$4 sm:$0xff]  }
  0xf0   : > { %5203 = vtanh.f32 %v500_v43  ;;  %v353_v49 = vpop.f32.mrf.mxu0  ;;  %v394_v50 = vpop.f32.mrf.mxu1  ;;  %v634_v43 = vld [vmem:[#allocation2 + $0x380] sm:$0x33] }
  0xf1   : > { %5205 = vtanh.f32 %v499_v46  ;;  %v4662_v45 = vld [vmem:[#allocation2 + $0x300] ss:$8 sps:$4 sm:$0xff]   ;;  %v4667_v46 = vld [vmem:[#allocation2 + $0x2f4] ss:$8 sps:$4 sm:$0xff]   ;;  %v4140_v47 = vcombine.high %v634_v43, %v634_v43  ;;  %v4665_v49 = vld [vmem:[#allocation2 + $0x2f0] ss:$8 sps:$4 sm:$0xff]  }
  0xf2   : > { %5207 = vtanh.f32 %v501_v48  ;;  %v5343_v51 = vpop.f32.mrf.mxu0  ;;  %v471_v52 = vpop.f32.mrf.mxu1  ;;  %v4139_v48 = vcombine.low %v634_v43, %v634_v43  ;;  %v4672_v50 = vld [vmem:[#allocation2 + $0x2e4] ss:$8 sps:$4 sm:$0xff]  }
  0xf3   : > { %v490_v26 = vmul.f32 %v5331_v33, %v471_v52  ;;  %v4741_v43 = vld [vmem:[#allocation2 + $0x4bc] ss:$8 sps:$4 sm:$0xff]  }
  0xf4   : > { %v432_v53 = vpop.f32.mrf.mxu0  ;;  %v473_v55 = vpop.f32.mrf.mxu1  ;;  %v1206_v52 = vsel %vm1204_vm4, %v4139_v48, 0  ;;  %v4744_v48 = vld [vmem:[#allocation2 + $0x43c] ss:$8 sps:$4 sm:$0xff]  }
  0xf5   : > { %v489_v54 = vmul.f32 %v5331_v33, %v432_v53  ;;  %v491_v56 = vmul.f32 %v5331_v33, %v473_v55  ;;  %v504_v31 = vadd.f32 %v5334_v37, %v490_v26  ;;  %v4675_v53 = vld [vmem:[#allocation2 + $0x3fc] ss:$8 sps:$4 sm:$0xff]   ;;  %v4670_v55 = vld [vmem:[#allocation2 + $0x2e0] ss:$8 sps:$4 sm:$0xff]  }
  0xf6   : > { %v434_v57 = vpop.f32.mrf.mxu0  ;;  %v475_v59 = vpop.f32.mrf.mxu1  ;;  %v4715_v26 = vld [vmem:[#allocation2 + $0x4f8] ss:$8 sps:$4 sm:$0xff]  }
  0xf7   : > { %v503_v58 = vadd.f32 %v5334_v37, %v489_v54  ;;  %v505_v60 = vadd.f32 %v5334_v37, %v491_v56  ;;  %v4673_v56 = vld [vmem:[#allocation2 + $0x3f8] ss:$8 sps:$4 sm:$0xff]   ;;  %v4681_v59 = vld [vmem:[#allocation2 + $0x3ec] ss:$8 sps:$4 sm:$0xff]  }
  0xf8   : > { %v435_v61 = vpop.f32.mrf.mxu0  ;;  %v476_v62 = vpop.f32.mrf.mxu1 }
  0xf9   : > { %5209 = vtanh.f32 %v503_v58  ;;  %v4678_v58 = vld [vmem:[#allocation2 + $0x2d4] ss:$8 sps:$4 sm:$0xff]   ;;  %v488_v61 = vmul.f32 %v5331_v33, %v5343_v51  ;;  %v4679_v62 = vld [vmem:[#allocation2 + $0x3e8] ss:$8 sps:$4 sm:$0xff]  }
  0xfa   : > { %5211 = vtanh.f32 %v505_v60  ;;  %v4676_v60 = vld [vmem:[#allocation2 + $0x2d0] ss:$8 sps:$4 sm:$0xff]  }
  0xfb   : > { %5213 = vtanh.f32 %v504_v31  ;;  %v4688_v33 = vld [vmem:[#allocation2 + $0x2b0] ss:$8 sps:$4 sm:$0xff]  }
  0xfc   : > { %v5202_v63 = vpop.eup %5201  ;;  %v4691_v51 = vld [vmem:[#allocation2 + $0x3c8] ss:$8 sps:$4 sm:$0xff]  }
  0xfd   : > { %v5204_v0 = vpop.eup %5203  ;;  %v5351_v5 = vpack.c.bf16 %v5202_v63, %v5202_v63  ;;  %v4684_v63 = vld [vmem:[#allocation2 + $0x2c4] ss:$8 sps:$4 sm:$0xff]   ;;  %v4721_v31 = vld [vmem:[#allocation2 + $0x4e8] ss:$8 sps:$4 sm:$0xff]  }
  0xfe   : > { %v5206_v1 = vpop.eup %5205  ;;  %v5355_v9 = vpack.c.bf16 %v5204_v0, %v5204_v0  ;;  %v4687_v0 = vld [vmem:[#allocation2 + $0x3dc] ss:$8 sps:$4 sm:$0xff]  }
  0xff   : > { %v5208_v2 = vpop.eup %5207  ;;  %v5349_v3 = vpack.c.bf16 %v5206_v1, %v5206_v1  ;;  %v4682_v1 = vld [vmem:[#allocation2 + $0x2c0] ss:$8 sps:$4 sm:$0xff]  }
 0x100   : > { %v5353_v6 = vpack.c.bf16 %v5208_v2, %v5208_v2  ;;  %v502_v2 = vadd.f32 %v5334_v37, %v488_v61  ;;  %v4697_v37 = vld [vmem:[#allocation2 + $0x3b8] ss:$8 sps:$4 sm:$0xff]   ;;  %v4765_v61 = vld [vmem:[#allocation2 + $0x57c] ss:$8 sps:$4 sm:$0xff]  }
 0x101   : > { %1243 = vmatprep.mubr.bf16.mxu0 %v5349_v3 }
 0x102   : > { %1284 = vmatprep.mubr.bf16.mxu1 %v5353_v6  ;;  %1244 = vmatmul.mubr.bf16.vlgmr.msra.gmra.mxu0 %v5351_v5  ;;  %5215 = vtanh.f32 %v502_v2  ;;  %v4771_v2 = vld [vmem:[#allocation2 + $0x5fc] ss:$8 sps:$4 sm:$0xff]  }
 0x103   : > { %1285 = vmatmul.mubr.bf16.vlgmr.msra.gmra.mxu1 %v5355_v9  ;;  %1294 = vmatpush1.bf16.msra.mxu0 %v4617_v4  ;;  %v4685_v4 = vld [vmem:[#allocation2 + $0x3d8] ss:$8 sps:$4 sm:$0xff]  }
 0x104   : > { %1335 = vmatpush1.bf16.msra.mxu1 %v4620_v7  ;;  %1295 = vmatprep.subr.bf16.mxu0 %v4625_v8  ;;  %v4690_v7 = vld [vmem:[#allocation2 + $0x2b4] ss:$8 sps:$4 sm:$0xff]  }
 0x105   : > { %1336 = vmatprep.subr.bf16.mxu1 %v4628_v10  ;;  %v4693_v8 = vld [vmem:[#allocation2 + $0x3cc] ss:$8 sps:$4 sm:$0xff]  }
 0x106   : > { %v5210_v15 = vpop.eup %5209  ;;  %v4696_v10 = vld [vmem:[#allocation2 + $0x2a4] ss:$8 sps:$4 sm:$0xff]  }
 0x107   : > { %v5212_v16 = vpop.eup %5211  ;;  %v5361_v17 = vpack.c.bf16 %v5210_v15, %v5210_v15  ;;  %1296 = vmatpush1.bf16.msra.mxu0 %v4623_v11  ;;  %v4699_v11 = vld [vmem:[#allocation2 + $0x3bc] ss:$8 sps:$4 sm:$0xff]   ;;  %v4700_v15 = vld [vmem:[#allocation2 + $0x290] ss:$8 sps:$4 sm:$0xff]  }
 0x108   : > { %v5363_v19 = vpack.c.bf16 %v5212_v16, %v5212_v16  ;;  %1337 = vmatpush1.bf16.msra.mxu1 %v4626_v12  ;;  %1297 = vmatprep.subr.bf16.mxu0 %v4631_v13  ;;  %v5214_v54 = vpop.eup %5213  ;;  %v4694_v12 = vld [vmem:[#allocation2 + $0x2a0] ss:$8 sps:$4 sm:$0xff]   ;;  %v4702_v13 = vld [vmem:[#allocation2 + $0x294] ss:$8 sps:$4 sm:$0xff]  }
 0x109   : > { %1325 = vmatprep.mubr.bf16.mxu0 %v5361_v17  ;;  %1338 = vmatprep.subr.bf16.mxu1 %v4634_v14  ;;  %v5372_v57 = vpack.c.bf16 %v5214_v54, %v5214_v54  ;;  %v4705_v14 = vld [vmem:[#allocation2 + $0x3ac] ss:$8 sps:$4 sm:$0xff]   ;;  %v4703_v16 = vld [vmem:[#allocation2 + $0x3a8] ss:$8 sps:$4 sm:$0xff]   ;;  %v4751_v54 = vld [vmem:[#allocation2 + $0x498] ss:$8 sps:$4 sm:$0xff]  }
 0x10a   : > { %4142 = vmatprep.mubr.msk.bf16.mxu1 %vm1200_vm3, %v5363_v19 }
 0x10b   : > { %1298 = vmatpush1.bf16.msra.mxu0 %v4629_v18  ;;  %v4708_v18 = vld [vmem:[#allocation2 + $0x284] ss:$8 sps:$4 sm:$0xff]  }
 0x10c   : > { %1339 = vmatpush1.bf16.msra.mxu1 %v4632_v20  ;;  %1299 = vmatprep.subr.bf16.mxu0 %v4637_v21  ;;  %v4711_v20 = vld [vmem:[#allocation2 + $0x39c] ss:$8 sps:$4 sm:$0xff]   ;;  %v4706_v21 = vld [vmem:[#allocation2 + $0x280] ss:$8 sps:$4 sm:$0xff]  }
 0x10d   : > { %1340 = vmatprep.subr.bf16.mxu1 %v4640_v22  ;;  %v4709_v22 = vld [vmem:[#allocation2 + $0x398] ss:$8 sps:$4 sm:$0xff]  }
 0x10f   : > { %1300 = vmatpush1.bf16.msra.mxu0 %v4635_v23  ;;  %v4717_v23 = vld [vmem:[#allocation2 + $0x4fc] ss:$8 sps:$4 sm:$0xff]  }
 0x110   : > { %1341 = vmatpush1.bf16.msra.mxu1 %v4638_v24  ;;  %1301 = vmatprep.subr.bf16.mxu0 %v4643_v25  ;;  %v5216_v24 = vpop.eup %5215  ;;  %v4714_v25 = vld [vmem:[#allocation2 + $0x38c] ss:$8 sps:$4 sm:$0xff]  }
 0x111   : > { %1342 = vmatprep.subr.bf16.mxu1 %v4646_v27  ;;  %v5379_v27 = vpack.c.bf16 %v5216_v24, %v5216_v24  ;;  %v4798_v24 = vld [vmem:[#allocation2 + $0x51c] ss:$8 sps:$4 sm:$0xff]  }
 0x113   : > { %1302 = vmatpush1.bf16.msra.mxu0 %v4641_v28  ;;  %v4712_v28 = vld [vmem:[#allocation2 + $0x388] ss:$8 sps:$4 sm:$0xff]  }
 0x114   : > { %1343 = vmatpush1.bf16.msra.mxu1 %v4644_v29  ;;  %1303 = vmatprep.subr.bf16.mxu0 %v4649_v30  ;;  %v4723_v29 = vld [vmem:[#allocation2 + $0x4ec] ss:$8 sps:$4 sm:$0xff]   ;;  %v4720_v30 = vld [vmem:[#allocation2 + $0x47c] ss:$8 sps:$4 sm:$0xff]  }
 0x115   : > { %1344 = vmatprep.subr.bf16.mxu1 %v4652_v32  ;;  %v4718_v32 = vld [vmem:[#allocation2 + $0x478] ss:$8 sps:$4 sm:$0xff]  }
 0x117   : > { %1304 = vmatpush1.bf16.msra.mxu0 %v4647_v34  ;;  %v4729_v34 = vld [vmem:[#allocation2 + $0x4dc] ss:$8 sps:$4 sm:$0xff]  }
 0x118   : > { %1345 = vmatpush1.bf16.msra.mxu1 %v4650_v35  ;;  %1305 = vmatprep.subr.bf16.mxu0 %v4655_v36  ;;  %v4726_v35 = vld [vmem:[#allocation2 + $0x46c] ss:$8 sps:$4 sm:$0xff]   ;;  %v4727_v36 = vld [vmem:[#allocation2 + $0x4d8] ss:$8 sps:$4 sm:$0xff]  }
 0x119   : > { %1346 = vmatprep.subr.bf16.mxu1 %v4658_v38  ;;  %v4724_v38 = vld [vmem:[#allocation2 + $0x468] ss:$8 sps:$4 sm:$0xff]  }
 0x11b   : > { %1306 = vmatpush1.bf16.msra.mxu0 %v4653_v39  ;;  %v4735_v39 = vld [vmem:[#allocation2 + $0x4cc] ss:$8 sps:$4 sm:$0xff]  }
 0x11c   : > { %1347 = vmatpush1.bf16.msra.mxu1 %v4656_v40  ;;  %1307 = vmatprep.subr.bf16.mxu0 %v4661_v41  ;;  %v4732_v40 = vld [vmem:[#allocation2 + $0x45c] ss:$8 sps:$4 sm:$0xff]   ;;  %v4733_v41 = vld [vmem:[#allocation2 + $0x4c8] ss:$8 sps:$4 sm:$0xff]  }
 0x11d   : > { %1348 = vmatprep.subr.bf16.mxu1 %v4664_v42  ;;  %v4730_v42 = vld [vmem:[#allocation2 + $0x458] ss:$8 sps:$4 sm:$0xff]  }
 0x11f   : > { %1308 = vmatpush1.bf16.msra.mxu0 %v4659_v44  ;;  %v4738_v44 = vld [vmem:[#allocation2 + $0x44c] ss:$8 sps:$4 sm:$0xff]  }
 0x120   : > { %1349 = vmatpush1.bf16.msra.mxu1 %v4662_v45  ;;  %1309 = vmatprep.subr.bf16.mxu0 %v4667_v46  ;;  %v4739_v45 = vld [vmem:[#allocation2 + $0x4b8] ss:$8 sps:$4 sm:$0xff]   ;;  %v4736_v46 = vld [vmem:[#allocation2 + $0x448] ss:$8 sps:$4 sm:$0xff]  }
 0x121   : > { %4141 = vmatprep.subr.msk.bf16.mxu1 %vm1204_vm4, %v4140_v47  ;;  %v4747_v47 = vld [vmem:[#allocation2 + $0x4ac] ss:$8 sps:$4 sm:$0xff]  }
 0x123   : > { %1310 = vmatpush2.bf16.msra.mxu0 %v4665_v49  ;;  %v4745_v49 = vld [vmem:[#allocation2 + $0x4a8] ss:$8 sps:$4 sm:$0xff]  }
 0x124   : > { %1365 = vmatpush2.bf16.msra.mxu1 %v1206_v52  ;;  %1311 = vmatprep.subr.bf16.mxu0 %v4672_v50  ;;  %v4742_v50 = vld [vmem:[#allocation2 + $0x438] ss:$8 sps:$4 sm:$0xff]   ;;  %v4753_v52 = vld [vmem:[#allocation2 + $0x49c] ss:$8 sps:$4 sm:$0xff]  }
 0x125   : > { %2060 = vmatprep.subr.bf16.mxu1 %v4675_v53  ;;  %v4750_v53 = vld [vmem:[#allocation2 + $0x42c] ss:$8 sps:$4 sm:$0xff]  }
 0x127   : > { %1367 = vmatmul.mubr.bf16.vlgmr.msra.gmra.mxu1 %v5372_v57  ;;  %1312 = vmatpush2.bf16.msra.mxu0 %v4670_v55  ;;  %v4748_v55 = vld [vmem:[#allocation2 + $0x428] ss:$8 sps:$4 sm:$0xff]  }
 0x128   : > { %2061 = vmatpush1.bf16.msra.mxu1 %v4673_v56  ;;  %2092 = vmatprep.mubr.bf16.mxu1 %v5349_v3  ;;  %v4759_v56 = vld [vmem:[#allocation2 + $0x48c] ss:$8 sps:$4 sm:$0xff]  }
 0x129   : > { %1313 = vmatprep.subr.bf16.mxu0 %v4678_v58  ;;  %2062 = vmatprep.subr.bf16.mxu1 %v4681_v59  ;;  %v4756_v58 = vld [vmem:[#allocation2 + $0x41c] ss:$8 sps:$4 sm:$0xff]   ;;  %v4757_v59 = vld [vmem:[#allocation2 + $0x488] ss:$8 sps:$4 sm:$0xff]  }
 0x12b   : > { %1314 = vmatpush2.bf16.msra.mxu0 %v4676_v60  ;;  %v4754_v60 = vld [vmem:[#allocation2 + $0x418] ss:$8 sps:$4 sm:$0xff]  }
 0x12c   : > { %2063 = vmatpush1.bf16.msra.mxu1 %v4679_v62  ;;  %1315 = vmatprep.subr.bf16.mxu0 %v4684_v63  ;;  %v4762_v62 = vld [vmem:[#allocation2 + $0x40c] ss:$8 sps:$4 sm:$0xff]   ;;  %v4763_v63 = vld [vmem:[#allocation2 + $0x578] ss:$8 sps:$4 sm:$0xff]  }
 0x12d   : > { %2064 = vmatprep.subr.bf16.mxu1 %v4687_v0  ;;  %v4760_v0 = vld [vmem:[#allocation2 + $0x408] ss:$8 sps:$4 sm:$0xff]  }
 0x12f   : > { %1316 = vmatpush2.bf16.msra.mxu0 %v4682_v1  ;;  %v4768_v1 = vld [vmem:[#allocation2 + $0x56c] ss:$8 sps:$4 sm:$0xff]  }
 0x130   : > { %2065 = vmatpush1.bf16.msra.mxu1 %v4685_v4  ;;  %1317 = vmatprep.subr.bf16.mxu0 %v4690_v7  ;;  %v4766_v4 = vld [vmem:[#allocation2 + $0x568] ss:$8 sps:$4 sm:$0xff]   ;;  %v4769_v7 = vld [vmem:[#allocation2 + $0x5f8] ss:$8 sps:$4 sm:$0xff]  }
 0x131   : > { %2066 = vmatprep.subr.bf16.mxu1 %v4693_v8  ;;  %v4774_v8 = vld [vmem:[#allocation2 + $0x55c] ss:$8 sps:$4 sm:$0xff]  }
 0x133   : > { %1318 = vmatpush2.bf16.msra.mxu0 %v4688_v33  ;;  %v4777_v33 = vld [vmem:[#allocation2 + $0x5ec] ss:$8 sps:$4 sm:$0xff]  }
 0x134   : > { %2067 = vmatpush1.bf16.msra.mxu1 %v4691_v51  ;;  %1319 = vmatprep.subr.bf16.mxu0 %v4696_v10  ;;  %v4772_v51 = vld [vmem:[#allocation2 + $0x558] ss:$8 sps:$4 sm:$0xff]   ;;  %v4775_v10 = vld [vmem:[#allocation2 + $0x5e8] ss:$8 sps:$4 sm:$0xff]  }
 0x135   : > { %2068 = vmatprep.subr.bf16.mxu1 %v4699_v11  ;;  %v4780_v11 = vld [vmem:[#allocation2 + $0x54c] ss:$8 sps:$4 sm:$0xff]  }
 0x137   : > { %1320 = vmatpush2.bf16.msra.mxu0 %v4694_v12  ;;  %v4783_v12 = vld [vmem:[#allocation2 + $0x5dc] ss:$8 sps:$4 sm:$0xff]  }
 0x138   : > { %2069 = vmatpush1.bf16.msra.mxu1 %v4697_v37  ;;  %1321 = vmatprep.subr.bf16.mxu0 %v4702_v13  ;;  %v4778_v37 = vld [vmem:[#allocation2 + $0x548] ss:$8 sps:$4 sm:$0xff]   ;;  %v4781_v13 = vld [vmem:[#allocation2 + $0x5d8] ss:$8 sps:$4 sm:$0xff]  }
 0x139   : > { %2070 = vmatprep.subr.bf16.mxu1 %v4705_v14  ;;  %v4786_v14 = vld [vmem:[#allocation2 + $0x53c] ss:$8 sps:$4 sm:$0xff]  }
 0x13b   : > { %1322 = vmatpush2.bf16.msra.mxu0 %v4700_v15  ;;  %v4789_v15 = vld [vmem:[#allocation2 + $0x5cc] ss:$8 sps:$4 sm:$0xff]  }
 0x13c   : > { %2071 = vmatpush1.bf16.msra.mxu1 %v4703_v16  ;;  %1323 = vmatprep.subr.bf16.mxu0 %v4708_v18  ;;  %v4784_v16 = vld [vmem:[#allocation2 + $0x538] ss:$8 sps:$4 sm:$0xff]   ;;  %v4787_v18 = vld [vmem:[#allocation2 + $0x5c8] ss:$8 sps:$4 sm:$0xff]  }
 0x13d   : > { %2072 = vmatprep.subr.bf16.mxu1 %v4711_v20  ;;  %v4792_v20 = vld [vmem:[#allocation2 + $0x52c] ss:$8 sps:$4 sm:$0xff]  }
 0x13f   : > { %1324 = vmatpush2.bf16.msra.mxu0 %v4706_v21  ;;  %v4795_v21 = vld [vmem:[#allocation2 + $0x5bc] ss:$8 sps:$4 sm:$0xff]  }
 0x140   : > { %2073 = vmatpush1.bf16.msra.mxu1 %v4709_v22  ;;  %2101 = vmatprep.subr.bf16.mxu0 %v4717_v23  ;;  %v4790_v22 = vld [vmem:[#allocation2 + $0x528] ss:$8 sps:$4 sm:$0xff]   ;;  %v4793_v23 = vld [vmem:[#allocation2 + $0x5b8] ss:$8 sps:$4 sm:$0xff]  }
 0x141   : > { %2074 = vmatprep.subr.bf16.mxu1 %v4714_v25  ;;  %v4801_v25 = vld [vmem:[#allocation2 + $0x5ac] ss:$8 sps:$4 sm:$0xff]  }
 0x142   : > { %1326 = vmatmul.mubr.bf16.vlgmr.msra.gmra.mxu0 %v5379_v27 }
 0x143   : > { %2102 = vmatpush1.bf16.msra.mxu0 %v4715_v26  ;;  %2133 = vmatprep.mubr.bf16.mxu0 %v5353_v6  ;;  %v4796_v26 = vld [vmem:[#allocation2 + $0x518] ss:$8 sps:$4 sm:$0xff]  }
 0x144   : > { %2075 = vmatpush1.bf16.msra.mxu1 %v4712_v28  ;;  %2103 = vmatprep.subr.bf16.mxu0 %v4723_v29  ;;  %v4799_v28 = vld [vmem:[#allocation2 + $0x5a8] ss:$8 sps:$4 sm:$0xff]   ;;  %v4804_v29 = vld [vmem:[#allocation2 + $0x50c] ss:$8 sps:$4 sm:$0xff]  }
 0x145   : > { %2076 = vmatprep.subr.bf16.mxu1 %v4720_v30  ;;  %v4807_v30 = vld [vmem:[#allocation2 + $0x59c] ss:$8 sps:$4 sm:$0xff]  }
 0x147   : > { %2104 = vmatpush1.bf16.msra.mxu0 %v4721_v31  ;;  %v4802_v31 = vld [vmem:[#allocation2 + $0x508] ss:$8 sps:$4 sm:$0xff]  }
 0x148   : > { %2077 = vmatpush2.bf16.msra.mxu1 %v4718_v32  ;;  %2105 = vmatprep.subr.bf16.mxu0 %v4729_v34  ;;  %v4805_v32 = vld [vmem:[#allocation2 + $0x598] ss:$8 sps:$4 sm:$0xff]   ;;  %v4813_v34 = vld [vmem:[#allocation2 + $0x6fc] ss:$8 sps:$4 sm:$0xff]  }
 0x149   : > { %2078 = vmatprep.subr.bf16.mxu1 %v4726_v35  ;;  %v4810_v35 = vld [vmem:[#allocation2 + $0x58c] ss:$8 sps:$4 sm:$0xff]  }
 0x14b   : > { %2106 = vmatpush1.bf16.msra.mxu0 %v4727_v36  ;;  %v4811_v36 = vld [vmem:[#allocation2 + $0x6f8] ss:$8 sps:$4 sm:$0xff]  }
 0x14c   : > { %2079 = vmatpush2.bf16.msra.mxu1 %v4724_v38  ;;  %2107 = vmatprep.subr.bf16.mxu0 %v4735_v39  ;;  %v4808_v38 = vld [vmem:[#allocation2 + $0x588] ss:$8 sps:$4 sm:$0xff]   ;;  %v4819_v39 = vld [vmem:[#allocation2 + $0x6ec] ss:$8 sps:$4 sm:$0xff]  }
 0x14d   : > { %2080 = vmatprep.subr.bf16.mxu1 %v4732_v40  ;;  %v4816_v40 = vld [vmem:[#allocation2 + $0x67c] ss:$8 sps:$4 sm:$0xff]  }
 0x14f   : > { %2108 = vmatpush1.bf16.msra.mxu0 %v4733_v41  ;;  %v4817_v41 = vld [vmem:[#allocation2 + $0x6e8] ss:$8 sps:$4 sm:$0xff]  }
 0x150   : > { %2081 = vmatpush2.bf16.msra.mxu1 %v4730_v42  ;;  %2109 = vmatprep.subr.bf16.mxu0 %v4741_v43  ;;  %v4814_v42 = vld [vmem:[#allocation2 + $0x678] ss:$8 sps:$4 sm:$0xff]   ;;  %v4825_v43 = vld [vmem:[#allocation2 + $0x6dc] ss:$8 sps:$4 sm:$0xff]  }
 0x151   : > { %2082 = vmatprep.subr.bf16.mxu1 %v4738_v44  ;;  %v4822_v44 = vld [vmem:[#allocation2 + $0x66c] ss:$8 sps:$4 sm:$0xff]  }
 0x153   : > { %2110 = vmatpush1.bf16.msra.mxu0 %v4739_v45  ;;  %v4823_v45 = vld [vmem:[#allocation2 + $0x6d8] ss:$8 sps:$4 sm:$0xff]  }
 0x154   : > { %2083 = vmatpush2.bf16.msra.mxu1 %v4736_v46  ;;  %2111 = vmatprep.subr.bf16.mxu0 %v4747_v47  ;;  %v4820_v46 = vld [vmem:[#allocation2 + $0x668] ss:$8 sps:$4 sm:$0xff]   ;;  %v4831_v47 = vld [vmem:[#allocation2 + $0x6cc] ss:$8 sps:$4 sm:$0xff]  }
 0x155   : > { %2084 = vmatprep.subr.bf16.mxu1 %v4744_v48  ;;  %v4828_v48 = vld [vmem:[#allocation2 + $0x65c] ss:$8 sps:$4 sm:$0xff]  }
 0x157   : > { %2112 = vmatpush1.bf16.msra.mxu0 %v4745_v49  ;;  %v4829_v49 = vld [vmem:[#allocation2 + $0x6c8] ss:$8 sps:$4 sm:$0xff]  }
 0x158   : > { %2085 = vmatpush2.bf16.msra.mxu1 %v4742_v50  ;;  %2113 = vmatprep.subr.bf16.mxu0 %v4753_v52  ;;  %v4826_v50 = vld [vmem:[#allocation2 + $0x658] ss:$8 sps:$4 sm:$0xff]   ;;  %v4837_v52 = vld [vmem:[#allocation2 + $0x6bc] ss:$8 sps:$4 sm:$0xff]  }
 0x159   : > { %2086 = vmatprep.subr.bf16.mxu1 %v4750_v53  ;;  %v4834_v53 = vld [vmem:[#allocation2 + $0x64c] ss:$8 sps:$4 sm:$0xff]  }
 0x15b   : > { %2114 = vmatpush1.bf16.msra.mxu0 %v4751_v54  ;;  %v4835_v54 = vld [vmem:[#allocation2 + $0x6b8] ss:$8 sps:$4 sm:$0xff]  }
 0x15c   : > { %2087 = vmatpush2.bf16.msra.mxu1 %v4748_v55  ;;  %2115 = vmatprep.subr.bf16.mxu0 %v4759_v56  ;;  %v4832_v55 = vld [vmem:[#allocation2 + $0x648] ss:$8 sps:$4 sm:$0xff]   ;;  %v4843_v56 = vld [vmem:[#allocation2 + $0x6ac] ss:$8 sps:$4 sm:$0xff]  }
 0x15d   : > { %2088 = vmatprep.subr.bf16.mxu1 %v4756_v58  ;;  %v4840_v58 = vld [vmem:[#allocation2 + $0x63c] ss:$8 sps:$4 sm:$0xff]  }
 0x15f   : > { %2116 = vmatpush1.bf16.msra.mxu0 %v4757_v59  ;;  %v4841_v59 = vld [vmem:[#allocation2 + $0x6a8] ss:$8 sps:$4 sm:$0xff]  }
 0x160   : > { %2089 = vmatpush2.bf16.msra.mxu1 %v4754_v60  ;;  %2117 = vmatprep.subr.bf16.mxu0 %v4765_v61  ;;  %v4838_v60 = vld [vmem:[#allocation2 + $0x638] ss:$8 sps:$4 sm:$0xff]   ;;  %v4849_v61 = vld [vmem:[#allocation2 + $0x69c] ss:$8 sps:$4 sm:$0xff]  }
 0x161   : > { %2090 = vmatprep.subr.bf16.mxu1 %v4762_v62  ;;  %v4846_v62 = vld [vmem:[#allocation2 + $0x62c] ss:$8 sps:$4 sm:$0xff]  }
 0x163   : > { %2118 = vmatpush2.bf16.msra.mxu0 %v4763_v63  ;;  %v4847_v63 = vld [vmem:[#allocation2 + $0x698] ss:$8 sps:$4 sm:$0xff]  }
 0x164   : > { %2091 = vmatpush2.bf16.msra.mxu1 %v4760_v0  ;;  %2119 = vmatprep.subr.bf16.mxu0 %v4768_v1  ;;  %v4844_v0 = vld [vmem:[#allocation2 + $0x628] ss:$8 sps:$4 sm:$0xff]   ;;  %v4855_v1 = vld [vmem:[#allocation2 + $0x68c] ss:$8 sps:$4 sm:$0xff]  }
 0x165   : > { %2142 = vmatprep.subr.bf16.mxu1 %v4771_v2  ;;  %v4852_v2 = vld [vmem:[#allocation2 + $0x61c] ss:$8 sps:$4 sm:$0xff]  }
 0x167   : > { %2093 = vmatmul.mubr.bf16.vlgmr.msra.gmra.mxu1 %v5351_v5  ;;  %2120 = vmatpush2.bf16.msra.mxu0 %v4766_v4  ;;  %v1488_v4 = vld [vmem:[#allocation2 + $0x708] sm:$0x33] }
 0x168   : > { %2143 = vmatpush1.bf16.msra.mxu1 %v4769_v7  ;;  %2174 = vmatprep.mubr.bf16.mxu1 %v5361_v17  ;;  %v4853_v7 = vld [vmem:[#allocation2 + $0x688] ss:$8 sps:$4 sm:$0xff]  }
 0x169   : > { %2121 = vmatprep.subr.bf16.mxu0 %v4774_v8  ;;  %2144 = vmatprep.subr.bf16.mxu1 %v4777_v33  ;;  %v4850_v8 = vld [vmem:[#allocation2 + $0x618] ss:$8 sps:$4 sm:$0xff]   ;;  %v4256_v33 = vcombine.high %v1488_v4, %v1488_v4 }
 0x16b   : > { %2122 = vmatpush2.bf16.msra.mxu0 %v4772_v51  ;;  %v4255_v51 = vcombine.low %v1488_v4, %v1488_v4  ;;  %v4918_v4 = vld [vmem:[#allocation2 + $0x8f0] ss:$8 sps:$4 sm:$0xff]  }
 0x16c   : > { %2145 = vmatpush1.bf16.msra.mxu1 %v4775_v10  ;;  %2123 = vmatprep.subr.bf16.mxu0 %v4780_v11  ;;  %v4858_v10 = vld [vmem:[#allocation2 + $0x60c] ss:$8 sps:$4 sm:$0xff]   ;;  %v4856_v11 = vld [vmem:[#allocation2 + $0x608] ss:$8 sps:$4 sm:$0xff]  }
 0x16d   : > { %2146 = vmatprep.subr.bf16.mxu1 %v4783_v12  ;;  %v2055_v12 = vsel %vm1204_vm4, %v4255_v51, 0  ;;  %v4921_v51 = vld [vmem:[#allocation2 + $0x7e0] ss:$8 sps:$4 sm:$0xff]  }
 0x16f   : > { %2124 = vmatpush2.bf16.msra.mxu0 %v4778_v37  ;;  %v4863_v37 = vld [vmem:[#allocation2 + $0x784] ss:$8 sps:$4 sm:$0xff]  }
 0x170   : > { %2147 = vmatpush1.bf16.msra.mxu1 %v4781_v13  ;;  %2125 = vmatprep.subr.bf16.mxu0 %v4786_v14  ;;  %v4866_v13 = vld [vmem:[#allocation2 + $0x884] ss:$8 sps:$4 sm:$0xff]   ;;  %v4861_v14 = vld [vmem:[#allocation2 + $0x780] ss:$8 sps:$4 sm:$0xff]  }
 0x171   : > { %2148 = vmatprep.subr.bf16.mxu1 %v4789_v15  ;;  %v4864_v15 = vld [vmem:[#allocation2 + $0x880] ss:$8 sps:$4 sm:$0xff]  }
 0x173   : > { %2126 = vmatpush2.bf16.msra.mxu0 %v4784_v16  ;;  %v4869_v16 = vld [vmem:[#allocation2 + $0x774] ss:$8 sps:$4 sm:$0xff]  }
 0x174   : > { %2149 = vmatpush1.bf16.msra.mxu1 %v4787_v18  ;;  %2127 = vmatprep.subr.bf16.mxu0 %v4792_v20  ;;  %v4872_v18 = vld [vmem:[#allocation2 + $0x874] ss:$8 sps:$4 sm:$0xff]   ;;  %v4867_v20 = vld [vmem:[#allocation2 + $0x770] ss:$8 sps:$4 sm:$0xff]  }
 0x175   : > { %2150 = vmatprep.subr.bf16.mxu1 %v4795_v21  ;;  %v4870_v21 = vld [vmem:[#allocation2 + $0x870] ss:$8 sps:$4 sm:$0xff]  }
 0x177   : > { %2128 = vmatpush2.bf16.msra.mxu0 %v4790_v22  ;;  %v4875_v22 = vld [vmem:[#allocation2 + $0x764] ss:$8 sps:$4 sm:$0xff]  }
 0x178   : > { %2151 = vmatpush1.bf16.msra.mxu1 %v4793_v23  ;;  %2129 = vmatprep.subr.bf16.mxu0 %v4798_v24  ;;  %v4878_v23 = vld [vmem:[#allocation2 + $0x864] ss:$8 sps:$4 sm:$0xff]   ;;  %v4873_v24 = vld [vmem:[#allocation2 + $0x760] ss:$8 sps:$4 sm:$0xff]  }
 0x179   : > { %2152 = vmatprep.subr.bf16.mxu1 %v4801_v25  ;;  %v4876_v25 = vld [vmem:[#allocation2 + $0x860] ss:$8 sps:$4 sm:$0xff]  }
 0x17b   : > { %2130 = vmatpush2.bf16.msra.mxu0 %v4796_v26  ;;  %v4881_v26 = vld [vmem:[#allocation2 + $0x754] ss:$8 sps:$4 sm:$0xff]  }
 0x17c   : > { %2153 = vmatpush1.bf16.msra.mxu1 %v4799_v28  ;;  %2131 = vmatprep.subr.bf16.mxu0 %v4804_v29  ;;  %v4884_v28 = vld [vmem:[#allocation2 + $0x854] ss:$8 sps:$4 sm:$0xff]   ;;  %v4879_v29 = vld [vmem:[#allocation2 + $0x750] ss:$8 sps:$4 sm:$0xff]  }
 0x17d   : > { %2154 = vmatprep.subr.bf16.mxu1 %v4807_v30  ;;  %v4882_v30 = vld [vmem:[#allocation2 + $0x850] ss:$8 sps:$4 sm:$0xff]  }
 0x17f   : > { %2132 = vmatpush2.bf16.msra.mxu0 %v4802_v31  ;;  %v4887_v31 = vld [vmem:[#allocation2 + $0x744] ss:$8 sps:$4 sm:$0xff]  }
 0x180   : > { %2155 = vmatpush1.bf16.msra.mxu1 %v4805_v32  ;;  %2183 = vmatprep.subr.bf16.mxu0 %v4813_v34  ;;  %v4890_v32 = vld [vmem:[#allocation2 + $0x844] ss:$8 sps:$4 sm:$0xff]   ;;  %v4885_v34 = vld [vmem:[#allocation2 + $0x740] ss:$8 sps:$4 sm:$0xff]  }
 0x181   : > { %2156 = vmatprep.subr.bf16.mxu1 %v4810_v35  ;;  %v4888_v35 = vld [vmem:[#allocation2 + $0x840] ss:$8 sps:$4 sm:$0xff]  }
 0x182   : > { %2134 = vmatmul.mubr.bf16.vlgmr.msra.gmra.mxu0 %v5355_v9 }
 0x183   : > { %2184 = vmatpush1.bf16.msra.mxu0 %v4811_v36  ;;  %4258 = vmatprep.mubr.msk.bf16.mxu0 %vm1200_vm3, %v5363_v19  ;;  %v4893_v36 = vld [vmem:[#allocation2 + $0x734] ss:$8 sps:$4 sm:$0xff]  }
 0x184   : > { %2157 = vmatpush1.bf16.msra.mxu1 %v4808_v38  ;;  %2185 = vmatprep.subr.bf16.mxu0 %v4819_v39  ;;  %v4896_v38 = vld [vmem:[#allocation2 + $0x834] ss:$8 sps:$4 sm:$0xff]   ;;  %v4891_v39 = vld [vmem:[#allocation2 + $0x730] ss:$8 sps:$4 sm:$0xff]  }
 0x185   : > { %2158 = vmatprep.subr.bf16.mxu1 %v4816_v40  ;;  %v4894_v40 = vld [vmem:[#allocation2 + $0x830] ss:$8 sps:$4 sm:$0xff]  }
 0x187   : > { %2186 = vmatpush1.bf16.msra.mxu0 %v4817_v41  ;;  %v4899_v41 = vld [vmem:[#allocation2 + $0x724] ss:$8 sps:$4 sm:$0xff]  }
 0x188   : > { %2159 = vmatpush2.bf16.msra.mxu1 %v4814_v42  ;;  %2187 = vmatprep.subr.bf16.mxu0 %v4825_v43  ;;  %v4902_v42 = vld [vmem:[#allocation2 + $0x824] ss:$8 sps:$4 sm:$0xff]   ;;  %v4897_v43 = vld [vmem:[#allocation2 + $0x720] ss:$8 sps:$4 sm:$0xff]  }
 0x189   : > { %2160 = vmatprep.subr.bf16.mxu1 %v4822_v44  ;;  %v4900_v44 = vld [vmem:[#allocation2 + $0x820] ss:$8 sps:$4 sm:$0xff]  }
 0x18b   : > { %2188 = vmatpush1.bf16.msra.mxu0 %v4823_v45  ;;  %v4905_v45 = vld [vmem:[#allocation2 + $0x714] ss:$8 sps:$4 sm:$0xff]  }
 0x18c   : > { %2161 = vmatpush2.bf16.msra.mxu1 %v4820_v46  ;;  %2189 = vmatprep.subr.bf16.mxu0 %v4831_v47  ;;  %v4908_v46 = vld [vmem:[#allocation2 + $0x814] ss:$8 sps:$4 sm:$0xff]   ;;  %v4903_v47 = vld [vmem:[#allocation2 + $0x710] ss:$8 sps:$4 sm:$0xff]  }
 0x18d   : > { %2162 = vmatprep.subr.bf16.mxu1 %v4828_v48  ;;  %v4906_v48 = vld [vmem:[#allocation2 + $0x810] ss:$8 sps:$4 sm:$0xff]  }
 0x18f   : > { %2190 = vmatpush1.bf16.msra.mxu0 %v4829_v49  ;;  %v4911_v49 = vld [vmem:[#allocation2 + $0x804] ss:$8 sps:$4 sm:$0xff]  }
 0x190   : > { %2163 = vmatpush2.bf16.msra.mxu1 %v4826_v50  ;;  %2191 = vmatprep.subr.bf16.mxu0 %v4837_v52  ;;  %v4914_v50 = vld [vmem:[#allocation2 + $0x904] ss:$8 sps:$4 sm:$0xff]  }
 0x191   : > { %2164 = vmatprep.subr.bf16.mxu1 %v4834_v53 }
 0x193   : > { %2192 = vmatpush1.bf16.msra.mxu0 %v4835_v54  ;;  %v4909_v54 = vld [vmem:[#allocation2 + $0x800] ss:$8 sps:$4 sm:$0xff]  }
 0x194   : > { %2165 = vmatpush2.bf16.msra.mxu1 %v4832_v55  ;;  %2193 = vmatprep.subr.bf16.mxu0 %v4843_v56 }
 0x195   : > { %2166 = vmatprep.subr.bf16.mxu1 %v4840_v58  ;;  %v4912_v58 = vld [vmem:[#allocation2 + $0x900] ss:$8 sps:$4 sm:$0xff]  }
 0x197   : > { %2194 = vmatpush1.bf16.msra.mxu0 %v4841_v59  ;;  %v4917_v59 = vld [vmem:[#allocation2 + $0x7f4] ss:$8 sps:$4 sm:$0xff]  }
 0x198   : > { %2167 = vmatpush2.bf16.msra.mxu1 %v4838_v60  ;;  %2195 = vmatprep.subr.bf16.mxu0 %v4849_v61  ;;  %v4920_v61 = vld [vmem:[#allocation2 + $0x8f4] ss:$8 sps:$4 sm:$0xff]  }
 0x199   : > { %2168 = vmatprep.subr.bf16.mxu1 %v4846_v62 }
 0x19b   : > { %2196 = vmatpush1.bf16.msra.mxu0 %v4847_v63 }
 0x19c   : > { %2169 = vmatpush2.bf16.msra.mxu1 %v4844_v0  ;;  %2197 = vmatprep.subr.bf16.mxu0 %v4855_v1  ;;  %v4915_v1 = vld [vmem:[#allocation2 + $0x7f0] ss:$8 sps:$4 sm:$0xff]  }
 0x19d   : > { %2170 = vmatprep.subr.bf16.mxu1 %v4852_v2 }
 0x19f   : > { %2198 = vmatpush1.bf16.msra.mxu0 %v4853_v7  ;;  %v4923_v7 = vld [vmem:[#allocation2 + $0x7e4] ss:$8 sps:$4 sm:$0xff]  }
 0x1a0   : > { %2171 = vmatpush2.bf16.msra.mxu1 %v4850_v8  ;;  %4257 = vmatprep.subr.msk.bf16.mxu0 %vm1204_vm4, %v4256_v33  ;;  %v4926_v33 = vld [vmem:[#allocation2 + $0x8e4] ss:$8 sps:$4 sm:$0xff]  }
 0x1a1   : > { %2172 = vmatprep.subr.bf16.mxu1 %v4858_v10  ;;  %v4924_v10 = vld [vmem:[#allocation2 + $0x8e0] ss:$8 sps:$4 sm:$0xff]  }
 0x1a3   : > { %2214 = vmatpush2.bf16.msra.mxu0 %v2055_v12  ;;  %v4932_v12 = vld [vmem:[#allocation2 + $0x8d4] ss:$8 sps:$4 sm:$0xff]  }
 0x1a4   : > { %2173 = vmatpush2.bf16.msra.mxu1 %v4856_v11  ;;  %2911 = vmatprep.subr.bf16.mxu0 %v4863_v37  ;;  %v4929_v11 = vld [vmem:[#allocation2 + $0x7d4] ss:$8 sps:$4 sm:$0xff]   ;;  %v4927_v37 = vld [vmem:[#allocation2 + $0x7d0] ss:$8 sps:$4 sm:$0xff]  }
 0x1a5   : > { %2952 = vmatprep.subr.bf16.mxu1 %v4866_v13  ;;  %v4930_v13 = vld [vmem:[#allocation2 + $0x8d0] ss:$8 sps:$4 sm:$0xff]  }
 0x1a6   : > { %2216 = vmatmul.mubr.bf16.vlgmr.msra.gmra.mxu0 %v5372_v57 }
 0x1a7   : > { %2175 = vmatmul.mubr.bf16.vlgmr.msra.gmra.mxu1 %v5379_v27  ;;  %2912 = vmatpush1.bf16.msra.mxu0 %v4861_v14  ;;  %v4935_v14 = vld [vmem:[#allocation2 + $0x7c4] ss:$8 sps:$4 sm:$0xff]  }
 0x1a8   : > { %2943 = vmatprep.mubr.bf16.mxu0 %v5349_v3  ;;  %2953 = vmatpush1.bf16.msra.mxu1 %v4864_v15  ;;  %v4938_v15 = vld [vmem:[#allocation2 + $0x8c4] ss:$8 sps:$4 sm:$0xff]  }
 0x1a9   : > { %2984 = vmatprep.mubr.bf16.mxu1 %v5353_v6  ;;  %2913 = vmatprep.subr.bf16.mxu0 %v4869_v16  ;;  %v4933_v16 = vld [vmem:[#allocation2 + $0x7c0] ss:$8 sps:$4 sm:$0xff]  }
 0x1aa   : > { %2954 = vmatprep.subr.bf16.mxu1 %v4872_v18  ;;  %v4936_v18 = vld [vmem:[#allocation2 + $0x8c0] ss:$8 sps:$4 sm:$0xff]  }
 0x1ab   : > { %2914 = vmatpush1.bf16.msra.mxu0 %v4867_v20  ;;  %v4941_v20 = vld [vmem:[#allocation2 + $0x7b4] ss:$8 sps:$4 sm:$0xff]  }
 0x1ac   : > { %2955 = vmatpush1.bf16.msra.mxu1 %v4870_v21  ;;  %2915 = vmatprep.subr.bf16.mxu0 %v4875_v22  ;;  %v4944_v21 = vld [vmem:[#allocation2 + $0x8b4] ss:$8 sps:$4 sm:$0xff]   ;;  %v4939_v22 = vld [vmem:[#allocation2 + $0x7b0] ss:$8 sps:$4 sm:$0xff]  }
 0x1ad   : > { %2956 = vmatprep.subr.bf16.mxu1 %v4878_v23  ;;  %v4942_v23 = vld [vmem:[#allocation2 + $0x8b0] ss:$8 sps:$4 sm:$0xff]  }
 0x1af   : > { %2916 = vmatpush1.bf16.msra.mxu0 %v4873_v24  ;;  %v4947_v24 = vld [vmem:[#allocation2 + $0x7a4] ss:$8 sps:$4 sm:$0xff]  }
 0x1b0   : > { %2957 = vmatpush1.bf16.msra.mxu1 %v4876_v25  ;;  %2917 = vmatprep.subr.bf16.mxu0 %v4881_v26  ;;  %v4950_v25 = vld [vmem:[#allocation2 + $0x8a4] ss:$8 sps:$4 sm:$0xff]   ;;  %v4945_v26 = vld [vmem:[#allocation2 + $0x7a0] ss:$8 sps:$4 sm:$0xff]  }
 0x1b1   : > { %2958 = vmatprep.subr.bf16.mxu1 %v4884_v28  ;;  %v4948_v28 = vld [vmem:[#allocation2 + $0x8a0] ss:$8 sps:$4 sm:$0xff]  }
 0x1b3   : > { %2918 = vmatpush1.bf16.msra.mxu0 %v4879_v29  ;;  %v4953_v29 = vld [vmem:[#allocation2 + $0x794] ss:$8 sps:$4 sm:$0xff]  }
 0x1b4   : > { %2959 = vmatpush1.bf16.msra.mxu1 %v4882_v30  ;;  %2919 = vmatprep.subr.bf16.mxu0 %v4887_v31  ;;  %v4956_v30 = vld [vmem:[#allocation2 + $0x894] ss:$8 sps:$4 sm:$0xff]   ;;  %v4951_v31 = vld [vmem:[#allocation2 + $0x790] ss:$8 sps:$4 sm:$0xff]  }
 0x1b5   : > { %2960 = vmatprep.subr.bf16.mxu1 %v4890_v32  ;;  %v4954_v32 = vld [vmem:[#allocation2 + $0x890] ss:$8 sps:$4 sm:$0xff]  }
 0x1b7   : > { %2920 = vmatpush1.bf16.msra.mxu0 %v4885_v34  ;;  %v4959_v34 = vld [vmem:[#allocation2 + $0x984] ss:$8 sps:$4 sm:$0xff]  }
 0x1b8   : > { %2961 = vmatpush1.bf16.msra.mxu1 %v4888_v35  ;;  %2921 = vmatprep.subr.bf16.mxu0 %v4893_v36  ;;  %v4962_v35 = vld [vmem:[#allocation2 + $0xa84] ss:$8 sps:$4 sm:$0xff]   ;;  %v4957_v36 = vld [vmem:[#allocation2 + $0x980] ss:$8 sps:$4 sm:$0xff]  }
 0x1b9   : > { %2962 = vmatprep.subr.bf16.mxu1 %v4896_v38  ;;  %v4960_v38 = vld [vmem:[#allocation2 + $0xa80] ss:$8 sps:$4 sm:$0xff]  }
 0x1bb   : > { %2922 = vmatpush1.bf16.msra.mxu0 %v4891_v39  ;;  %v4965_v39 = vld [vmem:[#allocation2 + $0x974] ss:$8 sps:$4 sm:$0xff]  }
 0x1bc   : > { %2963 = vmatpush1.bf16.msra.mxu1 %v4894_v40  ;;  %2923 = vmatprep.subr.bf16.mxu0 %v4899_v41  ;;  %v4968_v40 = vld [vmem:[#allocation2 + $0xa74] ss:$8 sps:$4 sm:$0xff]  }
 0x1bd   : > { %2964 = vmatprep.subr.bf16.mxu1 %v4902_v42  ;;  %v4963_v42 = vld [vmem:[#allocation2 + $0x970] ss:$8 sps:$4 sm:$0xff]  }
 0x1bf   : > { %2924 = vmatpush1.bf16.msra.mxu0 %v4897_v43  ;;  %v4966_v43 = vld [vmem:[#allocation2 + $0xa70] ss:$8 sps:$4 sm:$0xff]  }
 0x1c0   : > { %2965 = vmatpush1.bf16.msra.mxu1 %v4900_v44  ;;  %2925 = vmatprep.subr.bf16.mxu0 %v4905_v45  ;;  %v4971_v44 = vld [vmem:[#allocation2 + $0x964] ss:$8 sps:$4 sm:$0xff]  }
 0x1c1   : > { %2966 = vmatprep.subr.bf16.mxu1 %v4908_v46  ;;  %v4974_v46 = vld [vmem:[#allocation2 + $0xa64] ss:$8 sps:$4 sm:$0xff]  }
 0x1c2   : > { %v1245_v52 = vpop.f32.mrf.mxu0 }
 0x1c3   : > { %v1286_v53 = vpop.f32.mrf.mxu1  ;;  %2926 = vmatpush1.bf16.msra.mxu0 %v4903_v47 }
 0x1c4   : > { %v5394_v55 = vadd.f32 %v1286_v53, %v1245_v52  ;;  %2967 = vmatpush1.bf16.msra.mxu1 %v4906_v48  ;;  %v1247_v56 = vpop.f32.mrf.mxu0  ;;  %2927 = vmatprep.subr.bf16.mxu0 %v4911_v49  ;;  %v4969_v48 = vld [vmem:[#allocation2 + $0x960] ss:$8 sps:$4 sm:$0xff]   ;;  %v4980_v53 = vld [vmem:[#allocation2 + $0xa54] ss:$8 sps:$4 sm:$0xff]  }
 0x1c5   : > { %v1288_v60 = vpop.f32.mrf.mxu1  ;;  %2968 = vmatprep.subr.bf16.mxu1 %v4914_v50  ;;  %v4972_v49 = vld [vmem:[#allocation2 + $0xa60] ss:$8 sps:$4 sm:$0xff]   ;;  %v4977_v50 = vld [vmem:[#allocation2 + $0x954] ss:$8 sps:$4 sm:$0xff]  }
 0x1c6   : > { %v5396_v62 = vadd.f32 %v1288_v60, %v1247_v56  ;;  %v1249_v63 = vpop.f32.mrf.mxu0  ;;  %v4978_v56 = vld [vmem:[#allocation2 + $0xa50] ss:$8 sps:$4 sm:$0xff]   ;;  %v4981_v60 = vld [vmem:[#allocation2 + $0x940] ss:$8 sps:$4 sm:$0xff]  }
 0x1c7   : > { %v1290_v0 = vpop.f32.mrf.mxu1  ;;  %2928 = vmatpush2.bf16.msra.mxu0 %v4909_v54  ;;  %v4975_v54 = vld [vmem:[#allocation2 + $0x950] ss:$8 sps:$4 sm:$0xff]   ;;  %v4989_v63 = vld [vmem:[#allocation2 + $0x934] ss:$8 sps:$4 sm:$0xff]  }
 0x1c8   : > { %2969 = vmatpush2.bf16.msra.mxu1 %v4912_v58  ;;  %v1250_v2 = vpop.f32.mrf.mxu0  ;;  %2929 = vmatprep.subr.bf16.mxu0 %v4917_v59  ;;  %v4983_v58 = vld [vmem:[#allocation2 + $0x944] ss:$8 sps:$4 sm:$0xff]   ;;  %v4992_v0 = vld [vmem:[#allocation2 + $0xa34] ss:$8 sps:$4 sm:$0xff]  }
 0x1c9   : > { %v1291_v8 = vpop.f32.mrf.mxu1  ;;  %2970 = vmatprep.subr.bf16.mxu1 %v4920_v61  ;;  %v4986_v59 = vld [vmem:[#allocation2 + $0xa44] ss:$8 sps:$4 sm:$0xff]   ;;  %v4984_v61 = vld [vmem:[#allocation2 + $0xa40] ss:$8 sps:$4 sm:$0xff]   ;;  %v4990_v2 = vld [vmem:[#allocation2 + $0xa30] ss:$8 sps:$4 sm:$0xff]  }
 0x1ca   : > { %v4993_v8 = vld [vmem:[#allocation2 + $0x920] ss:$8 sps:$4 sm:$0xff]  }
 0x1cb   : > { %2930 = vmatpush2.bf16.msra.mxu0 %v4915_v1  ;;  %v4987_v1 = vld [vmem:[#allocation2 + $0x930] ss:$8 sps:$4 sm:$0xff]  }
 0x1cc   : > { %2971 = vmatpush2.bf16.msra.mxu1 %v4918_v4  ;;  %2931 = vmatprep.subr.bf16.mxu0 %v4923_v7  ;;  %v4995_v4 = vld [vmem:[#allocation2 + $0x924] ss:$8 sps:$4 sm:$0xff]  }
 0x1cd   : > { %2972 = vmatprep.subr.bf16.mxu1 %v4926_v33  ;;  %v4998_v7 = vld [vmem:[#allocation2 + $0xa24] ss:$8 sps:$4 sm:$0xff]   ;;  %v4996_v33 = vld [vmem:[#allocation2 + $0xa20] ss:$8 sps:$4 sm:$0xff]  }
 0x1cf   : > { %2932 = vmatpush2.bf16.msra.mxu0 %v4921_v51  ;;  %v5001_v51 = vld [vmem:[#allocation2 + $0x914] ss:$8 sps:$4 sm:$0xff]  }
 0x1d0   : > { %2973 = vmatpush2.bf16.msra.mxu1 %v4924_v10  ;;  %2933 = vmatprep.subr.bf16.mxu0 %v4929_v11  ;;  %v5004_v10 = vld [vmem:[#allocation2 + $0xa14] ss:$8 sps:$4 sm:$0xff]  }
 0x1d1   : > { %2974 = vmatprep.subr.bf16.mxu1 %v4932_v12  ;;  %v2339_v11 = vld [vmem:[#allocation2 + $0xa90] sm:$0x33] }
 0x1d2   : > { %v4999_v12 = vld [vmem:[#allocation2 + $0x910] ss:$8 sps:$4 sm:$0xff]  }
 0x1d3   : > { %2934 = vmatpush2.bf16.msra.mxu0 %v4927_v37  ;;  %v5002_v37 = vld [vmem:[#allocation2 + $0xa10] ss:$8 sps:$4 sm:$0xff]  }
 0x1d4   : > { %2975 = vmatpush2.bf16.msra.mxu1 %v4930_v13  ;;  %2935 = vmatprep.subr.bf16.mxu0 %v4935_v14  ;;  %v5007_v13 = vld [vmem:[#allocation2 + $0xa04] ss:$8 sps:$4 sm:$0xff]   ;;  %v4372_v14 = vcombine.high %v2339_v11, %v2339_v11 }
 0x1d5   : > { %2976 = vmatprep.subr.bf16.mxu1 %v4938_v15  ;;  %v4371_v15 = vcombine.low %v2339_v11, %v2339_v11  ;;  %v5067_v11 = vld [vmem:[#allocation2 + $0xbe8] ss:$8 sps:$4 sm:$0xff]  }
 0x1d7   : > { %2936 = vmatpush2.bf16.msra.mxu0 %v4933_v16 }
 0x1d8   : > { %2977 = vmatpush2.bf16.msra.mxu1 %v4936_v18  ;;  %2937 = vmatprep.subr.bf16.mxu0 %v4941_v20  ;;  %v5005_v20 = vld [vmem:[#allocation2 + $0xa00] ss:$8 sps:$4 sm:$0xff]  }
 0x1d9   : > { %2978 = vmatprep.subr.bf16.mxu1 %v4944_v21 }
 0x1db   : > { %2938 = vmatpush2.bf16.msra.mxu0 %v4939_v22  ;;  %v5012_v22 = vld [vmem:[#allocation2 + $0x9f4] ss:$8 sps:$4 sm:$0xff]  }
 0x1dc   : > { %2979 = vmatpush2.bf16.msra.mxu1 %v4942_v23  ;;  %2939 = vmatprep.subr.bf16.mxu0 %v4947_v24 }
 0x1dd   : > { %2980 = vmatprep.subr.bf16.mxu1 %v4950_v25  ;;  %v2906_v25 = vsel %vm1204_vm4, %v4371_v15, 0  ;;  %v5070_v15 = vld [vmem:[#allocation2 + $0xb68] ss:$8 sps:$4 sm:$0xff]  }
 0x1df   : > { %2940 = vmatpush2.bf16.msra.mxu0 %v4945_v26  ;;  %v5015_v26 = vld [vmem:[#allocation2 + $0xb0c] ss:$8 sps:$4 sm:$0xff]  }
 0x1e0   : > { %2981 = vmatpush2.bf16.msra.mxu1 %v4948_v28  ;;  %2941 = vmatprep.subr.bf16.mxu0 %v4953_v29 }
 0x1e1   : > { %2982 = vmatprep.subr.bf16.mxu1 %v4956_v30 }
 0x1e3   : > { %2942 = vmatpush2.bf16.msra.mxu0 %v4951_v31  ;;  %v5013_v31 = vld [vmem:[#allocation2 + $0xb08] ss:$8 sps:$4 sm:$0xff]  }
 0x1e4   : > { %2983 = vmatpush2.bf16.msra.mxu1 %v4954_v32  ;;  %2993 = vmatprep.subr.bf16.mxu0 %v4959_v34  ;;  %v5018_v32 = vld [vmem:[#allocation2 + $0x9e4] ss:$8 sps:$4 sm:$0xff]  }
 0x1e5   : > { %3034 = vmatprep.subr.bf16.mxu1 %v4962_v35  ;;  %v5021_v34 = vld [vmem:[#allocation2 + $0xafc] ss:$8 sps:$4 sm:$0xff]   ;;  %v5019_v35 = vld [vmem:[#allocation2 + $0xaf8] ss:$8 sps:$4 sm:$0xff]  }
 0x1e6   : > { %2944 = vmatmul.mubr.bf16.vlgmr.msra.gmra.mxu0 %v5351_v5 }
 0x1e7   : > { %v5399_v41 = vpop.f32.mrf.mxu1  ;;  %2985 = vmatmul.mubr.bf16.vlgmr.msra.gmra.mxu1 %v5355_v9  ;;  %2994 = vmatpush1.bf16.msra.mxu0 %v4957_v36  ;;  %v5024_v36 = vld [vmem:[#allocation2 + $0x9d4] ss:$8 sps:$4 sm:$0xff]  }
 0x1e8   : > { %3025 = vmatprep.mubr.bf16.mxu0 %v5361_v17  ;;  %3035 = vmatpush1.bf16.msra.mxu1 %v4960_v38  ;;  %v5027_v38 = vld [vmem:[#allocation2 + $0xaec] ss:$8 sps:$4 sm:$0xff]  }
 0x1e9   : > { %4374 = vmatprep.mubr.msk.bf16.mxu1 %vm1200_vm3, %v5363_v19  ;;  %v5405_v45 = vpop.f32.mrf.mxu1  ;;  %2995 = vmatprep.subr.bf16.mxu0 %v4965_v39  ;;  %v5022_v39 = vld [vmem:[#allocation2 + $0x9d0] ss:$8 sps:$4 sm:$0xff]  }
 0x1ea   : > { %3036 = vmatprep.subr.bf16.mxu1 %v4968_v40  ;;  %v5025_v40 = vld [vmem:[#allocation2 + $0xae8] ss:$8 sps:$4 sm:$0xff]  }
 0x1eb   : > { %v1372_v47 = vpop.f32.mrf.mxu1  ;;  %2996 = vmatpush1.bf16.msra.mxu0 %v4963_v42  ;;  %v5033_v42 = vld [vmem:[#allocation2 + $0xadc] ss:$8 sps:$4 sm:$0xff]  }
 0x1ec   : > { %3037 = vmatpush1.bf16.msra.mxu1 %v4966_v43  ;;  %2997 = vmatprep.subr.bf16.mxu0 %v4971_v44  ;;  %v5028_v43 = vld [vmem:[#allocation2 + $0x9c0] ss:$8 sps:$4 sm:$0xff]  }
 0x1ed   : > { %v1373_v52 = vpop.f32.mrf.mxu1  ;;  %3038 = vmatprep.subr.bf16.mxu1 %v4974_v46  ;;  %v5031_v44 = vld [vmem:[#allocation2 + $0xad8] ss:$8 sps:$4 sm:$0xff]   ;;  %v5037_v47 = vld [vmem:[#allocation2 + $0xac8] ss:$8 sps:$4 sm:$0xff]  }
 0x1ee   : > { %v5034_v46 = vld [vmem:[#allocation2 + $0x9b0] ss:$8 sps:$4 sm:$0xff]  }
 0x1ef   : > { %2998 = vmatpush1.bf16.msra.mxu0 %v4969_v48  ;;  %v5042_v48 = vld [vmem:[#allocation2 + $0x9a4] ss:$8 sps:$4 sm:$0xff]   ;;  %v5043_v52 = vld [vmem:[#allocation2 + $0xab8] ss:$8 sps:$4 sm:$0xff]  }
 0x1f0   : > { %3039 = vmatpush1.bf16.msra.mxu1 %v4972_v49  ;;  %2999 = vmatprep.subr.bf16.mxu0 %v4977_v50  ;;  %v5045_v49 = vld [vmem:[#allocation2 + $0xabc] ss:$8 sps:$4 sm:$0xff]   ;;  %v5040_v50 = vld [vmem:[#allocation2 + $0x9a0] ss:$8 sps:$4 sm:$0xff]  }
 0x1f1   : > { %3040 = vmatprep.subr.bf16.mxu1 %v4980_v53  ;;  %v5048_v53 = vld [vmem:[#allocation2 + $0x994] ss:$8 sps:$4 sm:$0xff]  }
 0x1f3   : > { %3000 = vmatpush1.bf16.msra.mxu0 %v4975_v54  ;;  %v5051_v54 = vld [vmem:[#allocation2 + $0xaac] ss:$8 sps:$4 sm:$0xff]  }
 0x1f4   : > { %3041 = vmatpush1.bf16.msra.mxu1 %v4978_v56  ;;  %3001 = vmatprep.subr.bf16.mxu0 %v4983_v58  ;;  %v5046_v56 = vld [vmem:[#allocation2 + $0x990] ss:$8 sps:$4 sm:$0xff]  }
 0x1f5   : > { %3042 = vmatprep.subr.bf16.mxu1 %v4986_v59  ;;  %v5049_v58 = vld [vmem:[#allocation2 + $0xaa8] ss:$8 sps:$4 sm:$0xff]   ;;  %v5057_v59 = vld [vmem:[#allocation2 + $0xc0c] ss:$8 sps:$4 sm:$0xff]  }
 0x1f7   : > { %3002 = vmatpush1.bf16.msra.mxu0 %v4981_v60  ;;  %v5054_v60 = vld [vmem:[#allocation2 + $0xa9c] ss:$8 sps:$4 sm:$0xff]  }
 0x1f8   : > { %3043 = vmatpush1.bf16.msra.mxu1 %v4984_v61  ;;  %3003 = vmatprep.subr.bf16.mxu0 %v4989_v63  ;;  %v5055_v61 = vld [vmem:[#allocation2 + $0xc08] ss:$8 sps:$4 sm:$0xff]   ;;  %v5052_v63 = vld [vmem:[#allocation2 + $0xa98] ss:$8 sps:$4 sm:$0xff]  }
 0x1f9   : > { %3044 = vmatprep.subr.bf16.mxu1 %v4992_v0  ;;  %v5063_v0 = vld [vmem:[#allocation2 + $0xbfc] ss:$8 sps:$4 sm:$0xff]  }
 0x1fb   : > { %3004 = vmatpush1.bf16.msra.mxu0 %v4987_v1  ;;  %v5060_v1 = vld [vmem:[#allocation2 + $0xb8c] ss:$8 sps:$4 sm:$0xff]  }
 0x1fc   : > { %3045 = vmatpush1.bf16.msra.mxu1 %v4990_v2  ;;  %3005 = vmatprep.subr.bf16.mxu0 %v4995_v4  ;;  %v5061_v4 = vld [vmem:[#allocation2 + $0xbf8] ss:$8 sps:$4 sm:$0xff]  }
 0x1fd   : > { %3046 = vmatprep.subr.bf16.mxu1 %v4998_v7  ;;  %v5058_v7 = vld [vmem:[#allocation2 + $0xb88] ss:$8 sps:$4 sm:$0xff]  }
 0x1ff   : > { %3006 = vmatpush1.bf16.msra.mxu0 %v4993_v8  ;;  %v5069_v8 = vld [vmem:[#allocation2 + $0xbec] ss:$8 sps:$4 sm:$0xff]  }
 0x200   : > { %3047 = vmatpush1.bf16.msra.mxu1 %v4996_v33  ;;  %3007 = vmatprep.subr.bf16.mxu0 %v5001_v51  ;;  %v5066_v51 = vld [vmem:[#allocation2 + $0xb7c] ss:$8 sps:$4 sm:$0xff]  }
 0x201   : > { %3048 = vmatprep.subr.bf16.mxu1 %v5004_v10 }
 0x202   : > { %v1327_v16 = vpop.f32.mrf.mxu0 }
 0x203   : > { %v1328_v18 = vadd.f32 %v1327_v16, %v5394_v55  ;;  %3008 = vmatpush1.bf16.msra.mxu0 %v4999_v12  ;;  %v5010_v55 = vld [vmem:[#allocation2 + $0x9f0] ss:$8 sps:$4 sm:$0xff]   ;;  %v5081_v16 = vld [vmem:[#allocation2 + $0xbcc] ss:$8 sps:$4 sm:$0xff]  }
 0x204   : > { %3049 = vmatpush1.bf16.msra.mxu1 %v5002_v37  ;;  %v1329_v21 = vpop.f32.mrf.mxu0  ;;  %3009 = vmatprep.subr.bf16.mxu0 %v5007_v13  ;;  %v5064_v12 = vld [vmem:[#allocation2 + $0xb78] ss:$8 sps:$4 sm:$0xff]   ;;  %v5075_v37 = vld [vmem:[#allocation2 + $0xbdc] ss:$8 sps:$4 sm:$0xff]  }
 0x205   : > { %v5409_v23 = vadd.f32 %v5399_v41, %v1328_v18  ;;  %v1330_v24 = vadd.f32 %v1329_v21, %v5396_v62  ;;  %4373 = vmatprep.subr.msk.bf16.mxu1 %vm1204_vm4, %v4372_v14  ;;  %v5016_v62 = vld [vmem:[#allocation2 + $0x9e0] ss:$8 sps:$4 sm:$0xff]   ;;  %v5030_v41 = vld [vmem:[#allocation2 + $0x9c4] ss:$8 sps:$4 sm:$0xff]  }
 0x206   : > { %v1331_v28 = vpop.f32.mrf.mxu0  ;;  %v5072_v14 = vld [vmem:[#allocation2 + $0xb6c] ss:$8 sps:$4 sm:$0xff]   ;;  %v5078_v18 = vld [vmem:[#allocation2 + $0xb5c] ss:$8 sps:$4 sm:$0xff]   ;;  %v5076_v21 = vld [vmem:[#allocation2 + $0xb58] ss:$8 sps:$4 sm:$0xff]  }
 0x207   : > { %v5415_v29 = vadd.f32 %v5405_v45, %v1330_v24  ;;  %3010 = vmatpush2.bf16.msra.mxu0 %v5005_v20  ;;  %v5036_v45 = vld [vmem:[#allocation2 + $0x9b4] ss:$8 sps:$4 sm:$0xff]   ;;  %v5079_v20 = vld [vmem:[#allocation2 + $0xbc8] ss:$8 sps:$4 sm:$0xff]  }
 0x208   : > { %3065 = vmatpush2.bf16.msra.mxu1 %v2906_v25  ;;  %v1332_v30 = vpop.f32.mrf.mxu0  ;;  %3011 = vmatprep.subr.bf16.mxu0 %v5012_v22  ;;  %v5087_v22 = vld [vmem:[#allocation2 + $0xbbc] ss:$8 sps:$4 sm:$0xff]   ;;  %v5084_v24 = vld [vmem:[#allocation2 + $0xb4c] ss:$8 sps:$4 sm:$0xff]   ;;  %v5085_v25 = vld [vmem:[#allocation2 + $0xbb8] ss:$8 sps:$4 sm:$0xff]  }
 0x209   : > { %3762 = vmatprep.subr.bf16.mxu1 %v5015_v26  ;;  %v5082_v26 = vld [vmem:[#allocation2 + $0xb48] ss:$8 sps:$4 sm:$0xff]   ;;  %v5093_v28 = vld [vmem:[#allocation2 + $0xbac] ss:$8 sps:$4 sm:$0xff]  }
 0x20a   : > { %v5091_v30 = vld [vmem:[#allocation2 + $0xba8] ss:$8 sps:$4 sm:$0xff]  }
 0x20b   : > { %3067 = vmatmul.mubr.bf16.vlgmr.msra.gmra.mxu1 %v5372_v57  ;;  %3012 = vmatpush2.bf16.msra.mxu0 %v5010_v55  ;;  %v5090_v55 = vld [vmem:[#allocation2 + $0xb3c] ss:$8 sps:$4 sm:$0xff]  }
 0x20c   : > { %3763 = vmatpush1.bf16.msra.mxu1 %v5013_v31  ;;  %3794 = vmatprep.mubr.bf16.mxu1 %v5349_v3  ;;  %v5039_v3 = vld [vmem:[#allocation2 + $0xacc] ss:$8 sps:$4 sm:$0xff]   ;;  %v5088_v31 = vld [vmem:[#allocation2 + $0xb38] ss:$8 sps:$4 sm:$0xff]  }
 0x20d   : > { %3013 = vmatprep.subr.bf16.mxu0 %v5018_v32  ;;  %3764 = vmatprep.subr.bf16.mxu1 %v5021_v34  ;;  %v5099_v32 = vld [vmem:[#allocation2 + $0xb9c] ss:$8 sps:$4 sm:$0xff]   ;;  %v5096_v34 = vld [vmem:[#allocation2 + $0xb2c] ss:$8 sps:$4 sm:$0xff]  }
 0x20f   : > { %3014 = vmatpush2.bf16.msra.mxu0 %v5016_v62  ;;  %v5097_v62 = vld [vmem:[#allocation2 + $0xb98] ss:$8 sps:$4 sm:$0xff]  }
 0x210   : > { %3765 = vmatpush1.bf16.msra.mxu1 %v5019_v35  ;;  %3015 = vmatprep.subr.bf16.mxu0 %v5024_v36  ;;  %v5094_v35 = vld [vmem:[#allocation2 + $0xb28] ss:$8 sps:$4 sm:$0xff]   ;;  %v5105_v36 = vld [vmem:[#allocation2 + $0xc8c] ss:$8 sps:$4 sm:$0xff]  }
 0x211   : > { %3766 = vmatprep.subr.bf16.mxu1 %v5027_v38  ;;  %v5102_v38 = vld [vmem:[#allocation2 + $0xb1c] ss:$8 sps:$4 sm:$0xff]  }
 0x213   : > { %3016 = vmatpush2.bf16.msra.mxu0 %v5022_v39 }
 0x214   : > { %3767 = vmatpush1.bf16.msra.mxu1 %v5025_v40  ;;  %3017 = vmatprep.subr.bf16.mxu0 %v5030_v41  ;;  %v5103_v41 = vld [vmem:[#allocation2 + $0xc88] ss:$8 sps:$4 sm:$0xff]  }
 0x215   : > { %3768 = vmatprep.subr.bf16.mxu1 %v5033_v42 }
 0x217   : > { %3018 = vmatpush2.bf16.msra.mxu0 %v5028_v43  ;;  %v5100_v43 = vld [vmem:[#allocation2 + $0xb18] ss:$8 sps:$4 sm:$0xff]  }
 0x218   : > { %3769 = vmatpush1.bf16.msra.mxu1 %v5031_v44  ;;  %3019 = vmatprep.subr.bf16.mxu0 %v5036_v45  ;;  %v5108_v44 = vld [vmem:[#allocation2 + $0xc7c] ss:$8 sps:$4 sm:$0xff]  }
 0x219   : > { %3770 = vmatprep.subr.bf16.mxu1 %v5039_v3  ;;  %v5111_v3 = vld [vmem:[#allocation2 + $0xd0c] ss:$8 sps:$4 sm:$0xff]  }
 0x21b   : > { %3020 = vmatpush2.bf16.msra.mxu0 %v5034_v46 }
 0x21c   : > { %3771 = vmatpush1.bf16.msra.mxu1 %v5037_v47  ;;  %3021 = vmatprep.subr.bf16.mxu0 %v5042_v48  ;;  %v5106_v47 = vld [vmem:[#allocation2 + $0xc78] ss:$8 sps:$4 sm:$0xff]  }
 0x21d   : > { %3772 = vmatprep.subr.bf16.mxu1 %v5045_v49  ;;  %v5109_v49 = vld [vmem:[#allocation2 + $0xd08] ss:$8 sps:$4 sm:$0xff]  }
 0x21f   : > { %3022 = vmatpush2.bf16.msra.mxu0 %v5040_v50  ;;  %v5114_v50 = vld [vmem:[#allocation2 + $0xc6c] ss:$8 sps:$4 sm:$0xff]  }
 0x220   : > { %3773 = vmatpush1.bf16.msra.mxu1 %v5043_v52  ;;  %3023 = vmatprep.subr.bf16.mxu0 %v5048_v53  ;;  %v5117_v52 = vld [vmem:[#allocation2 + $0xcfc] ss:$8 sps:$4 sm:$0xff]   ;;  %v5112_v53 = vld [vmem:[#allocation2 + $0xc68] ss:$8 sps:$4 sm:$0xff]  }
 0x221   : > { %3774 = vmatprep.subr.bf16.mxu1 %v5051_v54  ;;  %v5115_v54 = vld [vmem:[#allocation2 + $0xcf8] ss:$8 sps:$4 sm:$0xff]  }
 0x223   : > { %3024 = vmatpush2.bf16.msra.mxu0 %v5046_v56  ;;  %v5120_v56 = vld [vmem:[#allocation2 + $0xc5c] ss:$8 sps:$4 sm:$0xff]  }
 0x224   : > { %3775 = vmatpush1.bf16.msra.mxu1 %v5049_v58  ;;  %3803 = vmatprep.subr.bf16.mxu0 %v5057_v59  ;;  %v5123_v58 = vld [vmem:[#allocation2 + $0xcec] ss:$8 sps:$4 sm:$0xff]   ;;  %v5118_v59 = vld [vmem:[#allocation2 + $0xc58] ss:$8 sps:$4 sm:$0xff]  }
 0x225   : > { %3776 = vmatprep.subr.bf16.mxu1 %v5054_v60  ;;  %v5121_v60 = vld [vmem:[#allocation2 + $0xce8] ss:$8 sps:$4 sm:$0xff]  }
 0x226   : > { %3026 = vmatmul.mubr.bf16.vlgmr.msra.gmra.mxu0 %v5379_v27 }
 0x227   : > { %v2094_v2 = vpop.f32.mrf.mxu1  ;;  %3804 = vmatpush1.bf16.msra.mxu0 %v5055_v61  ;;  %3835 = vmatprep.mubr.bf16.mxu0 %v5353_v6  ;;  %v5073_v6 = vld [vmem:[#allocation2 + $0xbd8] ss:$8 sps:$4 sm:$0xff]   ;;  %v5126_v61 = vld [vmem:[#allocation2 + $0xc4c] ss:$8 sps:$4 sm:$0xff]  }
 0x228   : > { %3777 = vmatpush1.bf16.msra.mxu1 %v5052_v63  ;;  %3805 = vmatprep.subr.bf16.mxu0 %v5063_v0  ;;  %v5129_v63 = vld [vmem:[#allocation2 + $0xcdc] ss:$8 sps:$4 sm:$0xff]   ;;  %v5127_v0 = vld [vmem:[#allocation2 + $0xcd8] ss:$8 sps:$4 sm:$0xff]  }
 0x229   : > { %v2096_v33 = vpop.f32.mrf.mxu1  ;;  %3778 = vmatprep.subr.bf16.mxu1 %v5060_v1  ;;  %v5132_v1 = vld [vmem:[#allocation2 + $0xc3c] ss:$8 sps:$4 sm:$0xff]  }
 0x22b   : > { %v2098_v10 = vpop.f32.mrf.mxu1  ;;  %3806 = vmatpush1.bf16.msra.mxu0 %v5061_v4  ;;  %v5133_v4 = vld [vmem:[#allocation2 + $0xcc8] ss:$8 sps:$4 sm:$0xff]  }
 0x22c   : > { %3779 = vmatpush2.bf16.msra.mxu1 %v5058_v7  ;;  %3807 = vmatprep.subr.bf16.mxu0 %v5069_v8  ;;  %v5138_v7 = vld [vmem:[#allocation2 + $0xc2c] ss:$8 sps:$4 sm:$0xff]   ;;  %v5141_v8 = vld [vmem:[#allocation2 + $0xcbc] ss:$8 sps:$4 sm:$0xff]  }
 0x22d   : > { %v2099_v13 = vpop.f32.mrf.mxu1  ;;  %3780 = vmatprep.subr.bf16.mxu1 %v5066_v51  ;;  %v5139_v51 = vld [vmem:[#allocation2 + $0xcb8] ss:$8 sps:$4 sm:$0xff]   ;;  %v5144_v10 = vld [vmem:[#allocation2 + $0xc1c] ss:$8 sps:$4 sm:$0xff]  }
 0x22e   : > { %v5153_v13 = vld [vmem:[#allocation2 + $0xe0c] ss:$8 sps:$4 sm:$0xff]  }
 0x22f   : > { %3808 = vmatpush1.bf16.msra.mxu0 %v5067_v11  ;;  %v5147_v11 = vld [vmem:[#allocation2 + $0xcac] ss:$8 sps:$4 sm:$0xff]  }
 0x230   : > { %3781 = vmatpush2.bf16.msra.mxu1 %v5064_v12  ;;  %3809 = vmatprep.subr.bf16.mxu0 %v5075_v37  ;;  %v5142_v12 = vld [vmem:[#allocation2 + $0xc18] ss:$8 sps:$4 sm:$0xff]   ;;  %v5145_v37 = vld [vmem:[#allocation2 + $0xca8] ss:$8 sps:$4 sm:$0xff]  }
 0x231   : > { %3782 = vmatprep.subr.bf16.mxu1 %v5072_v14  ;;  %v5150_v14 = vld [vmem:[#allocation2 + $0xc9c] ss:$8 sps:$4 sm:$0xff]  }
 0x233   : > { %3810 = vmatpush1.bf16.msra.mxu0 %v5073_v6  ;;  %v5151_v6 = vld [vmem:[#allocation2 + $0xe08] ss:$8 sps:$4 sm:$0xff]  }
 0x234   : > { %3783 = vmatpush2.bf16.msra.mxu1 %v5070_v15  ;;  %3811 = vmatprep.subr.bf16.mxu0 %v5081_v16  ;;  %v5148_v15 = vld [vmem:[#allocation2 + $0xc98] ss:$8 sps:$4 sm:$0xff]   ;;  %v5159_v16 = vld [vmem:[#allocation2 + $0xdfc] ss:$8 sps:$4 sm:$0xff]  }
 0x235   : > { %3784 = vmatprep.subr.bf16.mxu1 %v5078_v18  ;;  %v5156_v18 = vld [vmem:[#allocation2 + $0xd8c] ss:$8 sps:$4 sm:$0xff]  }
 0x237   : > { %3812 = vmatpush1.bf16.msra.mxu0 %v5079_v20 }
 0x238   : > { %3785 = vmatpush2.bf16.msra.mxu1 %v5076_v21  ;;  %3813 = vmatprep.subr.bf16.mxu0 %v5087_v22  ;;  %v5157_v22 = vld [vmem:[#allocation2 + $0xdf8] ss:$8 sps:$4 sm:$0xff]  }
 0x239   : > { %3786 = vmatprep.subr.bf16.mxu1 %v5084_v24 }
 0x23b   : > { %3814 = vmatpush1.bf16.msra.mxu0 %v5085_v25 }
 0x23c   : > { %3787 = vmatpush2.bf16.msra.mxu1 %v5082_v26  ;;  %3815 = vmatprep.subr.bf16.mxu0 %v5093_v28  ;;  %v5154_v26 = vld [vmem:[#allocation2 + $0xd88] ss:$8 sps:$4 sm:$0xff]   ;;  %v5165_v28 = vld [vmem:[#allocation2 + $0xdec] ss:$8 sps:$4 sm:$0xff]  }
 0x23d   : > { %3788 = vmatprep.subr.bf16.mxu1 %v5090_v55 }
 0x23f   : > { %3816 = vmatpush1.bf16.msra.mxu0 %v5091_v30  ;;  %v5162_v30 = vld [vmem:[#allocation2 + $0xd7c] ss:$8 sps:$4 sm:$0xff]  }
 0x240   : > { %3789 = vmatpush2.bf16.msra.mxu1 %v5088_v31  ;;  %3817 = vmatprep.subr.bf16.mxu0 %v5099_v32 }
 0x241   : > { %3790 = vmatprep.subr.bf16.mxu1 %v5096_v34 }
 0x242   : > { %v2135_v39 = vpop.f32.mrf.mxu0 }
 0x243   : > { %v5421_v40 = vadd.f32 %v2135_v39, %v2094_v2  ;;  %3818 = vmatpush1.bf16.msra.mxu0 %v5097_v62  ;;  %v5130_v2 = vld [vmem:[#allocation2 + $0xc38] ss:$8 sps:$4 sm:$0xff]   ;;  %v5163_v62 = vld [vmem:[#allocation2 + $0xde8] ss:$8 sps:$4 sm:$0xff]   ;;  %v5171_v39 = vld [vmem:[#allocation2 + $0xddc] ss:$8 sps:$4 sm:$0xff]  }
 0x244   : > { %3791 = vmatpush2.bf16.msra.mxu1 %v5094_v35  ;;  %v2137_v42 = vpop.f32.mrf.mxu0  ;;  %3819 = vmatprep.subr.bf16.mxu0 %v5105_v36 }
 0x245   : > { %v5423_v45 = vadd.f32 %v2137_v42, %v2096_v33  ;;  %3792 = vmatprep.subr.bf16.mxu1 %v5102_v38  ;;  %v5136_v33 = vld [vmem:[#allocation2 + $0xc28] ss:$8 sps:$4 sm:$0xff]   ;;  %v5160_v38 = vld [vmem:[#allocation2 + $0xd78] ss:$8 sps:$4 sm:$0xff]  }
 0x246   : > { %v2139_v46 = vpop.f32.mrf.mxu0 }
 0x247   : > { %3820 = vmatpush2.bf16.msra.mxu0 %v5103_v41  ;;  %v5168_v41 = vld [vmem:[#allocation2 + $0xd6c] ss:$8 sps:$4 sm:$0xff]   ;;  %v5175_v46 = vld [vmem:[#allocation2 + $0xdc8] ss:$8 sps:$4 sm:$0xff]  }
 0x248   : > { %3793 = vmatpush2.bf16.msra.mxu1 %v5100_v43  ;;  %v2140_v48 = vpop.f32.mrf.mxu0  ;;  %3821 = vmatprep.subr.bf16.mxu0 %v5108_v44  ;;  %v5169_v43 = vld [vmem:[#allocation2 + $0xdd8] ss:$8 sps:$4 sm:$0xff]   ;;  %v5166_v44 = vld [vmem:[#allocation2 + $0xd68] ss:$8 sps:$4 sm:$0xff]  }
 0x249   : > { %3844 = vmatprep.subr.bf16.mxu1 %v5111_v3  ;;  %v5174_v3 = vld [vmem:[#allocation2 + $0xd5c] ss:$8 sps:$4 sm:$0xff]  }
 0x24a   : > { %v5183_v48 = vld [vmem:[#allocation2 + $0xdbc] ss:$8 sps:$4 sm:$0xff]  }
 0x24b   : > { %3795 = vmatmul.mubr.bf16.vlgmr.msra.gmra.mxu1 %v5351_v5  ;;  %3822 = vmatpush2.bf16.msra.mxu0 %v5106_v47  ;;  %v5124_v5 = vld [vmem:[#allocation2 + $0xc48] ss:$8 sps:$4 sm:$0xff]   ;;  %v5172_v47 = vld [vmem:[#allocation2 + $0xd58] ss:$8 sps:$4 sm:$0xff]  }
 0x24c   : > { %3845 = vmatpush1.bf16.msra.mxu1 %v5109_v49  ;;  %3876 = vmatprep.mubr.bf16.mxu1 %v5361_v17  ;;  %v5135_v17 = vld [vmem:[#allocation2 + $0xccc] ss:$8 sps:$4 sm:$0xff]  }
 0x24d   : > { %3823 = vmatprep.subr.bf16.mxu0 %v5114_v50  ;;  %3846 = vmatprep.subr.bf16.mxu1 %v5117_v52  ;;  %v5180_v49 = vld [vmem:[#allocation2 + $0xd4c] ss:$8 sps:$4 sm:$0xff]   ;;  %v5181_v50 = vld [vmem:[#allocation2 + $0xdb8] ss:$8 sps:$4 sm:$0xff]   ;;  %v5178_v52 = vld [vmem:[#allocation2 + $0xd48] ss:$8 sps:$4 sm:$0xff]  }
 0x24f   : > { %3824 = vmatpush2.bf16.msra.mxu0 %v5112_v53  ;;  %v5189_v53 = vld [vmem:[#allocation2 + $0xdac] ss:$8 sps:$4 sm:$0xff]  }
 0x250   : > { %3847 = vmatpush1.bf16.msra.mxu1 %v5115_v54  ;;  %3825 = vmatprep.subr.bf16.mxu0 %v5120_v56  ;;  %v5186_v54 = vld [vmem:[#allocation2 + $0xd3c] ss:$8 sps:$4 sm:$0xff]   ;;  %v5187_v56 = vld [vmem:[#allocation2 + $0xda8] ss:$8 sps:$4 sm:$0xff]  }
 0x251   : > { %3848 = vmatprep.subr.bf16.mxu1 %v5123_v58  ;;  %v5184_v58 = vld [vmem:[#allocation2 + $0xd38] ss:$8 sps:$4 sm:$0xff]  }
 0x253   : > { %3826 = vmatpush2.bf16.msra.mxu0 %v5118_v59  ;;  %v5195_v59 = vld [vmem:[#allocation2 + $0xd9c] ss:$8 sps:$4 sm:$0xff]  }
 0x254   : > { %3849 = vmatpush1.bf16.msra.mxu1 %v5121_v60  ;;  %3827 = vmatprep.subr.bf16.mxu0 %v5126_v61  ;;  %v5192_v60 = vld [vmem:[#allocation2 + $0xd2c] ss:$8 sps:$4 sm:$0xff]   ;;  %v3190_v61 = vld [vmem:[#allocation2 + $0xe18] sm:$0x33] }
 0x255   : > { %3850 = vmatprep.subr.bf16.mxu1 %v5129_v63  ;;  %v5193_v63 = vld [vmem:[#allocation2 + $0xd98] ss:$8 sps:$4 sm:$0xff]  }
 0x257   : > { %3828 = vmatpush2.bf16.msra.mxu0 %v5124_v5  ;;  %v5190_v5 = vld [vmem:[#allocation2 + $0xd28] ss:$8 sps:$4 sm:$0xff]  }
 0x258   : > { %3851 = vmatpush1.bf16.msra.mxu1 %v5127_v0  ;;  %3829 = vmatprep.subr.bf16.mxu0 %v5132_v1  ;;  %v4488_v0 = vcombine.high %v3190_v61, %v3190_v61  ;;  %v4487_v1 = vcombine.low %v3190_v61, %v3190_v61 }
 0x259   : > { %3852 = vmatprep.subr.bf16.mxu1 %v5135_v17  ;;  %v5198_v17 = vld [vmem:[#allocation2 + $0xd1c] ss:$8 sps:$4 sm:$0xff]  }
 0x25b   : > { %3830 = vmatpush2.bf16.msra.mxu0 %v5130_v2  ;;  %v5196_v2 = vld [vmem:[#allocation2 + $0xd18] ss:$8 sps:$4 sm:$0xff]  }
 0x25c   : > { %3853 = vmatpush1.bf16.msra.mxu1 %v5133_v4  ;;  %3831 = vmatprep.subr.bf16.mxu0 %v5138_v7  ;;  %v3757_v4 = vsel %vm1204_vm4, %v4487_v1, 0 }
 0x25d   : > { %3854 = vmatprep.subr.bf16.mxu1 %v5141_v8 }
 0x25f   : > { %3832 = vmatpush2.bf16.msra.mxu0 %v5136_v33 }
 0x260   : > { %3855 = vmatpush1.bf16.msra.mxu1 %v5139_v51  ;;  %3833 = vmatprep.subr.bf16.mxu0 %v5144_v10 }
 0x261   : > { %3856 = vmatprep.subr.bf16.mxu1 %v5147_v11 }
 0x263   : > { %3834 = vmatpush2.bf16.msra.mxu0 %v5142_v12 }
 0x264   : > { %3857 = vmatpush1.bf16.msra.mxu1 %v5145_v37  ;;  %3885 = vmatprep.subr.bf16.mxu0 %v5153_v13 }
 0x265   : > { %3858 = vmatprep.subr.bf16.mxu1 %v5150_v14 }
 0x266   : > { %v2217_v20 = vpop.f32.mrf.mxu0  ;;  %3836 = vmatmul.mubr.bf16.vlgmr.msra.gmra.mxu0 %v5355_v9 }
 0x267   : > { %v2176_v21 = vpop.f32.mrf.mxu1  ;;  %3886 = vmatpush1.bf16.msra.mxu0 %v5151_v6  ;;  %4490 = vmatprep.mubr.msk.bf16.mxu0 %vm1200_vm3, %v5363_v19 }
 0x268   : > { %v2177_v24 = vadd.f32 %v2176_v21, %v5421_v40  ;;  %3859 = vmatpush1.bf16.msra.mxu1 %v5148_v15  ;;  %v2219_v25 = vpop.f32.mrf.mxu0  ;;  %3887 = vmatprep.subr.bf16.mxu0 %v5159_v16 }
 0x269   : > { %v2178_v55 = vpop.f32.mrf.mxu1  ;;  %3860 = vmatprep.subr.bf16.mxu1 %v5156_v18 }
 0x26a   : > { %v5431_v31 = vadd.f32 %v2217_v20, %v2177_v24  ;;  %v2179_v9 = vadd.f32 %v2178_v55, %v5423_v45  ;;  %v2221_v32 = vpop.f32.mrf.mxu0  ;;  %v5177_v45 = vld [vmem:[#allocation2 + $0xdcc] ss:$8 sps:$4 sm:$0xff]  }
 0x26b   : > { %v2180_v34 = vpop.f32.mrf.mxu1  ;;  %3888 = vmatpush1.bf16.msra.mxu0 %v5157_v22 }
 0x26c   : > { %v2224_v19 = vmax.f32 %v5409_v23, %v5431_v31  ;;  %v5436_v35 = vadd.f32 %v2219_v25, %v2179_v9  ;;  %3861 = vmatpush2.bf16.msra.mxu1 %v5154_v26  ;;  %v2222_v36 = vpop.f32.mrf.mxu0  ;;  %3889 = vmatprep.subr.bf16.mxu0 %v5165_v28 }
 0x26d   : > { %v2181_v40 = vpop.f32.mrf.mxu1  ;;  %3862 = vmatprep.subr.bf16.mxu1 %v5162_v30 }
 0x26e   : > { %v2225_v42 = vmax.f32 %v5415_v29, %v5436_v35 }
 0x26f   : > { %3890 = vmatpush1.bf16.msra.mxu0 %v5163_v62 }
 0x270   : > { %3863 = vmatpush2.bf16.msra.mxu1 %v5160_v38  ;;  %3891 = vmatprep.subr.bf16.mxu0 %v5171_v39 }
 0x271   : > { %3864 = vmatprep.subr.bf16.mxu1 %v5168_v41 }
 0x273   : > { %3892 = vmatpush1.bf16.msra.mxu0 %v5169_v43 }
 0x274   : > { %3865 = vmatpush2.bf16.msra.mxu1 %v5166_v44  ;;  %3893 = vmatprep.subr.bf16.mxu0 %v5177_v45 }
 0x275   : > { %3866 = vmatprep.subr.bf16.mxu1 %v5174_v3 }
 0x277   : > { %3894 = vmatpush1.bf16.msra.mxu0 %v5175_v46 }
 0x278   : > { %3867 = vmatpush2.bf16.msra.mxu1 %v5172_v47  ;;  %3895 = vmatprep.subr.bf16.mxu0 %v5183_v48 }
 0x279   : > { %3868 = vmatprep.subr.bf16.mxu1 %v5180_v49 }
 0x27b   : > { %3896 = vmatpush1.bf16.msra.mxu0 %v5181_v50 }
 0x27c   : > { %3869 = vmatpush2.bf16.msra.mxu1 %v5178_v52  ;;  %3897 = vmatprep.subr.bf16.mxu0 %v5189_v53 }
 0x27d   : > { %3870 = vmatprep.subr.bf16.mxu1 %v5186_v54 }
 0x27f   : > { %3898 = vmatpush1.bf16.msra.mxu0 %v5187_v56 }
 0x280   : > { %3871 = vmatpush2.bf16.msra.mxu1 %v5184_v58  ;;  %3899 = vmatprep.subr.bf16.mxu0 %v5195_v59 }
 0x281   : > { %3872 = vmatprep.subr.bf16.mxu1 %v5192_v60 }
 0x283   : > { %3900 = vmatpush1.bf16.msra.mxu0 %v5193_v63 }
 0x284   : > { %3873 = vmatpush2.bf16.msra.mxu1 %v5190_v5  ;;  %4489 = vmatprep.subr.msk.bf16.mxu0 %vm1204_vm4, %v4488_v0 }
 0x285   : > { %3874 = vmatprep.subr.bf16.mxu1 %v5198_v17 }
 0x287   : > { %3916 = vmatpush2.bf16.msra.mxu0 %v3757_v4 }
 0x288   : > { %3875 = vmatpush2.bf16.msra.mxu1 %v5196_v2 }
 0x28a   : > { %3918 = vmatmul.mubr.bf16.vlgmr.msra.gmra.mxu0 %v5372_v57 }
 0x28b   : > { %3877 = vmatmul.mubr.bf16.vlgmr.msra.gmra.mxu1 %v5379_v27 }
 0x2a6   : > { %v2945_v7 = vpop.f32.mrf.mxu0 }
 0x2a7   : > { %v2986_v8 = vpop.f32.mrf.mxu1 }
 0x2a8   : > { %v2987_v33 = vadd.f32 %v2986_v8, %v2945_v7  ;;  %v2947_v51 = vpop.f32.mrf.mxu0 }
 0x2a9   : > { %v2988_v10 = vpop.f32.mrf.mxu1 }
 0x2aa   : > { %v2989_v11 = vadd.f32 %v2988_v10, %v2947_v51  ;;  %v2949_v12 = vpop.f32.mrf.mxu0 }
 0x2ab   : > { %v2990_v37 = vpop.f32.mrf.mxu1 }
 0x2ac   : > { %v2950_v13 = vpop.f32.mrf.mxu0 }
 0x2ad   : > { %v2991_v14 = vpop.f32.mrf.mxu1 }
 0x2cb   : > { %v3068_v6 = vpop.f32.mrf.mxu1 }
 0x2cd   : > { %v3070_v15 = vpop.f32.mrf.mxu1 }
 0x2cf   : > { %v3072_v16 = vpop.f32.mrf.mxu1 }
 0x2d1   : > { %v3073_v18 = vpop.f32.mrf.mxu1 }
 0x2e6   : > { %v3027_v20 = vpop.f32.mrf.mxu0 }
 0x2e7   : > { %v3028_v21 = vadd.f32 %v3027_v20, %v2987_v33 }
 0x2e8   : > { %v3029_v22 = vpop.f32.mrf.mxu0 }
 0x2e9   : > { %v3069_v57 = vadd.f32 %v3068_v6, %v3028_v21  ;;  %v3030_v24 = vadd.f32 %v3029_v22, %v2989_v11 }
 0x2ea   : > { %v3031_v27 = vpop.f32.mrf.mxu0 }
 0x2eb   : > { %v3071_v25 = vadd.f32 %v3070_v15, %v3030_v24  ;;  %v3075_v26 = vmax.f32 %v2224_v19, %v3069_v57 }
 0x2ec   : > { %v3032_v28 = vpop.f32.mrf.mxu0 }
 0x2ed   : > { %v3076_v55 = vmax.f32 %v2225_v42, %v3071_v25 }
 0x30b   : > { %v3796_v30 = vpop.f32.mrf.mxu1 }
 0x30d   : > { %v3798_v9 = vpop.f32.mrf.mxu1 }
 0x30f   : > { %v3800_v32 = vpop.f32.mrf.mxu1 }
 0x311   : > { %v3801_v34 = vpop.f32.mrf.mxu1 }
 0x326   : > { %v3837_v62 = vpop.f32.mrf.mxu0 }
 0x327   : > { %v3838_v40 = vadd.f32 %v3837_v62, %v3796_v30 }
 0x328   : > { %v3839_v36 = vpop.f32.mrf.mxu0 }
 0x329   : > { %v3840_v44 = vadd.f32 %v3839_v36, %v3798_v9 }
 0x32a   : > { %v3841_v38 = vpop.f32.mrf.mxu0 }
 0x32c   : > { %v3842_v39 = vpop.f32.mrf.mxu0 }
 0x34a   : > { %v3919_v41 = vpop.f32.mrf.mxu0 }
 0x34b   : > { %v3878_v43 = vpop.f32.mrf.mxu1 }
 0x34c   : > { %v3879_v23 = vadd.f32 %v3878_v43, %v3838_v40  ;;  %v3921_v31 = vpop.f32.mrf.mxu0 }
 0x34d   : > { %v3880_v19 = vpop.f32.mrf.mxu1 }
 0x34e   : > { %v3920_v45 = vadd.f32 %v3919_v41, %v3879_v23  ;;  %v3881_v3 = vadd.f32 %v3880_v19, %v3840_v44  ;;  %v3923_v29 = vpop.f32.mrf.mxu0 }
 0x34f   : > { %v3882_v35 = vpop.f32.mrf.mxu1 }
 0x350   : > { %v3926_v42 = vmax.f32 %v3075_v26, %v3920_v45  ;;  %v3922_v46 = vadd.f32 %v3921_v31, %v3881_v3  ;;  %v3924_v47 = vpop.f32.mrf.mxu0 }
 0x351   : > { %v3883_v48 = vpop.f32.mrf.mxu1 }
 0x352   : > { %v3927_v49 = vmax.f32 %v3076_v55, %v3922_v46 }
 0x354   : > { %v4496_v50 = vpack.c.bf16 %v3927_v49, %v3926_v42 }
 0x356   : > { %3936 = vst [vmem:[%s239_s16] sm:$0xff] %v4496_v50 }
 0x357 PF: > { %s16_s18 = sadd.s32 1, %s5253_s18  }
 0x358   : > { %p13_p1 = scmp.ge.s32.totalorder %s16_s18, 4  }
 0x35a   :  { %15 = sbr.rel (!%p13_p1) target bundleno = 1 (0x1), region = 78 }
 0x35f   :  { %3958 = vsyncpa [#allocation3], 1 }
 0x360   :  { %3960 = vsyncpa [#allocation3 + $0x1], 1 }

// kernel: cnn_forward.5
= control target key start
LH: loop header
LB: loop body
LE: loop exit
PB: predicated region body
PF: predicated region fallthrough
CT: control target
= control target key end

     0   :  { %v37_v1 = vlaneseq  ;;  %v375_v6 = vmov 1966171168   ;;  %v376_v12 = vmov 0.0   ;;  %s434_s0 = inlined_call_operand.vmem [shape: bf16[2,784], index: 0, kind: input, shape index: {}]   ;;  %s435_s1 = inlined_call_operand.vmem [shape: bf16[10,784], index: 1, kind: input, shape index: {}]   ;;  %s436_s2 = inlined_call_operand.vmem [shape: f32[1,10], index: 2, kind: input, shape index: {}]   ;;  %s437_s3 = inlined_call_operand.hbm [shape: f32[2,10], index: 3, kind: output, shape index: {}]  }
   0x1   :  { %v338_v0 = vld [vmem:[%s435_s1 + $0x4] ss:$28 sps:$4 sm:$0x1f]   ;;  %v341_v3 = vld [vmem:[%s435_s1 + $0xc] ss:$28 sps:$4 sm:$0x1f]   ;;  %v35_v7 = vunpack.c.l.s4 %v375_v6 }
   0x2   :  { %v340_v2 = vld [vmem:[%s435_s1] ss:$28 sps:$4 sm:$0x1f]   ;;  %143 = vmatprep.subr.bf16.mxu0 %v338_v0  ;;  %v343_v4 = vld [vmem:[%s435_s1 + $0x8] ss:$28 sps:$4 sm:$0x1f]   ;;  %183 = vmatprep.subr.bf16.mxu1 %v341_v3 }
   0x3   :  { %144 = vmatpush1.bf16.xpose.msra.mxu0 %v340_v2  ;;  %v16_v5 = vld [vmem:[%s434_s0] sm:$0x7f]  ;;  %v38_v8 = vshrl.u32 %v37_v1, 7  ;;  %184 = vmatpush1.bf16.xpose.msra.mxu1 %v343_v4  ;;  %v347_v9 = vld [vmem:[%s435_s1 + $0x14] ss:$28 sps:$4 sm:$0x1f]   ;;  %v36_v11 = vunpack.c.0.s8 %v35_v7 }
   0x4   :  { %v33_v10 = vcombine.high %v16_v5, %v16_v5  ;;  %328 = vmatprep.subr.bf16.mxu1 %v376_v12  ;;  %223 = vmatprep.subr.bf16.mxu0 %v347_v9 }
   0x5   :  { %8 = vsyncpa [#allocation3], 0  ;;  %v39_v13 = vsub.s32 %v36_v11, %v38_v8  ;;  %v348_v19 = vld [vmem:[%s435_s1 + $0x18] ss:$28 sps:$4 sm:$0x1f]   ;;  %vm122_vm0 = vcmask 130048  }
   0x6   :  { %v345_v21 = vld [vmem:[%s435_s1 + $0x10] ss:$28 sps:$4 sm:$0x1f]   ;;  %v127_v25 = vsel %vm122_vm0, %v348_v19, 0  ;;  %vm377_vm1 = vmmov 0   ;;  %vm289_vm2 = vcmask 74752  }
   0x7   :  { %v40_v14 = vrot.slane %v16_v5, %v39_v13  ;;  %v47_v15 = vrot.slane %v33_v10, %v39_v13  ;;  %v317_v28 = vld [vmem:[%s436_s2] ss:$0 sm:$0xff]  ;;  %s378_s2 = smov [#allocation2]  }
   0x8   :  { %s309_s28 = sshll.u32 %s378_s2, 4  ;;  %s310_s28 = int_to_ptr.vmem [resolvable:$true] %s309_s28 }
   0x9   :  { %v48_v16 = vcombine.high %v40_v14, %v40_v14  ;;  %v56_v17 = vrot.slane %v40_v14, %v39_v13  ;;  %v49_v18 = vcombine.high %v47_v15, %v47_v15  ;;  %v63_v26 = vrot.slane %v47_v15, %v39_v13  ;;  %s353_s29 = scalar_lea.vmem %s310_s28, 32  ;;  %p358_p1 = scmp.lt.s32.totalorder %s310_s28, %s310_s28 }
   0xa   :  { %p354_p0 = scmp.ne.s32.totalorder %s310_s28, %s353_s29  ;;  %p359_p2 = scmp.lt.s32.totalorder %s353_s29, %s353_s29 }
   0xb   :  { %v70_v20 = vrot.slane %v48_v16, %v39_v13  ;;  %v78_v22 = vcombine.high %v56_v17, %v56_v17  ;;  %v77_v23 = vrot.slane %v49_v18, %v39_v13  ;;  %v79_v27 = vcombine.high %v63_v26, %v63_v26 }
   0xc   :  { %p360_p3 = por %p359_p2, %p358_p1 }
   0xd   :  { %161 = vmatprep.mubr.bf16.mxu0 %v70_v20  ;;  %v80_v24 = vcombine.high %v70_v20, %v70_v20 }
   0xe   :  { %162 = vmatmul.mubr.bf16.vlgmr.msra.gmra.mxu0 %v56_v17  ;;  %p361_p4 = pnand %p360_p3, %p354_p0 }
   0xf   :  { %224 = vmatpush1.bf16.xpose.msra.mxu0 %v345_v21  ;;  %201 = vmatprep.mubr.bf16.mxu1 %v80_v24 }
  0x10   :  { %202 = vmatmul.mubr.bf16.vlgmr.msra.gmra.mxu1 %v78_v22  ;;  %241 = vmatprep.mubr.bf16.mxu0 %v77_v23 }
  0x11   :  { %329 = vmatpush3.bf16.xpose.msra.mxu1 %v127_v25  ;;  %330 = vmatprep.mubr.msk.bf16.mxu1 %vm377_vm1, %v376_v12 }
  0x16   :  { %242 = vmatmul.mubr.bf16.vlgmr.msra.gmra.mxu0 %v63_v26 }
  0x18   :  { %331 = vmatmul.mubr.msk.bf16.vlgmr.msra.gmra.mxu1 %vm122_vm0, %v79_v27 }
  0xce   :  { %v163_v29 = vpop.f32.mrf.mxu0 }
  0xcf   :  { %v164_v32 = vadd.f32 %v317_v28, %v163_v29 }
  0xd0   :  { %v165_v30 = vpop.f32.mrf.mxu0  ;;  %v203_v31 = vpop.f32.mrf.mxu1 }
  0xd1   :  { %v204_v37 = vadd.f32 %v203_v31, %v164_v32 }
  0xd2   :  { %v166_v33 = vpop.f32.mrf.mxu0  ;;  %v205_v34 = vpop.f32.mrf.mxu1 }
  0xd4   :  { %v167_v35 = vpop.f32.mrf.mxu0  ;;  %v206_v36 = vpop.f32.mrf.mxu1 }
  0xd6   :  { %v207_v38 = vpop.f32.mrf.mxu1  ;;  %v243_v39 = vpop.f32.mrf.mxu0 }
  0xd7   :  { %v244_v40 = vadd.f32 %v243_v39, %v204_v37 }
  0xd8   :  { %v245_v41 = vpop.f32.mrf.mxu0  ;;  %v283_v42 = vpop.f32.mrf.mxu1 }
  0xd9   :  { %v284_v43 = vadd.f32 %v283_v42, %v244_v40 }
  0xda   :  { %v246_v44 = vpop.f32.mrf.mxu0  ;;  %v332_v45 = vpop.f32.mrf.mxu1 }
  0xdb   :  { %v290_v46 = vsel %vm289_vm2, %v284_v43, -inf }
  0xdc   :  { %v247_v47 = vpop.f32.mrf.mxu0  ;;  %v286_v48 = vpop.f32.mrf.mxu1  ;;  %291 = vmax.xlane.f32.xlu0 %v290_v46 }
  0xde   :  { %v333_v49 = vpop.f32.mrf.mxu1 }
 0x165   :  { %v292_v50 = vpop.xlane.xlu0 %291 }
 0x166   :  { %v293_v51 = vsub.f32 %v284_v43, %v292_v50 }
 0x168   :  { %v294_v52 = vmul.f32 1.442695, %v293_v51 }
 0x16a   :  { %349 = vpow2.f32 %v294_v52 }
 0x177   :  { %v350_v53 = vpop.eup %349 }
 0x178   :  { %v296_v54 = vsel %vm289_vm2, %v350_v53, 0.0 }
 0x179   :  { %297 = vadd.xlane.f32.xlu0 %v296_v54 }
 0x202   :  { %v298_v55 = vpop.xlane.xlu0 %297 }
 0x203   :  { %351 = vlog2.f32 %v298_v55 }
 0x210   :  { %v352_v56 = vpop.eup %351 }
 0x211   :  { %v300_v57 = vmul.f32 0.6931472, %v352_v56 }
 0x213   :  { %v301_v58 = vsub.f32 %v293_v51, %v300_v57 }
 0x215   :  { %302 = vst.msk [vmem:[#allocation2] sm:$0x3] %vm289_vm2, %v301_v58 }
 0x216   :  { %364 = shalt.err (!%p361_p4)
}
 0x217   :  { %312 = dma.vmem_to_hbm [thread:$0]  %s310_s28, 32, %s437_s3, [#allocation3]  }
 0x218   :  { %373 = dma.done.wait [#allocation3], 32  }
 0x219   :  { %374 = vsyncadd [#allocation3], 4294967264 }
 0x21a   :  { %316 = vsyncpa [#allocation3], 1 }

</bundles_post_ra>
